<compile_context>
chip_gen: v7x
topology: tpu7x:2x2x1
jax: 0.10.0
libtpu: 0.0.40
codegen_flags: <defaults>
</compile_context>

<pallas_src>
import functools

import jax
import jax.numpy as jnp
import numpy as np
from jax.experimental import pallas as pl
from jax.experimental.pallas import tpu as pltpu


# ---------------------------------------------------------------------------
# Fused TopDown forward kernel (one image = R roles per grid step)
# ---------------------------------------------------------------------------
def _fused_topdown_kernel(img_ref, q_ref,
                          w_qproj_ref, b_qproj_ref,
                          w_att_v_ref, w_att_q_ref, b_att1_ref, w_att2_ref,
                          w_qnet_ref, b_qnet_ref, w_vnet_ref, b_vnet_ref,
                          w_cls1_ref, b_cls1_ref, w_cls2_ref, b_cls2_ref,
                          o_ref, *, R, K, H, n_iter):
    f32 = jnp.float32

    img = img_ref[0]                                  # [R, K, H]
    qin = q_ref[0]                                    # [R, 2E]

    w_att_v = w_att_v_ref[...]                        # [H, H]
    w_att_q = w_att_q_ref[...]                        # [H, H]
    b_att1 = b_att1_ref[...]                          # [1, H]
    w2 = w_att2_ref[...]                              # [1, H]  (logit Linear; bias cancels in softmax)

    # Image-side attention hidden: constant across the 3 iterations and reused by both
    # attention stages (pooled_v @ W_v == wgt * hv because W_v is linear).
    hv = jnp.dot(img.reshape(R * K, H), w_att_v,
                 preferred_element_type=f32).reshape(R, K, H)

    q_emb = jnp.maximum(
        jnp.dot(qin, w_qproj_ref[...], preferred_element_type=f32) + b_qproj_ref[...], 0.0)
    hq_glob = jnp.dot(q_emb, w_att_q, preferred_element_type=f32)          # [R, H]
    q_repr = jnp.maximum(
        jnp.dot(q_emb, w_qnet_ref[...], preferred_element_type=f32) + b_qnet_ref[...], 0.0)

    joint = jnp.zeros((R, H), f32)
    for _ in range(n_iter):
        # ---- stage 1: label-context attention over the K image regions -----
        hq_ctx = jnp.dot(joint, w_att_q, preferred_element_type=f32)       # [R(ctx), H]
        wgt = jnp.zeros((R, K, 1), f32)
        for c in range(R):                                                 # static unroll (R small)
            # scores of context role c against every target role's image regions
            h1 = jnp.maximum(hv + hq_ctx[c:c + 1, :] + b_att1, 0.0)        # [R, K, H]
            s1 = jnp.sum(h1 * w2, axis=-1, keepdims=True)                  # [R, K, 1]
            s1 = s1 - jnp.max(s1, axis=1, keepdims=True)
            p1 = jnp.exp(s1)
            a1 = p1 * pl.reciprocal(jnp.sum(p1, axis=1, keepdims=True), approx=True)
            # role r only attends over the OTHER roles' label reps (drop c == r)
            keep = (jax.lax.broadcasted_iota(jnp.int32, (R, 1, 1), 0) != c).astype(f32)
            wgt = wgt + a1 * keep
        pooled_v = img * wgt                                               # [R, K, H]
        hv_pool = hv * wgt                                                 # == pooled_v @ W_v
        ctx_sum = jnp.sum(joint, axis=0, keepdims=True) - joint            # [R, H]

        # ---- stage 2: q_emb attention over the K+1 ctx_img slots -----------
        h_ctx = jnp.dot(ctx_sum, w_att_v, preferred_element_type=f32)      # [R, H]
        h2i = jnp.maximum(hv_pool + hq_glob[:, None, :] + b_att1, 0.0)     # [R, K, H]
        s2i = jnp.sum(h2i * w2, axis=-1, keepdims=True)                    # [R, K, 1]
        h2c = jnp.maximum(h_ctx + hq_glob + b_att1, 0.0)                   # [R, H]
        s2c = jnp.sum(h2c * w2, axis=-1, keepdims=True)                    # [R, 1]
        # split (regions | ctx slot) numerically-stable softmax -> no 9-row concat needed
        m2 = jnp.maximum(jnp.max(s2i, axis=1), s2c)                        # [R, 1]
        p2i = jnp.exp(s2i - m2[:, None, :])                                # [R, K, 1]
        p2c = jnp.exp(s2c - m2)                                            # [R, 1]
        inv2 = pl.reciprocal(jnp.sum(p2i, axis=1) + p2c, approx=True)      # [R, 1]
        v_emb = (jnp.sum(p2i * pooled_v, axis=1) + p2c * ctx_sum) * inv2   # [R, H]

        v_repr = jnp.maximum(
            jnp.dot(v_emb, w_vnet_ref[...], preferred_element_type=f32) + b_vnet_ref[...], 0.0)
        joint = joint + q_repr * v_repr                                    # dropout == identity

    hid = jnp.maximum(
        jnp.dot(joint, w_cls1_ref[...], preferred_element_type=f32) + b_cls1_ref[...], 0.0)
    logits = jnp.dot(hid, w_cls2_ref[...], preferred_element_type=f32) + b_cls2_ref[...]
    o_ref[0] = logits.astype(o_ref.dtype)


def top_down_forward(img_org, q, params, *, max_role_count, n_iter=3):
    """img_org:[B*R,K,H], q:[B*R,2E] -> logits:[B*R,V] (single fused pallas_call)."""
    R = max_role_count
    BR, K, H = img_org.shape
    B = BR // R
    E2 = q.shape[1]
    V = params["w_cls2"].shape[1]

    # Present per-image 3D/4D blocks so the last two block dims equal the full array dims.
    img4 = img_org.reshape(B, R, K, H)
    q3 = q.reshape(B, R, E2)

    def wspec(shape):
        return pl.BlockSpec(shape, lambda b: (0, 0))   # weights: resident, constant block

    kernel = functools.partial(_fused_topdown_kernel, R=R, K=K, H=H, n_iter=n_iter)
    out = pl.pallas_call(
        kernel,
        out_shape=jax.ShapeDtypeStruct((B, R, V), jnp.float32),
        grid=(B,),
        in_specs=[
            pl.BlockSpec((1, R, K, H), lambda b: (b, 0, 0, 0)),
            pl.BlockSpec((1, R, E2), lambda b: (b, 0, 0)),
            wspec(params["w_qproj"].shape), wspec(params["b_qproj"].shape),
            wspec(params["w_att_v"].shape), wspec(params["w_att_q"].shape),
            wspec(params["b_att1"].shape), wspec(params["w_att2"].shape),
            wspec(params["w_qnet"].shape), wspec(params["b_qnet"].shape),
            wspec(params["w_vnet"].shape), wspec(params["b_vnet"].shape),
            wspec(params["w_cls1"].shape), wspec(params["b_cls1"].shape),
            wspec(params["w_cls2"].shape), wspec(params["b_cls2"].shape),
        ],
        out_specs=pl.BlockSpec((1, R, V), lambda b: (b, 0, 0)),
        compiler_params=pltpu.CompilerParams(dimension_semantics=("parallel",)),
    )(img4, q3,
      params["w_qproj"], params["b_qproj"],
      params["w_att_v"], params["w_att_q"], params["b_att1"], params["w_att2"],
      params["w_qnet"], params["b_qnet"],
      params["w_vnet"], params["b_vnet"],
      params["w_cls1"], params["b_cls1"],
      params["w_cls2"], params["b_cls2"])
    return out.reshape(BR, V)


def init_params(key, E, H, V):
    ks = jax.random.split(key, 14)
    w = lambda k, s: jax.random.normal(k, s, jnp.float32) * 0.05
    return dict(
        w_qproj=w(ks[0], (2 * E, H)), b_qproj=w(ks[1], (1, H)),
        # Attention: FCNet([2H, H]) weight split into its v / q halves (cat order: [v, q])
        w_att_v=w(ks[2], (H, H)), w_att_q=w(ks[3], (H, H)), b_att1=w(ks[4], (1, H)),
        w_att2=w(ks[5], (1, H)),   # Linear(H, 1) weight; its bias cancels under softmax
        w_qnet=w(ks[6], (H, H)), b_qnet=w(ks[7], (1, H)),
        w_vnet=w(ks[8], (H, H)), b_vnet=w(ks[9], (1, H)),
        w_cls1=w(ks[10], (H, 2 * H)), b_cls1=w(ks[11], (1, 2 * H)),
        w_cls2=w(ks[12], (2 * H, V)), b_cls2=w(ks[13], (1, V)),
    )


# ---------------------------------------------------------------------------
# Pure-JAX reference that mirrors the PyTorch control flow exactly
# ---------------------------------------------------------------------------
def reference_forward(img_org, q, params, R):
    BR, K, H = img_org.shape
    B = BR // R

    def lin(x, w, b, relu):
        y = x @ w + b
        return jnp.maximum(y, 0.0) if relu else y

    def attention(v, qv):  # v:[N,Kv,H], qv:[N,H] -> softmax weights [N,Kv,1]
        N, Kv, _ = v.shape
        qe = jnp.broadcast_to(qv[:, None, :], (N, Kv, H))
        vq = jnp.concatenate([v, qe], axis=2)
        w1 = jnp.concatenate([params["w_att_v"], params["w_att_q"]], axis=0)
        hid = jnp.maximum(vq @ w1 + params["b_att1"], 0.0)
        logit = hid @ params["w_att2"].T                                   # [N,Kv,1]
        return jax.nn.softmax(logit, axis=1)

    q_emb = lin(q, params["w_qproj"], params["b_qproj"], True)
    joint = jnp.zeros((BR, H), jnp.float32)
    img_exp = jnp.broadcast_to(img_org[:, None], (BR, R - 1, K, H)).reshape(BR * (R - 1), K, H)
    others = np.asarray([[j for j in range(R) if j != i] for i in range(R)])
    for _ in range(3):
        labelrep = joint.reshape(B, R, H)
        ctx = labelrep[:, others, :].reshape(BR * (R - 1), H)
        att = attention(img_exp, ctx)
        v_emb = att * img_exp
        jctx = jnp.concatenate([v_emb, ctx[:, None, :]], axis=1)
        ctx_img = jctx.reshape(BR, R - 1, K + 1, H).sum(axis=1)
        att2 = attention(ctx_img, q_emb)
        v_emb2 = (att2 * ctx_img).sum(axis=1)
        q_repr = lin(q_emb, params["w_qnet"], params["b_qnet"], True)
        v_repr = lin(v_emb2, params["w_vnet"], params["b_vnet"], True)
        joint = joint + q_repr * v_repr
    h = lin(joint, params["w_cls1"], params["b_cls1"], True)
    return lin(h, params["w_cls2"], params["b_cls2"], False)


# ---------------------------------------------------------------------------
if __name__ == "__main__":
    B = 2      # true batch size
    R = 4      # max_role_count
    K = 8      # image regions per image
    E = 16     # embed_hidden
    H = 32     # mlp_hidden
    V = 64     # vocab_size
    BR = B * R

    key = jax.random.PRNGKey(0)
    k_img, k_q, k_p = jax.random.split(key, 3)
    img_org = jax.random.normal(k_img, (BR, K, H), dtype=jnp.float32)
    q = jax.random.normal(k_q, (BR, 2 * E), dtype=jnp.float32)
    params = init_params(k_p, E, H, V)

    fwd = jax.jit(functools.partial(top_down_forward, max_role_count=R))
    logits = fwd(img_org, q, params)
    jax.block_until_ready(logits)
    assert logits.shape == (BR, V), logits.shape

    with jax.default_matmul_precision("highest"):
        ref = reference_forward(img_org, q, params, R)
    np.testing.assert_allclose(np.asarray(logits), np.asarray(ref), rtol=5e-3, atol=5e-3)

    print("KERNEL_OK")
</pallas_src>

<mosaic_0001>
module attributes {stable_mosaic.version = 11 : i64} {
  func.func @_fused_topdown_kernel(%arg0: i32, %arg1: memref<1x4x8x32xf32, #tpu.memory_space<vmem>>, %arg2: memref<1x4x32xf32, #tpu.memory_space<vmem>>, %arg3: memref<32x32xf32, #tpu.memory_space<vmem>>, %arg4: memref<1x32xf32, #tpu.memory_space<vmem>>, %arg5: memref<32x32xf32, #tpu.memory_space<vmem>>, %arg6: memref<32x32xf32, #tpu.memory_space<vmem>>, %arg7: memref<1x32xf32, #tpu.memory_space<vmem>>, %arg8: memref<1x32xf32, #tpu.memory_space<vmem>>, %arg9: memref<32x32xf32, #tpu.memory_space<vmem>>, %arg10: memref<1x32xf32, #tpu.memory_space<vmem>>, %arg11: memref<32x32xf32, #tpu.memory_space<vmem>>, %arg12: memref<1x32xf32, #tpu.memory_space<vmem>>, %arg13: memref<32x64xf32, #tpu.memory_space<vmem>>, %arg14: memref<1x64xf32, #tpu.memory_space<vmem>>, %arg15: memref<64x64xf32, #tpu.memory_space<vmem>>, %arg16: memref<1x64xf32, #tpu.memory_space<vmem>>, %arg17: memref<1x4x64xf32, #tpu.memory_space<vmem>>) attributes {dimension_semantics = [#tpu.dimension_semantics<parallel>], iteration_bounds = array<i64: 2>, scalar_prefetch = 0 : i64, scratch_operands = 0 : i64, tpu.core_type = #tpu.core_type<tc>, window_params = [{transform_indices = @transform_0, window_bounds = array<i64: 1, 4, 8, 32>}, {transform_indices = @transform_1, window_bounds = array<i64: 1, 4, 32>}, {pipeline_mode = #tpu.pipeline_mode<synchronous>, transform_indices = @transform_2, window_bounds = array<i64: 32, 32>}, {pipeline_mode = #tpu.pipeline_mode<synchronous>, transform_indices = @transform_3, window_bounds = array<i64: 1, 32>}, {pipeline_mode = #tpu.pipeline_mode<synchronous>, transform_indices = @transform_4, window_bounds = array<i64: 32, 32>}, {pipeline_mode = #tpu.pipeline_mode<synchronous>, transform_indices = @transform_5, window_bounds = array<i64: 32, 32>}, {pipeline_mode = #tpu.pipeline_mode<synchronous>, transform_indices = @transform_6, window_bounds = array<i64: 1, 32>}, {pipeline_mode = #tpu.pipeline_mode<synchronous>, transform_indices = @transform_7, window_bounds = array<i64: 1, 32>}, {pipeline_mode = #tpu.pipeline_mode<synchronous>, transform_indices = @transform_8, window_bounds = array<i64: 32, 32>}, {pipeline_mode = #tpu.pipeline_mode<synchronous>, transform_indices = @transform_9, window_bounds = array<i64: 1, 32>}, {pipeline_mode = #tpu.pipeline_mode<synchronous>, transform_indices = @transform_10, window_bounds = array<i64: 32, 32>}, {pipeline_mode = #tpu.pipeline_mode<synchronous>, transform_indices = @transform_11, window_bounds = array<i64: 1, 32>}, {pipeline_mode = #tpu.pipeline_mode<synchronous>, transform_indices = @transform_12, window_bounds = array<i64: 32, 64>}, {pipeline_mode = #tpu.pipeline_mode<synchronous>, transform_indices = @transform_13, window_bounds = array<i64: 1, 64>}, {pipeline_mode = #tpu.pipeline_mode<synchronous>, transform_indices = @transform_14, window_bounds = array<i64: 64, 64>}, {pipeline_mode = #tpu.pipeline_mode<synchronous>, transform_indices = @transform_15, window_bounds = array<i64: 1, 64>}, {transform_indices = @transform_16, window_bounds = array<i64: 1, 4, 64>}]} {
    %c0 = arith.constant 0 : index
    %c0_0 = arith.constant 0 : index
    %c0_1 = arith.constant 0 : index
    %c0_2 = arith.constant 0 : index
    %0 = vector.load %arg1[%c0, %c0_0, %c0_1, %c0_2] : memref<1x4x8x32xf32, #tpu.memory_space<vmem>>, vector<1x4x8x32xf32>
    %1 = vector.shape_cast %0 : vector<1x4x8x32xf32> to vector<4x8x32xf32>
    %c0_3 = arith.constant 0 : index
    %c0_4 = arith.constant 0 : index
    %c0_5 = arith.constant 0 : index
    %2 = vector.load %arg2[%c0_3, %c0_4, %c0_5] : memref<1x4x32xf32, #tpu.memory_space<vmem>>, vector<1x4x32xf32>
    %3 = vector.shape_cast %2 : vector<1x4x32xf32> to vector<4x32xf32>
    %c0_6 = arith.constant 0 : index
    %c0_7 = arith.constant 0 : index
    %4 = vector.load %arg5[%c0_6, %c0_7] : memref<32x32xf32, #tpu.memory_space<vmem>>, vector<32x32xf32>
    %c0_8 = arith.constant 0 : index
    %c0_9 = arith.constant 0 : index
    %5 = vector.load %arg6[%c0_8, %c0_9] : memref<32x32xf32, #tpu.memory_space<vmem>>, vector<32x32xf32>
    %c0_10 = arith.constant 0 : index
    %c0_11 = arith.constant 0 : index
    %6 = vector.load %arg7[%c0_10, %c0_11] : memref<1x32xf32, #tpu.memory_space<vmem>>, vector<1x32xf32>
    %c0_12 = arith.constant 0 : index
    %c0_13 = arith.constant 0 : index
    %7 = vector.load %arg8[%c0_12, %c0_13] : memref<1x32xf32, #tpu.memory_space<vmem>>, vector<1x32xf32>
    %8 = vector.shape_cast %1 : vector<4x8x32xf32> to vector<32x32xf32>
    %cst = arith.constant dense<0.000000e+00> : vector<32x32xf32>
    %9 = tpu.matmul %8, %4, %cst {dimension_numbers = #tpu.dot_dimension_numbers<[1], [0], [0], [1], [0, 0, 1, 1], [], []>} : vector<32x32xf32>, vector<32x32xf32>, vector<32x32xf32> -> vector<32x32xf32>
    %10 = vector.shape_cast %9 : vector<32x32xf32> to vector<4x8x32xf32>
    %c0_14 = arith.constant 0 : index
    %c0_15 = arith.constant 0 : index
    %11 = vector.load %arg3[%c0_14, %c0_15] : memref<32x32xf32, #tpu.memory_space<vmem>>, vector<32x32xf32>
    %cst_16 = arith.constant dense<0.000000e+00> : vector<4x32xf32>
    %12 = tpu.matmul %3, %11, %cst_16 {dimension_numbers = #tpu.dot_dimension_numbers<[1], [0], [0], [1], [0, 0, 1, 1], [], []>} : vector<4x32xf32>, vector<32x32xf32>, vector<4x32xf32> -> vector<4x32xf32>
    %c0_17 = arith.constant 0 : index
    %c0_18 = arith.constant 0 : index
    %13 = vector.load %arg4[%c0_17, %c0_18] : memref<1x32xf32, #tpu.memory_space<vmem>>, vector<1x32xf32>
    %14 = vector.broadcast %13 : vector<1x32xf32> to vector<4x32xf32>
    %15 = arith.addf %12, %14 : vector<4x32xf32>
    %cst_19 = arith.constant 0.000000e+00 : f32
    %16 = vector.broadcast %cst_19 : f32 to vector<4x32xf32>
    %17 = arith.maximumf %15, %16 : vector<4x32xf32>
    %cst_20 = arith.constant dense<0.000000e+00> : vector<4x32xf32>
    %18 = tpu.matmul %17, %5, %cst_20 {dimension_numbers = #tpu.dot_dimension_numbers<[1], [0], [0], [1], [0, 0, 1, 1], [], []>} : vector<4x32xf32>, vector<32x32xf32>, vector<4x32xf32> -> vector<4x32xf32>
    %c0_21 = arith.constant 0 : index
    %c0_22 = arith.constant 0 : index
    %19 = vector.load %arg9[%c0_21, %c0_22] : memref<32x32xf32, #tpu.memory_space<vmem>>, vector<32x32xf32>
    %cst_23 = arith.constant dense<0.000000e+00> : vector<4x32xf32>
    %20 = tpu.matmul %17, %19, %cst_23 {dimension_numbers = #tpu.dot_dimension_numbers<[1], [0], [0], [1], [0, 0, 1, 1], [], []>} : vector<4x32xf32>, vector<32x32xf32>, vector<4x32xf32> -> vector<4x32xf32>
    %c0_24 = arith.constant 0 : index
    %c0_25 = arith.constant 0 : index
    %21 = vector.load %arg10[%c0_24, %c0_25] : memref<1x32xf32, #tpu.memory_space<vmem>>, vector<1x32xf32>
    %22 = vector.broadcast %21 : vector<1x32xf32> to vector<4x32xf32>
    %23 = arith.addf %20, %22 : vector<4x32xf32>
    %cst_26 = arith.constant 0.000000e+00 : f32
    %24 = vector.broadcast %cst_26 : f32 to vector<4x32xf32>
    %25 = arith.maximumf %23, %24 : vector<4x32xf32>
    %cst_27 = arith.constant 0.000000e+00 : f32
    %26 = vector.broadcast %cst_27 : f32 to vector<4x32xf32>
    %cst_28 = arith.constant dense<0.000000e+00> : vector<4x32xf32>
    %27 = tpu.matmul %26, %5, %cst_28 {dimension_numbers = #tpu.dot_dimension_numbers<[1], [0], [0], [1], [0, 0, 1, 1], [], []>} : vector<4x32xf32>, vector<32x32xf32>, vector<4x32xf32> -> vector<4x32xf32>
    %cst_29 = arith.constant 0.000000e+00 : f32
    %28 = vector.broadcast %cst_29 : f32 to vector<4x8x1xf32>
    %29 = vector.extract_strided_slice %27 {offsets = [0, 0], sizes = [1, 32], strides = [1, 1]} : vector<4x32xf32> to vector<1x32xf32>
    %30 = vector.shape_cast %29 : vector<1x32xf32> to vector<1x1x32xf32>
    %31 = vector.broadcast %30 : vector<1x1x32xf32> to vector<4x8x32xf32>
    %32 = arith.addf %10, %31 : vector<4x8x32xf32>
    %33 = vector.shape_cast %6 : vector<1x32xf32> to vector<1x1x32xf32>
    %34 = vector.broadcast %33 : vector<1x1x32xf32> to vector<4x8x32xf32>
    %35 = arith.addf %32, %34 : vector<4x8x32xf32>
    %cst_30 = arith.constant 0.000000e+00 : f32
    %36 = vector.broadcast %cst_30 : f32 to vector<4x8x32xf32>
    %37 = arith.maximumf %35, %36 : vector<4x8x32xf32>
    %38 = vector.shape_cast %7 : vector<1x32xf32> to vector<1x1x32xf32>
    %39 = vector.broadcast %38 : vector<1x1x32xf32> to vector<4x8x32xf32>
    %40 = arith.mulf %37, %39 : vector<4x8x32xf32>
    %cst_31 = arith.constant dense<0.000000e+00> : vector<4x8xf32>
    %41 = vector.multi_reduction <add>, %40, %cst_31 [2] : vector<4x8x32xf32> to vector<4x8xf32>
    %42 = vector.shape_cast %41 : vector<4x8xf32> to vector<4x8x1xf32>
    %cst_32 = arith.constant dense<0xFF800000> : vector<4x1xf32>
    %43 = vector.multi_reduction <maximumf>, %42, %cst_32 [1] : vector<4x8x1xf32> to vector<4x1xf32>
    %44 = vector.shape_cast %43 : vector<4x1xf32> to vector<4x1x1xf32>
    %45 = vector.broadcast %44 : vector<4x1x1xf32> to vector<4x8x1xf32>
    %46 = arith.subf %42, %45 : vector<4x8x1xf32>
    %47 = math.exp %46 : vector<4x8x1xf32>
    %cst_33 = arith.constant dense<0.000000e+00> : vector<4x1xf32>
    %48 = vector.multi_reduction <add>, %47, %cst_33 [1] : vector<4x8x1xf32> to vector<4x1xf32>
    %49 = vector.shape_cast %48 : vector<4x1xf32> to vector<4x1x1xf32>
    %50 = tpu.reciprocal %49 {approx = true} : vector<4x1x1xf32> -> vector<4x1x1xf32>
    %51 = vector.broadcast %50 : vector<4x1x1xf32> to vector<4x8x1xf32>
    %52 = arith.mulf %47, %51 : vector<4x8x1xf32>
    %53 = tpu.iota {dimensions = array<i32: 0>} : vector<4x1x1xi32>
    %c0_i32 = arith.constant 0 : i32
    %54 = vector.broadcast %c0_i32 : i32 to vector<4x1x1xi32>
    %55 = arith.cmpi ne, %53, %54 : vector<4x1x1xi32>
    %56 = arith.extui %55 : vector<4x1x1xi1> to vector<4x1x1xi32>
    %57 = arith.sitofp %56 : vector<4x1x1xi32> to vector<4x1x1xf32>
    %58 = vector.broadcast %57 : vector<4x1x1xf32> to vector<4x8x1xf32>
    %59 = arith.mulf %52, %58 : vector<4x8x1xf32>
    %60 = arith.addf %28, %59 : vector<4x8x1xf32>
    %61 = vector.extract_strided_slice %27 {offsets = [1, 0], sizes = [1, 32], strides = [1, 1]} : vector<4x32xf32> to vector<1x32xf32>
    %62 = vector.shape_cast %61 : vector<1x32xf32> to vector<1x1x32xf32>
    %63 = vector.broadcast %62 : vector<1x1x32xf32> to vector<4x8x32xf32>
    %64 = arith.addf %10, %63 : vector<4x8x32xf32>
    %65 = vector.shape_cast %6 : vector<1x32xf32> to vector<1x1x32xf32>
    %66 = vector.broadcast %65 : vector<1x1x32xf32> to vector<4x8x32xf32>
    %67 = arith.addf %64, %66 : vector<4x8x32xf32>
    %cst_34 = arith.constant 0.000000e+00 : f32
    %68 = vector.broadcast %cst_34 : f32 to vector<4x8x32xf32>
    %69 = arith.maximumf %67, %68 : vector<4x8x32xf32>
    %70 = vector.shape_cast %7 : vector<1x32xf32> to vector<1x1x32xf32>
    %71 = vector.broadcast %70 : vector<1x1x32xf32> to vector<4x8x32xf32>
    %72 = arith.mulf %69, %71 : vector<4x8x32xf32>
    %cst_35 = arith.constant dense<0.000000e+00> : vector<4x8xf32>
    %73 = vector.multi_reduction <add>, %72, %cst_35 [2] : vector<4x8x32xf32> to vector<4x8xf32>
    %74 = vector.shape_cast %73 : vector<4x8xf32> to vector<4x8x1xf32>
    %cst_36 = arith.constant dense<0xFF800000> : vector<4x1xf32>
    %75 = vector.multi_reduction <maximumf>, %74, %cst_36 [1] : vector<4x8x1xf32> to vector<4x1xf32>
    %76 = vector.shape_cast %75 : vector<4x1xf32> to vector<4x1x1xf32>
    %77 = vector.broadcast %76 : vector<4x1x1xf32> to vector<4x8x1xf32>
    %78 = arith.subf %74, %77 : vector<4x8x1xf32>
    %79 = math.exp %78 : vector<4x8x1xf32>
    %cst_37 = arith.constant dense<0.000000e+00> : vector<4x1xf32>
    %80 = vector.multi_reduction <add>, %79, %cst_37 [1] : vector<4x8x1xf32> to vector<4x1xf32>
    %81 = vector.shape_cast %80 : vector<4x1xf32> to vector<4x1x1xf32>
    %82 = tpu.reciprocal %81 {approx = true} : vector<4x1x1xf32> -> vector<4x1x1xf32>
    %83 = vector.broadcast %82 : vector<4x1x1xf32> to vector<4x8x1xf32>
    %84 = arith.mulf %79, %83 : vector<4x8x1xf32>
    %85 = tpu.iota {dimensions = array<i32: 0>} : vector<4x1x1xi32>
    %c1_i32 = arith.constant 1 : i32
    %86 = vector.broadcast %c1_i32 : i32 to vector<4x1x1xi32>
    %87 = arith.cmpi ne, %85, %86 : vector<4x1x1xi32>
    %88 = arith.extui %87 : vector<4x1x1xi1> to vector<4x1x1xi32>
    %89 = arith.sitofp %88 : vector<4x1x1xi32> to vector<4x1x1xf32>
    %90 = vector.broadcast %89 : vector<4x1x1xf32> to vector<4x8x1xf32>
    %91 = arith.mulf %84, %90 : vector<4x8x1xf32>
    %92 = arith.addf %60, %91 : vector<4x8x1xf32>
    %93 = vector.extract_strided_slice %27 {offsets = [2, 0], sizes = [1, 32], strides = [1, 1]} : vector<4x32xf32> to vector<1x32xf32>
    %94 = vector.shape_cast %93 : vector<1x32xf32> to vector<1x1x32xf32>
    %95 = vector.broadcast %94 : vector<1x1x32xf32> to vector<4x8x32xf32>
    %96 = arith.addf %10, %95 : vector<4x8x32xf32>
    %97 = vector.shape_cast %6 : vector<1x32xf32> to vector<1x1x32xf32>
    %98 = vector.broadcast %97 : vector<1x1x32xf32> to vector<4x8x32xf32>
    %99 = arith.addf %96, %98 : vector<4x8x32xf32>
    %cst_38 = arith.constant 0.000000e+00 : f32
    %100 = vector.broadcast %cst_38 : f32 to vector<4x8x32xf32>
    %101 = arith.maximumf %99, %100 : vector<4x8x32xf32>
    %102 = vector.shape_cast %7 : vector<1x32xf32> to vector<1x1x32xf32>
    %103 = vector.broadcast %102 : vector<1x1x32xf32> to vector<4x8x32xf32>
    %104 = arith.mulf %101, %103 : vector<4x8x32xf32>
    %cst_39 = arith.constant dense<0.000000e+00> : vector<4x8xf32>
    %105 = vector.multi_reduction <add>, %104, %cst_39 [2] : vector<4x8x32xf32> to vector<4x8xf32>
    %106 = vector.shape_cast %105 : vector<4x8xf32> to vector<4x8x1xf32>
    %cst_40 = arith.constant dense<0xFF800000> : vector<4x1xf32>
    %107 = vector.multi_reduction <maximumf>, %106, %cst_40 [1] : vector<4x8x1xf32> to vector<4x1xf32>
    %108 = vector.shape_cast %107 : vector<4x1xf32> to vector<4x1x1xf32>
    %109 = vector.broadcast %108 : vector<4x1x1xf32> to vector<4x8x1xf32>
    %110 = arith.subf %106, %109 : vector<4x8x1xf32>
    %111 = math.exp %110 : vector<4x8x1xf32>
    %cst_41 = arith.constant dense<0.000000e+00> : vector<4x1xf32>
    %112 = vector.multi_reduction <add>, %111, %cst_41 [1] : vector<4x8x1xf32> to vector<4x1xf32>
    %113 = vector.shape_cast %112 : vector<4x1xf32> to vector<4x1x1xf32>
    %114 = tpu.reciprocal %113 {approx = true} : vector<4x1x1xf32> -> vector<4x1x1xf32>
    %115 = vector.broadcast %114 : vector<4x1x1xf32> to vector<4x8x1xf32>
    %116 = arith.mulf %111, %115 : vector<4x8x1xf32>
    %117 = tpu.iota {dimensions = array<i32: 0>} : vector<4x1x1xi32>
    %c2_i32 = arith.constant 2 : i32
    %118 = vector.broadcast %c2_i32 : i32 to vector<4x1x1xi32>
    %119 = arith.cmpi ne, %117, %118 : vector<4x1x1xi32>
    %120 = arith.extui %119 : vector<4x1x1xi1> to vector<4x1x1xi32>
    %121 = arith.sitofp %120 : vector<4x1x1xi32> to vector<4x1x1xf32>
    %122 = vector.broadcast %121 : vector<4x1x1xf32> to vector<4x8x1xf32>
    %123 = arith.mulf %116, %122 : vector<4x8x1xf32>
    %124 = arith.addf %92, %123 : vector<4x8x1xf32>
    %125 = vector.extract_strided_slice %27 {offsets = [3, 0], sizes = [1, 32], strides = [1, 1]} : vector<4x32xf32> to vector<1x32xf32>
    %126 = vector.shape_cast %125 : vector<1x32xf32> to vector<1x1x32xf32>
    %127 = vector.broadcast %126 : vector<1x1x32xf32> to vector<4x8x32xf32>
    %128 = arith.addf %10, %127 : vector<4x8x32xf32>
    %129 = vector.shape_cast %6 : vector<1x32xf32> to vector<1x1x32xf32>
    %130 = vector.broadcast %129 : vector<1x1x32xf32> to vector<4x8x32xf32>
    %131 = arith.addf %128, %130 : vector<4x8x32xf32>
    %cst_42 = arith.constant 0.000000e+00 : f32
    %132 = vector.broadcast %cst_42 : f32 to vector<4x8x32xf32>
    %133 = arith.maximumf %131, %132 : vector<4x8x32xf32>
    %134 = vector.shape_cast %7 : vector<1x32xf32> to vector<1x1x32xf32>
    %135 = vector.broadcast %134 : vector<1x1x32xf32> to vector<4x8x32xf32>
    %136 = arith.mulf %133, %135 : vector<4x8x32xf32>
    %cst_43 = arith.constant dense<0.000000e+00> : vector<4x8xf32>
    %137 = vector.multi_reduction <add>, %136, %cst_43 [2] : vector<4x8x32xf32> to vector<4x8xf32>
    %138 = vector.shape_cast %137 : vector<4x8xf32> to vector<4x8x1xf32>
    %cst_44 = arith.constant dense<0xFF800000> : vector<4x1xf32>
    %139 = vector.multi_reduction <maximumf>, %138, %cst_44 [1] : vector<4x8x1xf32> to vector<4x1xf32>
    %140 = vector.shape_cast %139 : vector<4x1xf32> to vector<4x1x1xf32>
    %141 = vector.broadcast %140 : vector<4x1x1xf32> to vector<4x8x1xf32>
    %142 = arith.subf %138, %141 : vector<4x8x1xf32>
    %143 = math.exp %142 : vector<4x8x1xf32>
    %cst_45 = arith.constant dense<0.000000e+00> : vector<4x1xf32>
    %144 = vector.multi_reduction <add>, %143, %cst_45 [1] : vector<4x8x1xf32> to vector<4x1xf32>
    %145 = vector.shape_cast %144 : vector<4x1xf32> to vector<4x1x1xf32>
    %146 = tpu.reciprocal %145 {approx = true} : vector<4x1x1xf32> -> vector<4x1x1xf32>
    %147 = vector.broadcast %146 : vector<4x1x1xf32> to vector<4x8x1xf32>
    %148 = arith.mulf %143, %147 : vector<4x8x1xf32>
    %149 = tpu.iota {dimensions = array<i32: 0>} : vector<4x1x1xi32>
    %c3_i32 = arith.constant 3 : i32
    %150 = vector.broadcast %c3_i32 : i32 to vector<4x1x1xi32>
    %151 = arith.cmpi ne, %149, %150 : vector<4x1x1xi32>
    %152 = arith.extui %151 : vector<4x1x1xi1> to vector<4x1x1xi32>
    %153 = arith.sitofp %152 : vector<4x1x1xi32> to vector<4x1x1xf32>
    %154 = vector.broadcast %153 : vector<4x1x1xf32> to vector<4x8x1xf32>
    %155 = arith.mulf %148, %154 : vector<4x8x1xf32>
    %156 = arith.addf %124, %155 : vector<4x8x1xf32>
    %157 = vector.broadcast %156 : vector<4x8x1xf32> to vector<4x8x32xf32>
    %158 = arith.mulf %1, %157 : vector<4x8x32xf32>
    %159 = vector.broadcast %156 : vector<4x8x1xf32> to vector<4x8x32xf32>
    %160 = arith.mulf %10, %159 : vector<4x8x32xf32>
    %cst_46 = arith.constant dense<0.000000e+00> : vector<32xf32>
    %161 = vector.multi_reduction <add>, %26, %cst_46 [0] : vector<4x32xf32> to vector<32xf32>
    %162 = vector.shape_cast %161 : vector<32xf32> to vector<1x32xf32>
    %163 = vector.broadcast %162 : vector<1x32xf32> to vector<4x32xf32>
    %164 = arith.subf %163, %26 : vector<4x32xf32>
    %cst_47 = arith.constant dense<0.000000e+00> : vector<4x32xf32>
    %165 = tpu.matmul %164, %4, %cst_47 {dimension_numbers = #tpu.dot_dimension_numbers<[1], [0], [0], [1], [0, 0, 1, 1], [], []>} : vector<4x32xf32>, vector<32x32xf32>, vector<4x32xf32> -> vector<4x32xf32>
    %166 = vector.shape_cast %18 : vector<4x32xf32> to vector<4x1x32xf32>
    %167 = vector.broadcast %166 : vector<4x1x32xf32> to vector<4x8x32xf32>
    %168 = arith.addf %160, %167 : vector<4x8x32xf32>
    %169 = vector.shape_cast %6 : vector<1x32xf32> to vector<1x1x32xf32>
    %170 = vector.broadcast %169 : vector<1x1x32xf32> to vector<4x8x32xf32>
    %171 = arith.addf %168, %170 : vector<4x8x32xf32>
    %cst_48 = arith.constant 0.000000e+00 : f32
    %172 = vector.broadcast %cst_48 : f32 to vector<4x8x32xf32>
    %173 = arith.maximumf %171, %172 : vector<4x8x32xf32>
    %174 = vector.shape_cast %7 : vector<1x32xf32> to vector<1x1x32xf32>
    %175 = vector.broadcast %174 : vector<1x1x32xf32> to vector<4x8x32xf32>
    %176 = arith.mulf %173, %175 : vector<4x8x32xf32>
    %cst_49 = arith.constant dense<0.000000e+00> : vector<4x8xf32>
    %177 = vector.multi_reduction <add>, %176, %cst_49 [2] : vector<4x8x32xf32> to vector<4x8xf32>
    %178 = vector.shape_cast %177 : vector<4x8xf32> to vector<4x8x1xf32>
    %179 = arith.addf %165, %18 : vector<4x32xf32>
    %180 = vector.broadcast %6 : vector<1x32xf32> to vector<4x32xf32>
    %181 = arith.addf %179, %180 : vector<4x32xf32>
    %cst_50 = arith.constant 0.000000e+00 : f32
    %182 = vector.broadcast %cst_50 : f32 to vector<4x32xf32>
    %183 = arith.maximumf %181, %182 : vector<4x32xf32>
    %184 = vector.broadcast %7 : vector<1x32xf32> to vector<4x32xf32>
    %185 = arith.mulf %183, %184 : vector<4x32xf32>
    %cst_51 = arith.constant dense<0.000000e+00> : vector<4xf32>
    %186 = vector.multi_reduction <add>, %185, %cst_51 [1] : vector<4x32xf32> to vector<4xf32>
    %187 = vector.shape_cast %186 : vector<4xf32> to vector<4x1xf32>
    %cst_52 = arith.constant dense<0xFF800000> : vector<4x1xf32>
    %188 = vector.multi_reduction <maximumf>, %178, %cst_52 [1] : vector<4x8x1xf32> to vector<4x1xf32>
    %189 = arith.maximumf %188, %187 : vector<4x1xf32>
    %190 = vector.shape_cast %189 : vector<4x1xf32> to vector<4x1x1xf32>
    %191 = vector.broadcast %190 : vector<4x1x1xf32> to vector<4x8x1xf32>
    %192 = arith.subf %178, %191 : vector<4x8x1xf32>
    %193 = math.exp %192 : vector<4x8x1xf32>
    %194 = arith.subf %187, %189 : vector<4x1xf32>
    %195 = math.exp %194 : vector<4x1xf32>
    %cst_53 = arith.constant dense<0.000000e+00> : vector<4x1xf32>
    %196 = vector.multi_reduction <add>, %193, %cst_53 [1] : vector<4x8x1xf32> to vector<4x1xf32>
    %197 = arith.addf %196, %195 : vector<4x1xf32>
    %198 = tpu.reciprocal %197 {approx = true} : vector<4x1xf32> -> vector<4x1xf32>
    %199 = vector.broadcast %193 : vector<4x8x1xf32> to vector<4x8x32xf32>
    %200 = arith.mulf %199, %158 : vector<4x8x32xf32>
    %cst_54 = arith.constant dense<0.000000e+00> : vector<4x32xf32>
    %201 = vector.multi_reduction <add>, %200, %cst_54 [1] : vector<4x8x32xf32> to vector<4x32xf32>
    %202 = vector.broadcast %195 : vector<4x1xf32> to vector<4x32xf32>
    %203 = arith.mulf %202, %164 : vector<4x32xf32>
    %204 = arith.addf %201, %203 : vector<4x32xf32>
    %205 = vector.broadcast %198 : vector<4x1xf32> to vector<4x32xf32>
    %206 = arith.mulf %204, %205 : vector<4x32xf32>
    %c0_55 = arith.constant 0 : index
    %c0_56 = arith.constant 0 : index
    %207 = vector.load %arg11[%c0_55, %c0_56] : memref<32x32xf32, #tpu.memory_space<vmem>>, vector<32x32xf32>
    %cst_57 = arith.constant dense<0.000000e+00> : vector<4x32xf32>
    %208 = tpu.matmul %206, %207, %cst_57 {dimension_numbers = #tpu.dot_dimension_numbers<[1], [0], [0], [1], [0, 0, 1, 1], [], []>} : vector<4x32xf32>, vector<32x32xf32>, vector<4x32xf32> -> vector<4x32xf32>
    %c0_58 = arith.constant 0 : index
    %c0_59 = arith.constant 0 : index
    %209 = vector.load %arg12[%c0_58, %c0_59] : memref<1x32xf32, #tpu.memory_space<vmem>>, vector<1x32xf32>
    %210 = vector.broadcast %209 : vector<1x32xf32> to vector<4x32xf32>
    %211 = arith.addf %208, %210 : vector<4x32xf32>
    %cst_60 = arith.constant 0.000000e+00 : f32
    %212 = vector.broadcast %cst_60 : f32 to vector<4x32xf32>
    %213 = arith.maximumf %211, %212 : vector<4x32xf32>
    %214 = arith.mulf %25, %213 : vector<4x32xf32>
    %215 = arith.addf %26, %214 : vector<4x32xf32>
    %cst_61 = arith.constant dense<0.000000e+00> : vector<4x32xf32>
    %216 = tpu.matmul %215, %5, %cst_61 {dimension_numbers = #tpu.dot_dimension_numbers<[1], [0], [0], [1], [0, 0, 1, 1], [], []>} : vector<4x32xf32>, vector<32x32xf32>, vector<4x32xf32> -> vector<4x32xf32>
    %cst_62 = arith.constant 0.000000e+00 : f32
    %217 = vector.broadcast %cst_62 : f32 to vector<4x8x1xf32>
    %218 = vector.extract_strided_slice %216 {offsets = [0, 0], sizes = [1, 32], strides = [1, 1]} : vector<4x32xf32> to vector<1x32xf32>
    %219 = vector.shape_cast %218 : vector<1x32xf32> to vector<1x1x32xf32>
    %220 = vector.broadcast %219 : vector<1x1x32xf32> to vector<4x8x32xf32>
    %221 = arith.addf %10, %220 : vector<4x8x32xf32>
    %222 = vector.shape_cast %6 : vector<1x32xf32> to vector<1x1x32xf32>
    %223 = vector.broadcast %222 : vector<1x1x32xf32> to vector<4x8x32xf32>
    %224 = arith.addf %221, %223 : vector<4x8x32xf32>
    %cst_63 = arith.constant 0.000000e+00 : f32
    %225 = vector.broadcast %cst_63 : f32 to vector<4x8x32xf32>
    %226 = arith.maximumf %224, %225 : vector<4x8x32xf32>
    %227 = vector.shape_cast %7 : vector<1x32xf32> to vector<1x1x32xf32>
    %228 = vector.broadcast %227 : vector<1x1x32xf32> to vector<4x8x32xf32>
    %229 = arith.mulf %226, %228 : vector<4x8x32xf32>
    %cst_64 = arith.constant dense<0.000000e+00> : vector<4x8xf32>
    %230 = vector.multi_reduction <add>, %229, %cst_64 [2] : vector<4x8x32xf32> to vector<4x8xf32>
    %231 = vector.shape_cast %230 : vector<4x8xf32> to vector<4x8x1xf32>
    %cst_65 = arith.constant dense<0xFF800000> : vector<4x1xf32>
    %232 = vector.multi_reduction <maximumf>, %231, %cst_65 [1] : vector<4x8x1xf32> to vector<4x1xf32>
    %233 = vector.shape_cast %232 : vector<4x1xf32> to vector<4x1x1xf32>
    %234 = vector.broadcast %233 : vector<4x1x1xf32> to vector<4x8x1xf32>
    %235 = arith.subf %231, %234 : vector<4x8x1xf32>
    %236 = math.exp %235 : vector<4x8x1xf32>
    %cst_66 = arith.constant dense<0.000000e+00> : vector<4x1xf32>
    %237 = vector.multi_reduction <add>, %236, %cst_66 [1] : vector<4x8x1xf32> to vector<4x1xf32>
    %238 = vector.shape_cast %237 : vector<4x1xf32> to vector<4x1x1xf32>
    %239 = tpu.reciprocal %238 {approx = true} : vector<4x1x1xf32> -> vector<4x1x1xf32>
    %240 = vector.broadcast %239 : vector<4x1x1xf32> to vector<4x8x1xf32>
    %241 = arith.mulf %236, %240 : vector<4x8x1xf32>
    %242 = tpu.iota {dimensions = array<i32: 0>} : vector<4x1x1xi32>
    %c0_i32_67 = arith.constant 0 : i32
    %243 = vector.broadcast %c0_i32_67 : i32 to vector<4x1x1xi32>
    %244 = arith.cmpi ne, %242, %243 : vector<4x1x1xi32>
    %245 = arith.extui %244 : vector<4x1x1xi1> to vector<4x1x1xi32>
    %246 = arith.sitofp %245 : vector<4x1x1xi32> to vector<4x1x1xf32>
    %247 = vector.broadcast %246 : vector<4x1x1xf32> to vector<4x8x1xf32>
    %248 = arith.mulf %241, %247 : vector<4x8x1xf32>
    %249 = arith.addf %217, %248 : vector<4x8x1xf32>
    %250 = vector.extract_strided_slice %216 {offsets = [1, 0], sizes = [1, 32], strides = [1, 1]} : vector<4x32xf32> to vector<1x32xf32>
    %251 = vector.shape_cast %250 : vector<1x32xf32> to vector<1x1x32xf32>
    %252 = vector.broadcast %251 : vector<1x1x32xf32> to vector<4x8x32xf32>
    %253 = arith.addf %10, %252 : vector<4x8x32xf32>
    %254 = vector.shape_cast %6 : vector<1x32xf32> to vector<1x1x32xf32>
    %255 = vector.broadcast %254 : vector<1x1x32xf32> to vector<4x8x32xf32>
    %256 = arith.addf %253, %255 : vector<4x8x32xf32>
    %cst_68 = arith.constant 0.000000e+00 : f32
    %257 = vector.broadcast %cst_68 : f32 to vector<4x8x32xf32>
    %258 = arith.maximumf %256, %257 : vector<4x8x32xf32>
    %259 = vector.shape_cast %7 : vector<1x32xf32> to vector<1x1x32xf32>
    %260 = vector.broadcast %259 : vector<1x1x32xf32> to vector<4x8x32xf32>
    %261 = arith.mulf %258, %260 : vector<4x8x32xf32>
    %cst_69 = arith.constant dense<0.000000e+00> : vector<4x8xf32>
    %262 = vector.multi_reduction <add>, %261, %cst_69 [2] : vector<4x8x32xf32> to vector<4x8xf32>
    %263 = vector.shape_cast %262 : vector<4x8xf32> to vector<4x8x1xf32>
    %cst_70 = arith.constant dense<0xFF800000> : vector<4x1xf32>
    %264 = vector.multi_reduction <maximumf>, %263, %cst_70 [1] : vector<4x8x1xf32> to vector<4x1xf32>
    %265 = vector.shape_cast %264 : vector<4x1xf32> to vector<4x1x1xf32>
    %266 = vector.broadcast %265 : vector<4x1x1xf32> to vector<4x8x1xf32>
    %267 = arith.subf %263, %266 : vector<4x8x1xf32>
    %268 = math.exp %267 : vector<4x8x1xf32>
    %cst_71 = arith.constant dense<0.000000e+00> : vector<4x1xf32>
    %269 = vector.multi_reduction <add>, %268, %cst_71 [1] : vector<4x8x1xf32> to vector<4x1xf32>
    %270 = vector.shape_cast %269 : vector<4x1xf32> to vector<4x1x1xf32>
    %271 = tpu.reciprocal %270 {approx = true} : vector<4x1x1xf32> -> vector<4x1x1xf32>
    %272 = vector.broadcast %271 : vector<4x1x1xf32> to vector<4x8x1xf32>
    %273 = arith.mulf %268, %272 : vector<4x8x1xf32>
    %274 = tpu.iota {dimensions = array<i32: 0>} : vector<4x1x1xi32>
    %c1_i32_72 = arith.constant 1 : i32
    %275 = vector.broadcast %c1_i32_72 : i32 to vector<4x1x1xi32>
    %276 = arith.cmpi ne, %274, %275 : vector<4x1x1xi32>
    %277 = arith.extui %276 : vector<4x1x1xi1> to vector<4x1x1xi32>
    %278 = arith.sitofp %277 : vector<4x1x1xi32> to vector<4x1x1xf32>
    %279 = vector.broadcast %278 : vector<4x1x1xf32> to vector<4x8x1xf32>
    %280 = arith.mulf %273, %279 : vector<4x8x1xf32>
    %281 = arith.addf %249, %280 : vector<4x8x1xf32>
    %282 = vector.extract_strided_slice %216 {offsets = [2, 0], sizes = [1, 32], strides = [1, 1]} : vector<4x32xf32> to vector<1x32xf32>
    %283 = vector.shape_cast %282 : vector<1x32xf32> to vector<1x1x32xf32>
    %284 = vector.broadcast %283 : vector<1x1x32xf32> to vector<4x8x32xf32>
    %285 = arith.addf %10, %284 : vector<4x8x32xf32>
    %286 = vector.shape_cast %6 : vector<1x32xf32> to vector<1x1x32xf32>
    %287 = vector.broadcast %286 : vector<1x1x32xf32> to vector<4x8x32xf32>
    %288 = arith.addf %285, %287 : vector<4x8x32xf32>
    %cst_73 = arith.constant 0.000000e+00 : f32
    %289 = vector.broadcast %cst_73 : f32 to vector<4x8x32xf32>
    %290 = arith.maximumf %288, %289 : vector<4x8x32xf32>
    %291 = vector.shape_cast %7 : vector<1x32xf32> to vector<1x1x32xf32>
    %292 = vector.broadcast %291 : vector<1x1x32xf32> to vector<4x8x32xf32>
    %293 = arith.mulf %290, %292 : vector<4x8x32xf32>
    %cst_74 = arith.constant dense<0.000000e+00> : vector<4x8xf32>
    %294 = vector.multi_reduction <add>, %293, %cst_74 [2] : vector<4x8x32xf32> to vector<4x8xf32>
    %295 = vector.shape_cast %294 : vector<4x8xf32> to vector<4x8x1xf32>
    %cst_75 = arith.constant dense<0xFF800000> : vector<4x1xf32>
    %296 = vector.multi_reduction <maximumf>, %295, %cst_75 [1] : vector<4x8x1xf32> to vector<4x1xf32>
    %297 = vector.shape_cast %296 : vector<4x1xf32> to vector<4x1x1xf32>
    %298 = vector.broadcast %297 : vector<4x1x1xf32> to vector<4x8x1xf32>
    %299 = arith.subf %295, %298 : vector<4x8x1xf32>
    %300 = math.exp %299 : vector<4x8x1xf32>
    %cst_76 = arith.constant dense<0.000000e+00> : vector<4x1xf32>
    %301 = vector.multi_reduction <add>, %300, %cst_76 [1] : vector<4x8x1xf32> to vector<4x1xf32>
    %302 = vector.shape_cast %301 : vector<4x1xf32> to vector<4x1x1xf32>
    %303 = tpu.reciprocal %302 {approx = true} : vector<4x1x1xf32> -> vector<4x1x1xf32>
    %304 = vector.broadcast %303 : vector<4x1x1xf32> to vector<4x8x1xf32>
    %305 = arith.mulf %300, %304 : vector<4x8x1xf32>
    %306 = tpu.iota {dimensions = array<i32: 0>} : vector<4x1x1xi32>
    %c2_i32_77 = arith.constant 2 : i32
    %307 = vector.broadcast %c2_i32_77 : i32 to vector<4x1x1xi32>
    %308 = arith.cmpi ne, %306, %307 : vector<4x1x1xi32>
    %309 = arith.extui %308 : vector<4x1x1xi1> to vector<4x1x1xi32>
    %310 = arith.sitofp %309 : vector<4x1x1xi32> to vector<4x1x1xf32>
    %311 = vector.broadcast %310 : vector<4x1x1xf32> to vector<4x8x1xf32>
    %312 = arith.mulf %305, %311 : vector<4x8x1xf32>
    %313 = arith.addf %281, %312 : vector<4x8x1xf32>
    %314 = vector.extract_strided_slice %216 {offsets = [3, 0], sizes = [1, 32], strides = [1, 1]} : vector<4x32xf32> to vector<1x32xf32>
    %315 = vector.shape_cast %314 : vector<1x32xf32> to vector<1x1x32xf32>
    %316 = vector.broadcast %315 : vector<1x1x32xf32> to vector<4x8x32xf32>
    %317 = arith.addf %10, %316 : vector<4x8x32xf32>
    %318 = vector.shape_cast %6 : vector<1x32xf32> to vector<1x1x32xf32>
    %319 = vector.broadcast %318 : vector<1x1x32xf32> to vector<4x8x32xf32>
    %320 = arith.addf %317, %319 : vector<4x8x32xf32>
    %cst_78 = arith.constant 0.000000e+00 : f32
    %321 = vector.broadcast %cst_78 : f32 to vector<4x8x32xf32>
    %322 = arith.maximumf %320, %321 : vector<4x8x32xf32>
    %323 = vector.shape_cast %7 : vector<1x32xf32> to vector<1x1x32xf32>
    %324 = vector.broadcast %323 : vector<1x1x32xf32> to vector<4x8x32xf32>
    %325 = arith.mulf %322, %324 : vector<4x8x32xf32>
    %cst_79 = arith.constant dense<0.000000e+00> : vector<4x8xf32>
    %326 = vector.multi_reduction <add>, %325, %cst_79 [2] : vector<4x8x32xf32> to vector<4x8xf32>
    %327 = vector.shape_cast %326 : vector<4x8xf32> to vector<4x8x1xf32>
    %cst_80 = arith.constant dense<0xFF800000> : vector<4x1xf32>
    %328 = vector.multi_reduction <maximumf>, %327, %cst_80 [1] : vector<4x8x1xf32> to vector<4x1xf32>
    %329 = vector.shape_cast %328 : vector<4x1xf32> to vector<4x1x1xf32>
    %330 = vector.broadcast %329 : vector<4x1x1xf32> to vector<4x8x1xf32>
    %331 = arith.subf %327, %330 : vector<4x8x1xf32>
    %332 = math.exp %331 : vector<4x8x1xf32>
    %cst_81 = arith.constant dense<0.000000e+00> : vector<4x1xf32>
    %333 = vector.multi_reduction <add>, %332, %cst_81 [1] : vector<4x8x1xf32> to vector<4x1xf32>
    %334 = vector.shape_cast %333 : vector<4x1xf32> to vector<4x1x1xf32>
    %335 = tpu.reciprocal %334 {approx = true} : vector<4x1x1xf32> -> vector<4x1x1xf32>
    %336 = vector.broadcast %335 : vector<4x1x1xf32> to vector<4x8x1xf32>
    %337 = arith.mulf %332, %336 : vector<4x8x1xf32>
    %338 = tpu.iota {dimensions = array<i32: 0>} : vector<4x1x1xi32>
    %c3_i32_82 = arith.constant 3 : i32
    %339 = vector.broadcast %c3_i32_82 : i32 to vector<4x1x1xi32>
    %340 = arith.cmpi ne, %338, %339 : vector<4x1x1xi32>
    %341 = arith.extui %340 : vector<4x1x1xi1> to vector<4x1x1xi32>
    %342 = arith.sitofp %341 : vector<4x1x1xi32> to vector<4x1x1xf32>
    %343 = vector.broadcast %342 : vector<4x1x1xf32> to vector<4x8x1xf32>
    %344 = arith.mulf %337, %343 : vector<4x8x1xf32>
    %345 = arith.addf %313, %344 : vector<4x8x1xf32>
    %346 = vector.broadcast %345 : vector<4x8x1xf32> to vector<4x8x32xf32>
    %347 = arith.mulf %1, %346 : vector<4x8x32xf32>
    %348 = vector.broadcast %345 : vector<4x8x1xf32> to vector<4x8x32xf32>
    %349 = arith.mulf %10, %348 : vector<4x8x32xf32>
    %cst_83 = arith.constant dense<0.000000e+00> : vector<32xf32>
    %350 = vector.multi_reduction <add>, %215, %cst_83 [0] : vector<4x32xf32> to vector<32xf32>
    %351 = vector.shape_cast %350 : vector<32xf32> to vector<1x32xf32>
    %352 = vector.broadcast %351 : vector<1x32xf32> to vector<4x32xf32>
    %353 = arith.subf %352, %215 : vector<4x32xf32>
    %cst_84 = arith.constant dense<0.000000e+00> : vector<4x32xf32>
    %354 = tpu.matmul %353, %4, %cst_84 {dimension_numbers = #tpu.dot_dimension_numbers<[1], [0], [0], [1], [0, 0, 1, 1], [], []>} : vector<4x32xf32>, vector<32x32xf32>, vector<4x32xf32> -> vector<4x32xf32>
    %355 = vector.shape_cast %18 : vector<4x32xf32> to vector<4x1x32xf32>
    %356 = vector.broadcast %355 : vector<4x1x32xf32> to vector<4x8x32xf32>
    %357 = arith.addf %349, %356 : vector<4x8x32xf32>
    %358 = vector.shape_cast %6 : vector<1x32xf32> to vector<1x1x32xf32>
    %359 = vector.broadcast %358 : vector<1x1x32xf32> to vector<4x8x32xf32>
    %360 = arith.addf %357, %359 : vector<4x8x32xf32>
    %cst_85 = arith.constant 0.000000e+00 : f32
    %361 = vector.broadcast %cst_85 : f32 to vector<4x8x32xf32>
    %362 = arith.maximumf %360, %361 : vector<4x8x32xf32>
    %363 = vector.shape_cast %7 : vector<1x32xf32> to vector<1x1x32xf32>
    %364 = vector.broadcast %363 : vector<1x1x32xf32> to vector<4x8x32xf32>
    %365 = arith.mulf %362, %364 : vector<4x8x32xf32>
    %cst_86 = arith.constant dense<0.000000e+00> : vector<4x8xf32>
    %366 = vector.multi_reduction <add>, %365, %cst_86 [2] : vector<4x8x32xf32> to vector<4x8xf32>
    %367 = vector.shape_cast %366 : vector<4x8xf32> to vector<4x8x1xf32>
    %368 = arith.addf %354, %18 : vector<4x32xf32>
    %369 = vector.broadcast %6 : vector<1x32xf32> to vector<4x32xf32>
    %370 = arith.addf %368, %369 : vector<4x32xf32>
    %cst_87 = arith.constant 0.000000e+00 : f32
    %371 = vector.broadcast %cst_87 : f32 to vector<4x32xf32>
    %372 = arith.maximumf %370, %371 : vector<4x32xf32>
    %373 = vector.broadcast %7 : vector<1x32xf32> to vector<4x32xf32>
    %374 = arith.mulf %372, %373 : vector<4x32xf32>
    %cst_88 = arith.constant dense<0.000000e+00> : vector<4xf32>
    %375 = vector.multi_reduction <add>, %374, %cst_88 [1] : vector<4x32xf32> to vector<4xf32>
    %376 = vector.shape_cast %375 : vector<4xf32> to vector<4x1xf32>
    %cst_89 = arith.constant dense<0xFF800000> : vector<4x1xf32>
    %377 = vector.multi_reduction <maximumf>, %367, %cst_89 [1] : vector<4x8x1xf32> to vector<4x1xf32>
    %378 = arith.maximumf %377, %376 : vector<4x1xf32>
    %379 = vector.shape_cast %378 : vector<4x1xf32> to vector<4x1x1xf32>
    %380 = vector.broadcast %379 : vector<4x1x1xf32> to vector<4x8x1xf32>
    %381 = arith.subf %367, %380 : vector<4x8x1xf32>
    %382 = math.exp %381 : vector<4x8x1xf32>
    %383 = arith.subf %376, %378 : vector<4x1xf32>
    %384 = math.exp %383 : vector<4x1xf32>
    %cst_90 = arith.constant dense<0.000000e+00> : vector<4x1xf32>
    %385 = vector.multi_reduction <add>, %382, %cst_90 [1] : vector<4x8x1xf32> to vector<4x1xf32>
    %386 = arith.addf %385, %384 : vector<4x1xf32>
    %387 = tpu.reciprocal %386 {approx = true} : vector<4x1xf32> -> vector<4x1xf32>
    %388 = vector.broadcast %382 : vector<4x8x1xf32> to vector<4x8x32xf32>
    %389 = arith.mulf %388, %347 : vector<4x8x32xf32>
    %cst_91 = arith.constant dense<0.000000e+00> : vector<4x32xf32>
    %390 = vector.multi_reduction <add>, %389, %cst_91 [1] : vector<4x8x32xf32> to vector<4x32xf32>
    %391 = vector.broadcast %384 : vector<4x1xf32> to vector<4x32xf32>
    %392 = arith.mulf %391, %353 : vector<4x32xf32>
    %393 = arith.addf %390, %392 : vector<4x32xf32>
    %394 = vector.broadcast %387 : vector<4x1xf32> to vector<4x32xf32>
    %395 = arith.mulf %393, %394 : vector<4x32xf32>
    %c0_92 = arith.constant 0 : index
    %c0_93 = arith.constant 0 : index
    %396 = vector.load %arg11[%c0_92, %c0_93] : memref<32x32xf32, #tpu.memory_space<vmem>>, vector<32x32xf32>
    %cst_94 = arith.constant dense<0.000000e+00> : vector<4x32xf32>
    %397 = tpu.matmul %395, %396, %cst_94 {dimension_numbers = #tpu.dot_dimension_numbers<[1], [0], [0], [1], [0, 0, 1, 1], [], []>} : vector<4x32xf32>, vector<32x32xf32>, vector<4x32xf32> -> vector<4x32xf32>
    %c0_95 = arith.constant 0 : index
    %c0_96 = arith.constant 0 : index
    %398 = vector.load %arg12[%c0_95, %c0_96] : memref<1x32xf32, #tpu.memory_space<vmem>>, vector<1x32xf32>
    %399 = vector.broadcast %398 : vector<1x32xf32> to vector<4x32xf32>
    %400 = arith.addf %397, %399 : vector<4x32xf32>
    %cst_97 = arith.constant 0.000000e+00 : f32
    %401 = vector.broadcast %cst_97 : f32 to vector<4x32xf32>
    %402 = arith.maximumf %400, %401 : vector<4x32xf32>
    %403 = arith.mulf %25, %402 : vector<4x32xf32>
    %404 = arith.addf %215, %403 : vector<4x32xf32>
    %cst_98 = arith.constant dense<0.000000e+00> : vector<4x32xf32>
    %405 = tpu.matmul %404, %5, %cst_98 {dimension_numbers = #tpu.dot_dimension_numbers<[1], [0], [0], [1], [0, 0, 1, 1], [], []>} : vector<4x32xf32>, vector<32x32xf32>, vector<4x32xf32> -> vector<4x32xf32>
    %cst_99 = arith.constant 0.000000e+00 : f32
    %406 = vector.broadcast %cst_99 : f32 to vector<4x8x1xf32>
    %407 = vector.extract_strided_slice %405 {offsets = [0, 0], sizes = [1, 32], strides = [1, 1]} : vector<4x32xf32> to vector<1x32xf32>
    %408 = vector.shape_cast %407 : vector<1x32xf32> to vector<1x1x32xf32>
    %409 = vector.broadcast %408 : vector<1x1x32xf32> to vector<4x8x32xf32>
    %410 = arith.addf %10, %409 : vector<4x8x32xf32>
    %411 = vector.shape_cast %6 : vector<1x32xf32> to vector<1x1x32xf32>
    %412 = vector.broadcast %411 : vector<1x1x32xf32> to vector<4x8x32xf32>
    %413 = arith.addf %410, %412 : vector<4x8x32xf32>
    %cst_100 = arith.constant 0.000000e+00 : f32
    %414 = vector.broadcast %cst_100 : f32 to vector<4x8x32xf32>
    %415 = arith.maximumf %413, %414 : vector<4x8x32xf32>
    %416 = vector.shape_cast %7 : vector<1x32xf32> to vector<1x1x32xf32>
    %417 = vector.broadcast %416 : vector<1x1x32xf32> to vector<4x8x32xf32>
    %418 = arith.mulf %415, %417 : vector<4x8x32xf32>
    %cst_101 = arith.constant dense<0.000000e+00> : vector<4x8xf32>
    %419 = vector.multi_reduction <add>, %418, %cst_101 [2] : vector<4x8x32xf32> to vector<4x8xf32>
    %420 = vector.shape_cast %419 : vector<4x8xf32> to vector<4x8x1xf32>
    %cst_102 = arith.constant dense<0xFF800000> : vector<4x1xf32>
    %421 = vector.multi_reduction <maximumf>, %420, %cst_102 [1] : vector<4x8x1xf32> to vector<4x1xf32>
    %422 = vector.shape_cast %421 : vector<4x1xf32> to vector<4x1x1xf32>
    %423 = vector.broadcast %422 : vector<4x1x1xf32> to vector<4x8x1xf32>
    %424 = arith.subf %420, %423 : vector<4x8x1xf32>
    %425 = math.exp %424 : vector<4x8x1xf32>
    %cst_103 = arith.constant dense<0.000000e+00> : vector<4x1xf32>
    %426 = vector.multi_reduction <add>, %425, %cst_103 [1] : vector<4x8x1xf32> to vector<4x1xf32>
    %427 = vector.shape_cast %426 : vector<4x1xf32> to vector<4x1x1xf32>
    %428 = tpu.reciprocal %427 {approx = true} : vector<4x1x1xf32> -> vector<4x1x1xf32>
    %429 = vector.broadcast %428 : vector<4x1x1xf32> to vector<4x8x1xf32>
    %430 = arith.mulf %425, %429 : vector<4x8x1xf32>
    %431 = tpu.iota {dimensions = array<i32: 0>} : vector<4x1x1xi32>
    %c0_i32_104 = arith.constant 0 : i32
    %432 = vector.broadcast %c0_i32_104 : i32 to vector<4x1x1xi32>
    %433 = arith.cmpi ne, %431, %432 : vector<4x1x1xi32>
    %434 = arith.extui %433 : vector<4x1x1xi1> to vector<4x1x1xi32>
    %435 = arith.sitofp %434 : vector<4x1x1xi32> to vector<4x1x1xf32>
    %436 = vector.broadcast %435 : vector<4x1x1xf32> to vector<4x8x1xf32>
    %437 = arith.mulf %430, %436 : vector<4x8x1xf32>
    %438 = arith.addf %406, %437 : vector<4x8x1xf32>
    %439 = vector.extract_strided_slice %405 {offsets = [1, 0], sizes = [1, 32], strides = [1, 1]} : vector<4x32xf32> to vector<1x32xf32>
    %440 = vector.shape_cast %439 : vector<1x32xf32> to vector<1x1x32xf32>
    %441 = vector.broadcast %440 : vector<1x1x32xf32> to vector<4x8x32xf32>
    %442 = arith.addf %10, %441 : vector<4x8x32xf32>
    %443 = vector.shape_cast %6 : vector<1x32xf32> to vector<1x1x32xf32>
    %444 = vector.broadcast %443 : vector<1x1x32xf32> to vector<4x8x32xf32>
    %445 = arith.addf %442, %444 : vector<4x8x32xf32>
    %cst_105 = arith.constant 0.000000e+00 : f32
    %446 = vector.broadcast %cst_105 : f32 to vector<4x8x32xf32>
    %447 = arith.maximumf %445, %446 : vector<4x8x32xf32>
    %448 = vector.shape_cast %7 : vector<1x32xf32> to vector<1x1x32xf32>
    %449 = vector.broadcast %448 : vector<1x1x32xf32> to vector<4x8x32xf32>
    %450 = arith.mulf %447, %449 : vector<4x8x32xf32>
    %cst_106 = arith.constant dense<0.000000e+00> : vector<4x8xf32>
    %451 = vector.multi_reduction <add>, %450, %cst_106 [2] : vector<4x8x32xf32> to vector<4x8xf32>
    %452 = vector.shape_cast %451 : vector<4x8xf32> to vector<4x8x1xf32>
    %cst_107 = arith.constant dense<0xFF800000> : vector<4x1xf32>
    %453 = vector.multi_reduction <maximumf>, %452, %cst_107 [1] : vector<4x8x1xf32> to vector<4x1xf32>
    %454 = vector.shape_cast %453 : vector<4x1xf32> to vector<4x1x1xf32>
    %455 = vector.broadcast %454 : vector<4x1x1xf32> to vector<4x8x1xf32>
    %456 = arith.subf %452, %455 : vector<4x8x1xf32>
    %457 = math.exp %456 : vector<4x8x1xf32>
    %cst_108 = arith.constant dense<0.000000e+00> : vector<4x1xf32>
    %458 = vector.multi_reduction <add>, %457, %cst_108 [1] : vector<4x8x1xf32> to vector<4x1xf32>
    %459 = vector.shape_cast %458 : vector<4x1xf32> to vector<4x1x1xf32>
    %460 = tpu.reciprocal %459 {approx = true} : vector<4x1x1xf32> -> vector<4x1x1xf32>
    %461 = vector.broadcast %460 : vector<4x1x1xf32> to vector<4x8x1xf32>
    %462 = arith.mulf %457, %461 : vector<4x8x1xf32>
    %463 = tpu.iota {dimensions = array<i32: 0>} : vector<4x1x1xi32>
    %c1_i32_109 = arith.constant 1 : i32
    %464 = vector.broadcast %c1_i32_109 : i32 to vector<4x1x1xi32>
    %465 = arith.cmpi ne, %463, %464 : vector<4x1x1xi32>
    %466 = arith.extui %465 : vector<4x1x1xi1> to vector<4x1x1xi32>
    %467 = arith.sitofp %466 : vector<4x1x1xi32> to vector<4x1x1xf32>
    %468 = vector.broadcast %467 : vector<4x1x1xf32> to vector<4x8x1xf32>
    %469 = arith.mulf %462, %468 : vector<4x8x1xf32>
    %470 = arith.addf %438, %469 : vector<4x8x1xf32>
    %471 = vector.extract_strided_slice %405 {offsets = [2, 0], sizes = [1, 32], strides = [1, 1]} : vector<4x32xf32> to vector<1x32xf32>
    %472 = vector.shape_cast %471 : vector<1x32xf32> to vector<1x1x32xf32>
    %473 = vector.broadcast %472 : vector<1x1x32xf32> to vector<4x8x32xf32>
    %474 = arith.addf %10, %473 : vector<4x8x32xf32>
    %475 = vector.shape_cast %6 : vector<1x32xf32> to vector<1x1x32xf32>
    %476 = vector.broadcast %475 : vector<1x1x32xf32> to vector<4x8x32xf32>
    %477 = arith.addf %474, %476 : vector<4x8x32xf32>
    %cst_110 = arith.constant 0.000000e+00 : f32
    %478 = vector.broadcast %cst_110 : f32 to vector<4x8x32xf32>
    %479 = arith.maximumf %477, %478 : vector<4x8x32xf32>
    %480 = vector.shape_cast %7 : vector<1x32xf32> to vector<1x1x32xf32>
    %481 = vector.broadcast %480 : vector<1x1x32xf32> to vector<4x8x32xf32>
    %482 = arith.mulf %479, %481 : vector<4x8x32xf32>
    %cst_111 = arith.constant dense<0.000000e+00> : vector<4x8xf32>
    %483 = vector.multi_reduction <add>, %482, %cst_111 [2] : vector<4x8x32xf32> to vector<4x8xf32>
    %484 = vector.shape_cast %483 : vector<4x8xf32> to vector<4x8x1xf32>
    %cst_112 = arith.constant dense<0xFF800000> : vector<4x1xf32>
    %485 = vector.multi_reduction <maximumf>, %484, %cst_112 [1] : vector<4x8x1xf32> to vector<4x1xf32>
    %486 = vector.shape_cast %485 : vector<4x1xf32> to vector<4x1x1xf32>
    %487 = vector.broadcast %486 : vector<4x1x1xf32> to vector<4x8x1xf32>
    %488 = arith.subf %484, %487 : vector<4x8x1xf32>
    %489 = math.exp %488 : vector<4x8x1xf32>
    %cst_113 = arith.constant dense<0.000000e+00> : vector<4x1xf32>
    %490 = vector.multi_reduction <add>, %489, %cst_113 [1] : vector<4x8x1xf32> to vector<4x1xf32>
    %491 = vector.shape_cast %490 : vector<4x1xf32> to vector<4x1x1xf32>
    %492 = tpu.reciprocal %491 {approx = true} : vector<4x1x1xf32> -> vector<4x1x1xf32>
    %493 = vector.broadcast %492 : vector<4x1x1xf32> to vector<4x8x1xf32>
    %494 = arith.mulf %489, %493 : vector<4x8x1xf32>
    %495 = tpu.iota {dimensions = array<i32: 0>} : vector<4x1x1xi32>
    %c2_i32_114 = arith.constant 2 : i32
    %496 = vector.broadcast %c2_i32_114 : i32 to vector<4x1x1xi32>
    %497 = arith.cmpi ne, %495, %496 : vector<4x1x1xi32>
    %498 = arith.extui %497 : vector<4x1x1xi1> to vector<4x1x1xi32>
    %499 = arith.sitofp %498 : vector<4x1x1xi32> to vector<4x1x1xf32>
    %500 = vector.broadcast %499 : vector<4x1x1xf32> to vector<4x8x1xf32>
    %501 = arith.mulf %494, %500 : vector<4x8x1xf32>
    %502 = arith.addf %470, %501 : vector<4x8x1xf32>
    %503 = vector.extract_strided_slice %405 {offsets = [3, 0], sizes = [1, 32], strides = [1, 1]} : vector<4x32xf32> to vector<1x32xf32>
    %504 = vector.shape_cast %503 : vector<1x32xf32> to vector<1x1x32xf32>
    %505 = vector.broadcast %504 : vector<1x1x32xf32> to vector<4x8x32xf32>
    %506 = arith.addf %10, %505 : vector<4x8x32xf32>
    %507 = vector.shape_cast %6 : vector<1x32xf32> to vector<1x1x32xf32>
    %508 = vector.broadcast %507 : vector<1x1x32xf32> to vector<4x8x32xf32>
    %509 = arith.addf %506, %508 : vector<4x8x32xf32>
    %cst_115 = arith.constant 0.000000e+00 : f32
    %510 = vector.broadcast %cst_115 : f32 to vector<4x8x32xf32>
    %511 = arith.maximumf %509, %510 : vector<4x8x32xf32>
    %512 = vector.shape_cast %7 : vector<1x32xf32> to vector<1x1x32xf32>
    %513 = vector.broadcast %512 : vector<1x1x32xf32> to vector<4x8x32xf32>
    %514 = arith.mulf %511, %513 : vector<4x8x32xf32>
    %cst_116 = arith.constant dense<0.000000e+00> : vector<4x8xf32>
    %515 = vector.multi_reduction <add>, %514, %cst_116 [2] : vector<4x8x32xf32> to vector<4x8xf32>
    %516 = vector.shape_cast %515 : vector<4x8xf32> to vector<4x8x1xf32>
    %cst_117 = arith.constant dense<0xFF800000> : vector<4x1xf32>
    %517 = vector.multi_reduction <maximumf>, %516, %cst_117 [1] : vector<4x8x1xf32> to vector<4x1xf32>
    %518 = vector.shape_cast %517 : vector<4x1xf32> to vector<4x1x1xf32>
    %519 = vector.broadcast %518 : vector<4x1x1xf32> to vector<4x8x1xf32>
    %520 = arith.subf %516, %519 : vector<4x8x1xf32>
    %521 = math.exp %520 : vector<4x8x1xf32>
    %cst_118 = arith.constant dense<0.000000e+00> : vector<4x1xf32>
    %522 = vector.multi_reduction <add>, %521, %cst_118 [1] : vector<4x8x1xf32> to vector<4x1xf32>
    %523 = vector.shape_cast %522 : vector<4x1xf32> to vector<4x1x1xf32>
    %524 = tpu.reciprocal %523 {approx = true} : vector<4x1x1xf32> -> vector<4x1x1xf32>
    %525 = vector.broadcast %524 : vector<4x1x1xf32> to vector<4x8x1xf32>
    %526 = arith.mulf %521, %525 : vector<4x8x1xf32>
    %527 = tpu.iota {dimensions = array<i32: 0>} : vector<4x1x1xi32>
    %c3_i32_119 = arith.constant 3 : i32
    %528 = vector.broadcast %c3_i32_119 : i32 to vector<4x1x1xi32>
    %529 = arith.cmpi ne, %527, %528 : vector<4x1x1xi32>
    %530 = arith.extui %529 : vector<4x1x1xi1> to vector<4x1x1xi32>
    %531 = arith.sitofp %530 : vector<4x1x1xi32> to vector<4x1x1xf32>
    %532 = vector.broadcast %531 : vector<4x1x1xf32> to vector<4x8x1xf32>
    %533 = arith.mulf %526, %532 : vector<4x8x1xf32>
    %534 = arith.addf %502, %533 : vector<4x8x1xf32>
    %535 = vector.broadcast %534 : vector<4x8x1xf32> to vector<4x8x32xf32>
    %536 = arith.mulf %1, %535 : vector<4x8x32xf32>
    %537 = vector.broadcast %534 : vector<4x8x1xf32> to vector<4x8x32xf32>
    %538 = arith.mulf %10, %537 : vector<4x8x32xf32>
    %cst_120 = arith.constant dense<0.000000e+00> : vector<32xf32>
    %539 = vector.multi_reduction <add>, %404, %cst_120 [0] : vector<4x32xf32> to vector<32xf32>
    %540 = vector.shape_cast %539 : vector<32xf32> to vector<1x32xf32>
    %541 = vector.broadcast %540 : vector<1x32xf32> to vector<4x32xf32>
    %542 = arith.subf %541, %404 : vector<4x32xf32>
    %cst_121 = arith.constant dense<0.000000e+00> : vector<4x32xf32>
    %543 = tpu.matmul %542, %4, %cst_121 {dimension_numbers = #tpu.dot_dimension_numbers<[1], [0], [0], [1], [0, 0, 1, 1], [], []>} : vector<4x32xf32>, vector<32x32xf32>, vector<4x32xf32> -> vector<4x32xf32>
    %544 = vector.shape_cast %18 : vector<4x32xf32> to vector<4x1x32xf32>
    %545 = vector.broadcast %544 : vector<4x1x32xf32> to vector<4x8x32xf32>
    %546 = arith.addf %538, %545 : vector<4x8x32xf32>
    %547 = vector.shape_cast %6 : vector<1x32xf32> to vector<1x1x32xf32>
    %548 = vector.broadcast %547 : vector<1x1x32xf32> to vector<4x8x32xf32>
    %549 = arith.addf %546, %548 : vector<4x8x32xf32>
    %cst_122 = arith.constant 0.000000e+00 : f32
    %550 = vector.broadcast %cst_122 : f32 to vector<4x8x32xf32>
    %551 = arith.maximumf %549, %550 : vector<4x8x32xf32>
    %552 = vector.shape_cast %7 : vector<1x32xf32> to vector<1x1x32xf32>
    %553 = vector.broadcast %552 : vector<1x1x32xf32> to vector<4x8x32xf32>
    %554 = arith.mulf %551, %553 : vector<4x8x32xf32>
    %cst_123 = arith.constant dense<0.000000e+00> : vector<4x8xf32>
    %555 = vector.multi_reduction <add>, %554, %cst_123 [2] : vector<4x8x32xf32> to vector<4x8xf32>
    %556 = vector.shape_cast %555 : vector<4x8xf32> to vector<4x8x1xf32>
    %557 = arith.addf %543, %18 : vector<4x32xf32>
    %558 = vector.broadcast %6 : vector<1x32xf32> to vector<4x32xf32>
    %559 = arith.addf %557, %558 : vector<4x32xf32>
    %cst_124 = arith.constant 0.000000e+00 : f32
    %560 = vector.broadcast %cst_124 : f32 to vector<4x32xf32>
    %561 = arith.maximumf %559, %560 : vector<4x32xf32>
    %562 = vector.broadcast %7 : vector<1x32xf32> to vector<4x32xf32>
    %563 = arith.mulf %561, %562 : vector<4x32xf32>
    %cst_125 = arith.constant dense<0.000000e+00> : vector<4xf32>
    %564 = vector.multi_reduction <add>, %563, %cst_125 [1] : vector<4x32xf32> to vector<4xf32>
    %565 = vector.shape_cast %564 : vector<4xf32> to vector<4x1xf32>
    %cst_126 = arith.constant dense<0xFF800000> : vector<4x1xf32>
    %566 = vector.multi_reduction <maximumf>, %556, %cst_126 [1] : vector<4x8x1xf32> to vector<4x1xf32>
    %567 = arith.maximumf %566, %565 : vector<4x1xf32>
    %568 = vector.shape_cast %567 : vector<4x1xf32> to vector<4x1x1xf32>
    %569 = vector.broadcast %568 : vector<4x1x1xf32> to vector<4x8x1xf32>
    %570 = arith.subf %556, %569 : vector<4x8x1xf32>
    %571 = math.exp %570 : vector<4x8x1xf32>
    %572 = arith.subf %565, %567 : vector<4x1xf32>
    %573 = math.exp %572 : vector<4x1xf32>
    %cst_127 = arith.constant dense<0.000000e+00> : vector<4x1xf32>
    %574 = vector.multi_reduction <add>, %571, %cst_127 [1] : vector<4x8x1xf32> to vector<4x1xf32>
    %575 = arith.addf %574, %573 : vector<4x1xf32>
    %576 = tpu.reciprocal %575 {approx = true} : vector<4x1xf32> -> vector<4x1xf32>
    %577 = vector.broadcast %571 : vector<4x8x1xf32> to vector<4x8x32xf32>
    %578 = arith.mulf %577, %536 : vector<4x8x32xf32>
    %cst_128 = arith.constant dense<0.000000e+00> : vector<4x32xf32>
    %579 = vector.multi_reduction <add>, %578, %cst_128 [1] : vector<4x8x32xf32> to vector<4x32xf32>
    %580 = vector.broadcast %573 : vector<4x1xf32> to vector<4x32xf32>
    %581 = arith.mulf %580, %542 : vector<4x32xf32>
    %582 = arith.addf %579, %581 : vector<4x32xf32>
    %583 = vector.broadcast %576 : vector<4x1xf32> to vector<4x32xf32>
    %584 = arith.mulf %582, %583 : vector<4x32xf32>
    %c0_129 = arith.constant 0 : index
    %c0_130 = arith.constant 0 : index
    %585 = vector.load %arg11[%c0_129, %c0_130] : memref<32x32xf32, #tpu.memory_space<vmem>>, vector<32x32xf32>
    %cst_131 = arith.constant dense<0.000000e+00> : vector<4x32xf32>
    %586 = tpu.matmul %584, %585, %cst_131 {dimension_numbers = #tpu.dot_dimension_numbers<[1], [0], [0], [1], [0, 0, 1, 1], [], []>} : vector<4x32xf32>, vector<32x32xf32>, vector<4x32xf32> -> vector<4x32xf32>
    %c0_132 = arith.constant 0 : index
    %c0_133 = arith.constant 0 : index
    %587 = vector.load %arg12[%c0_132, %c0_133] : memref<1x32xf32, #tpu.memory_space<vmem>>, vector<1x32xf32>
    %588 = vector.broadcast %587 : vector<1x32xf32> to vector<4x32xf32>
    %589 = arith.addf %586, %588 : vector<4x32xf32>
    %cst_134 = arith.constant 0.000000e+00 : f32
    %590 = vector.broadcast %cst_134 : f32 to vector<4x32xf32>
    %591 = arith.maximumf %589, %590 : vector<4x32xf32>
    %592 = arith.mulf %25, %591 : vector<4x32xf32>
    %593 = arith.addf %404, %592 : vector<4x32xf32>
    %c0_135 = arith.constant 0 : index
    %c0_136 = arith.constant 0 : index
    %594 = vector.load %arg13[%c0_135, %c0_136] : memref<32x64xf32, #tpu.memory_space<vmem>>, vector<32x64xf32>
    %cst_137 = arith.constant dense<0.000000e+00> : vector<4x64xf32>
    %595 = tpu.matmul %593, %594, %cst_137 {dimension_numbers = #tpu.dot_dimension_numbers<[1], [0], [0], [1], [0, 0, 1, 1], [], []>} : vector<4x32xf32>, vector<32x64xf32>, vector<4x64xf32> -> vector<4x64xf32>
    %c0_138 = arith.constant 0 : index
    %c0_139 = arith.constant 0 : index
    %596 = vector.load %arg14[%c0_138, %c0_139] : memref<1x64xf32, #tpu.memory_space<vmem>>, vector<1x64xf32>
    %597 = vector.broadcast %596 : vector<1x64xf32> to vector<4x64xf32>
    %598 = arith.addf %595, %597 : vector<4x64xf32>
    %cst_140 = arith.constant 0.000000e+00 : f32
    %599 = vector.broadcast %cst_140 : f32 to vector<4x64xf32>
    %600 = arith.maximumf %598, %599 : vector<4x64xf32>
    %c0_141 = arith.constant 0 : index
    %c0_142 = arith.constant 0 : index
    %601 = vector.load %arg15[%c0_141, %c0_142] : memref<64x64xf32, #tpu.memory_space<vmem>>, vector<64x64xf32>
    %cst_143 = arith.constant dense<0.000000e+00> : vector<4x64xf32>
    %602 = tpu.matmul %600, %601, %cst_143 {dimension_numbers = #tpu.dot_dimension_numbers<[1], [0], [0], [1], [0, 0, 1, 1], [], []>} : vector<4x64xf32>, vector<64x64xf32>, vector<4x64xf32> -> vector<4x64xf32>
    %c0_144 = arith.constant 0 : index
    %c0_145 = arith.constant 0 : index
    %603 = vector.load %arg16[%c0_144, %c0_145] : memref<1x64xf32, #tpu.memory_space<vmem>>, vector<1x64xf32>
    %604 = vector.broadcast %603 : vector<1x64xf32> to vector<4x64xf32>
    %605 = arith.addf %602, %604 : vector<4x64xf32>
    %c0_146 = arith.constant 0 : index
    %c0_147 = arith.constant 0 : index
    %c0_148 = arith.constant 0 : index
    %606 = vector.load %arg17[%c0_146, %c0_147, %c0_148] : memref<1x4x64xf32, #tpu.memory_space<vmem>>, vector<1x4x64xf32>
    %607 = vector.shape_cast %606 : vector<1x4x64xf32> to vector<4x64xf32>
    %608 = vector.shape_cast %605 : vector<4x64xf32> to vector<1x4x64xf32>
    tpu.vector_store %arg17[%c0_146, %c0_147, %c0_148], %608 {strides = array<i32>} : memref<1x4x64xf32, #tpu.memory_space<vmem>>, vector<1x4x64xf32>,
    return
  }
  func.func @transform_0(%arg0: i32) -> (i32, i32, i32, i32) {
    %c0_i32 = arith.constant 0 : i32
    %c0_i32_0 = arith.constant 0 : i32
    %c0_i32_1 = arith.constant 0 : i32
    %c0_i32_2 = arith.constant 0 : i32
    return %arg0, %c0_i32, %c0_i32_0, %c0_i32_1 : i32, i32, i32, i32
  }
  func.func @transform_1(%arg0: i32) -> (i32, i32, i32) {
    %c0_i32 = arith.constant 0 : i32
    %c0_i32_0 = arith.constant 0 : i32
    %c0_i32_1 = arith.constant 0 : i32
    return %arg0, %c0_i32, %c0_i32_0 : i32, i32, i32
  }
  func.func @transform_2(%arg0: i32) -> (i32, i32) {
    %c0_i32 = arith.constant 0 : i32
    %c0_i32_0 = arith.constant 0 : i32
    %c0_i32_1 = arith.constant 0 : i32
    return %c0_i32, %c0_i32_0 : i32, i32
  }
  func.func @transform_3(%arg0: i32) -> (i32, i32) {
    %c0_i32 = arith.constant 0 : i32
    %c0_i32_0 = arith.constant 0 : i32
    %c0_i32_1 = arith.constant 0 : i32
    return %c0_i32, %c0_i32_0 : i32, i32
  }
  func.func @transform_4(%arg0: i32) -> (i32, i32) {
    %c0_i32 = arith.constant 0 : i32
    %c0_i32_0 = arith.constant 0 : i32
    %c0_i32_1 = arith.constant 0 : i32
    return %c0_i32, %c0_i32_0 : i32, i32
  }
  func.func @transform_5(%arg0: i32) -> (i32, i32) {
    %c0_i32 = arith.constant 0 : i32
    %c0_i32_0 = arith.constant 0 : i32
    %c0_i32_1 = arith.constant 0 : i32
    return %c0_i32, %c0_i32_0 : i32, i32
  }
  func.func @transform_6(%arg0: i32) -> (i32, i32) {
    %c0_i32 = arith.constant 0 : i32
    %c0_i32_0 = arith.constant 0 : i32
    %c0_i32_1 = arith.constant 0 : i32
    return %c0_i32, %c0_i32_0 : i32, i32
  }
  func.func @transform_7(%arg0: i32) -> (i32, i32) {
    %c0_i32 = arith.constant 0 : i32
    %c0_i32_0 = arith.constant 0 : i32
    %c0_i32_1 = arith.constant 0 : i32
    return %c0_i32, %c0_i32_0 : i32, i32
  }
  func.func @transform_8(%arg0: i32) -> (i32, i32) {
    %c0_i32 = arith.constant 0 : i32
    %c0_i32_0 = arith.constant 0 : i32
    %c0_i32_1 = arith.constant 0 : i32
    return %c0_i32, %c0_i32_0 : i32, i32
  }
  func.func @transform_9(%arg0: i32) -> (i32, i32) {
    %c0_i32 = arith.constant 0 : i32
    %c0_i32_0 = arith.constant 0 : i32
    %c0_i32_1 = arith.constant 0 : i32
    return %c0_i32, %c0_i32_0 : i32, i32
  }
  func.func @transform_10(%arg0: i32) -> (i32, i32) {
    %c0_i32 = arith.constant 0 : i32
    %c0_i32_0 = arith.constant 0 : i32
    %c0_i32_1 = arith.constant 0 : i32
    return %c0_i32, %c0_i32_0 : i32, i32
  }
  func.func @transform_11(%arg0: i32) -> (i32, i32) {
    %c0_i32 = arith.constant 0 : i32
    %c0_i32_0 = arith.constant 0 : i32
    %c0_i32_1 = arith.constant 0 : i32
    return %c0_i32, %c0_i32_0 : i32, i32
  }
  func.func @transform_12(%arg0: i32) -> (i32, i32) {
    %c0_i32 = arith.constant 0 : i32
    %c0_i32_0 = arith.constant 0 : i32
    %c0_i32_1 = arith.constant 0 : i32
    return %c0_i32, %c0_i32_0 : i32, i32
  }
  func.func @transform_13(%arg0: i32) -> (i32, i32) {
    %c0_i32 = arith.constant 0 : i32
    %c0_i32_0 = arith.constant 0 : i32
    %c0_i32_1 = arith.constant 0 : i32
    return %c0_i32, %c0_i32_0 : i32, i32
  }
  func.func @transform_14(%arg0: i32) -> (i32, i32) {
    %c0_i32 = arith.constant 0 : i32
    %c0_i32_0 = arith.constant 0 : i32
    %c0_i32_1 = arith.constant 0 : i32
    return %c0_i32, %c0_i32_0 : i32, i32
  }
  func.func @transform_15(%arg0: i32) -> (i32, i32) {
    %c0_i32 = arith.constant 0 : i32
    %c0_i32_0 = arith.constant 0 : i32
    %c0_i32_1 = arith.constant 0 : i32
    return %c0_i32, %c0_i32_0 : i32, i32
  }
  func.func @transform_16(%arg0: i32) -> (i32, i32, i32) {
    %c0_i32 = arith.constant 0 : i32
    %c0_i32_0 = arith.constant 0 : i32
    %c0_i32_1 = arith.constant 0 : i32
    return %arg0, %c0_i32, %c0_i32_0 : i32, i32, i32
  }
}

</mosaic_0001>

<bundles_post_ra>
// kernel: top_down_forward.1
= control target key start
LH: loop header
LB: loop body
LE: loop exit
PB: predicated region body
PF: predicated region fallthrough
CT: control target
= control target key end

     0   :  { %s7410_s0 = inlined_call_operand.hbm [shape: f32[2,4,8,32], index: 0, kind: input, shape index: {}]   ;;  %s7411_s1 = inlined_call_operand.hbm [shape: f32[2,4,32], index: 1, kind: input, shape index: {}]   ;;  %s7412_s2 = inlined_call_operand.vmem [shape: f32[32,32], index: 2, kind: input, shape index: {}]   ;;  %s7413_s3 = inlined_call_operand.hbm [shape: f32[1,32], index: 3, kind: input, shape index: {}]   ;;  %s7414_s4 = inlined_call_operand.hbm [shape: f32[32,32], index: 4, kind: input, shape index: {}]   ;;  %s7415_s5 = inlined_call_operand.hbm [shape: f32[32,32], index: 5, kind: input, shape index: {}]   ;;  %s7416_s6 = inlined_call_operand.hbm [shape: f32[1,32], index: 6, kind: input, shape index: {}]   ;;  %s7417_s7 = inlined_call_operand.hbm [shape: f32[1,32], index: 7, kind: input, shape index: {}]   ;;  %s7418_s8 = inlined_call_operand.hbm [shape: f32[32,32], index: 8, kind: input, shape index: {}]   ;;  %s7419_s9 = inlined_call_operand.hbm [shape: f32[1,32], index: 9, kind: input, shape index: {}]   ;;  %s7420_s10 = inlined_call_operand.vmem [shape: f32[32,32], index: 10, kind: input, shape index: {}]   ;;  %s7421_s11 = inlined_call_operand.hbm [shape: f32[1,32], index: 11, kind: input, shape index: {}]   ;;  %s7422_s12 = inlined_call_operand.hbm [shape: f32[32,64], index: 12, kind: input, shape index: {}]   ;;  %s7423_s13 = inlined_call_operand.hbm [shape: f32[1,64], index: 13, kind: input, shape index: {}]   ;;  %s7424_s14 = inlined_call_operand.hbm [shape: f32[64,64], index: 14, kind: input, shape index: {}]   ;;  %s7425_s15 = inlined_call_operand.hbm [shape: f32[1,64], index: 15, kind: input, shape index: {}]   ;;  %s7426_s16 = inlined_call_operand.hbm [shape: f32[2,4,64], index: 16, kind: output, shape index: {}]  }
   0x1   :  { %7457 = sst [smem:[#allocation45_spill]] %s7410_s0 }
   0x2   :  { %7458 = sst [smem:[#allocation46_spill]] %s7411_s1 }
   0x3   :  { %7459 = sst [smem:[#allocation47_spill]] %s7412_s2 }
   0x4   :  { %7460 = sst [smem:[#allocation48_spill]] %s7413_s3 }
   0x5   :  { %7461 = sst [smem:[#allocation49_spill]] %s7414_s4 }
   0x6   :  { %7462 = sst [smem:[#allocation50_spill]] %s7415_s5 }
   0x7   :  { %7463 = sst [smem:[#allocation51_spill]] %s7416_s6 }
   0x8   :  { %7464 = sst [smem:[#allocation52_spill]] %s7417_s7 }
   0x9   :  { %7465 = sst [smem:[#allocation53_spill]] %s7418_s8 }
   0xa   :  { %7466 = sst [smem:[#allocation54_spill]] %s7419_s9 }
   0xb   :  { %7467 = sst [smem:[#allocation55_spill]] %s7420_s10 }
   0xc   :  { %7468 = sst [smem:[#allocation56_spill]] %s7421_s11 }
   0xd   :  { %7469 = sst [smem:[#allocation57_spill]] %s7422_s12 }
   0xe   :  { %7470 = sst [smem:[#allocation58_spill]] %s7426_s16 }
   0xf   :  { %21 = vsyncpa [#allocation3], 0 }
  0x10   :  { %23 = vsyncpa [#allocation3 + $0x1], 0 }
  0x11   :  { %24 = vsyncpa [#allocation6], 0 }
  0x12   :  { %26 = vsyncpa [#allocation6 + $0x1], 0 }
  0x13   :  { %27 = vsyncpa [#allocation9], 0 }
  0x14   :  { %28 = vsyncpa [#allocation12], 0 }
  0x15   :  { %29 = vsyncpa [#allocation15], 0 }
  0x16   :  { %30 = vsyncpa [#allocation18], 0 }
  0x17   :  { %31 = vsyncpa [#allocation21], 0 }
  0x18   :  { %32 = vsyncpa [#allocation24], 0 }
  0x19   :  { %33 = vsyncpa [#allocation4], 0 }
  0x1a   :  { %35 = vsyncpa [#allocation4 + $0x1], 0  ;;  %s5806_s21 = smov 0   ;;  %s5808_s22 = smov 0  }
  0x1b   :  { %s5810_s23 = smov 0   ;;  %s5812_s24 = smov 0  }
  0x1c LB: > { %s5699_s25 = smov [#allocation7]   ;;  %s5827_s27 = sadd.s32 4294967295, %s5697_s24   ;;  %s5697_s24 = sphi %s5812_s24, %s7541_s24   ;;  %s5693_s23 = sphi %s5810_s23, %s7540_s23   ;;  %s5689_s22 = sphi %s5808_s22, %s7539_s22   ;;  %s5685_s21 = sphi %s5806_s21, %s7538_s21  }
  0x1d   : > { %s434_s26 = sshll.u32 %s5699_s25, 4  ;;  %p4339_p0 = scmp.ge.s32.totalorder %s5697_s24, 1  ;;  %s5832_s26 = int_to_ptr.vmem [resolvable:$true] %s434_s26 }
  0x1e   : > { %p7437_p1 = scmp.eq.s32.totalorder %s5827_s27, 0  ;;  %p418_p2 = scmp.lt.s32.totalorder %s5697_s24, 3 }
  0x1f   : > { %s5700_s29 = smov [#allocation8]   ;;  %s5701_s17 = smov [#allocation11]  }
  0x20   : > { %p5834_p3 = pnand %p4339_p0, %p418_p2  ;;  %s444_s30 = sshll.u32 %s5700_s29, 4  ;;  %s5841_s30 = int_to_ptr.vmem [resolvable:$true] %s444_s30 }
  0x21   : > { %s471_s18 = sshll.u32 %s5701_s17, 4  ;;  %s7474_s3 = sld [smem:[#allocation48_spill]]  ;;  %s5849_s18 = int_to_ptr.vmem [resolvable:$true] %s471_s18 }
  0x22   : > { %s7471_s28 = scalar_select %p5834_p3, 1, 0 }
  0x23   : > { %p4812_p5 = pneg %p5834_p3 }
  0x24   : > { %7472 = sst [smem:[#allocation36_spill]] %s7471_s28 }
  0x25   : > { %p5845_p6 = pnand %p4812_p5, %p7437_p1 }
  0x27   : > { %s5203_s25 = scalar_lea.hbm %s7474_s3, 16  ;;  %p5859_p8 = pneg %p5845_p6 }
  0x28   : > { %p5204_p7 = scmp.ne.s32.totalorder %s7474_s3, %s5203_s25  ;;  %p5210_p11 = scmp.lt.u32.totalorder %s5203_s25, %s7474_s3 }
  0x2a   : > { %p5206_p9 = pnand %p5859_p8, %p5204_p7 }
  0x2c   : > { %p5207_p10 = pneg %p5206_p9 }
  0x2e   : > { %p5212_p12 = pnand %p5210_p11, %p5207_p10 }
  0x30   : > { %5215 = shalt.err (!%p5212_p12)
}
  0x31   : > { %s5216_s10 = scalar_lea.vmem %s5832_s26, 16  ;;  %s5223_s16 = scalar_lea.vmem %s5832_s26, 32 }
  0x32   : > { %p5217_p13 = scmp.ne.s32.totalorder %s5832_s26, %s5216_s10  ;;  %p5224_p5 = scmp.lt.s32.totalorder %s5832_s26, %s5832_s26 }
  0x33   : > { %p5225_p7 = scmp.lt.s32.totalorder %s5223_s16, %s5216_s10 }
  0x34   : > { %p5219_p0 = pnand %p5217_p13, %p5859_p8 }
  0x35   : > { %p5226_p9 = por %p5225_p7, %p5224_p5 }
  0x36   : > { %p5220_p2 = pneg %p5219_p0 }
  0x38   : > { %p5227_p4 = pnand %p5226_p9, %p5220_p2 }
  0x3a   : > { %5230 = shalt.err (!%p5227_p4)
}
  0x3b   : > { %4815 = dma.hbm_to_vmem [thread:$0]  (!%p5845_p6), %s7474_s3, 16, %s5832_s26, [#allocation6]  }
  0x3c   : > { %s7476_s4 = sld [smem:[#allocation49_spill]] }
  0x42   : > { %s5231_s17 = scalar_lea.hbm %s7476_s4, 512 }
  0x43   : > { %p5232_p10 = scmp.ne.s32.totalorder %s7476_s4, %s5231_s17  ;;  %p5238_p4 = scmp.lt.u32.totalorder %s5231_s17, %s7476_s4 }
  0x45   : > { %p5234_p11 = pnand %p5232_p10, %p5859_p8 }
  0x47   : > { %p5235_p12 = pneg %p5234_p11 }
  0x49   : > { %p5240_p13 = pnand %p5238_p4, %p5235_p12 }
  0x4b   : > { %5243 = shalt.err (!%p5240_p13)
}
  0x4c   : > { %s5244_s26 = scalar_lea.vmem %s5841_s30, 512  ;;  %p5252_p7 = scmp.lt.s32.totalorder %s5841_s30, %s5841_s30 }
  0x4d   : > { %p5245_p0 = scmp.ne.s32.totalorder %s5841_s30, %s5244_s26  ;;  %p5253_p9 = scmp.lt.s32.totalorder %s5244_s26, %s5244_s26 }
  0x4f   : > { %p5247_p2 = pnand %p5245_p0, %p5859_p8  ;;  %p5254_p10 = por %p5253_p9, %p5252_p7 }
  0x51   : > { %p5248_p5 = pneg %p5247_p2 }
  0x53   : > { %p5255_p11 = pnand %p5254_p10, %p5248_p5 }
  0x55   : > { %5258 = shalt.err (!%p5255_p11)
}
  0x56   : > { %s7433_s1 = smov 128   ;;  %s7435_s28 = smov 8  }
  0x57   : > { %4818 = dma.hbm_to_vmem [thread:$0]  (!%p5845_p6), %s7476_s4, 512, %s5841_s30, [#allocation9], %s7433_s1, %s7433_s1, %s7435_s28  }
  0x58   : > { %s7477_s6 = sld [smem:[#allocation51_spill]] }
  0x5e   : > { %s5259_s17 = scalar_lea.hbm %s7477_s6, 16 }
  0x5f   : > { %p5260_p12 = scmp.ne.s32.totalorder %s7477_s6, %s5259_s17  ;;  %p5266_p0 = scmp.lt.u32.totalorder %s5259_s17, %s7477_s6 }
  0x61   : > { %p5262_p4 = pnand %p5260_p12, %p5859_p8 }
  0x63   : > { %p5263_p13 = pneg %p5262_p4 }
  0x65   : > { %p5268_p2 = pnand %p5266_p0, %p5263_p13 }
  0x67   : > { %5271 = shalt.err (!%p5268_p2)
}
  0x68   : > { %s5272_s30 = scalar_lea.vmem %s5849_s18, 16  ;;  %s5279_s2 = scalar_lea.vmem %s5849_s18, 32 }
  0x69   : > { %p5273_p5 = scmp.ne.s32.totalorder %s5849_s18, %s5272_s30  ;;  %p5280_p10 = scmp.lt.s32.totalorder %s5849_s18, %s5849_s18 }
  0x6a   : > { %p5281_p11 = scmp.lt.s32.totalorder %s5279_s2, %s5272_s30 }
  0x6b   : > { %p5275_p7 = pnand %p5273_p5, %p5859_p8 }
  0x6c   : > { %p5282_p12 = por %p5281_p11, %p5280_p10 }
  0x6d   : > { %p5276_p9 = pneg %p5275_p7 }
  0x6f   : > { %p5283_p4 = pnand %p5282_p12, %p5276_p9 }
  0x71   : > { %5286 = shalt.err (!%p5283_p4)
}
  0x72   : > { %4824 = dma.hbm_to_vmem [thread:$0]  (!%p5845_p6), %s7477_s6, 16, %s5849_s18, [#allocation12]  }
  0x73   : > { %s5704_s20 = smov [#allocation14]   ;;  %s5705_s17 = smov [#allocation17]  }
  0x74   : > { %s492_s25 = sshll.u32 %s5704_s20, 4  ;;  %s520_s10 = sshll.u32 %s5705_s17, 4  ;;  %s493_s25 = int_to_ptr.vmem [resolvable:$true] %s492_s25  ;;  %s521_s10 = int_to_ptr.vmem [resolvable:$true] %s520_s10 }
  0x75   : > { %s7478_s8 = sld [smem:[#allocation53_spill]] }
  0x7b   : > { %s5287_s30 = scalar_lea.hbm %s7478_s8, 512 }
  0x7c   : > { %p5288_p13 = scmp.ne.s32.totalorder %s7478_s8, %s5287_s30  ;;  %p5294_p5 = scmp.lt.u32.totalorder %s5287_s30, %s7478_s8 }
  0x7e   : > { %p5290_p0 = pnand %p5288_p13, %p5859_p8 }
  0x80   : > { %p5291_p2 = pneg %p5290_p0 }
  0x82   : > { %p5296_p7 = pnand %p5294_p5, %p5291_p2 }
  0x84   : > { %5299 = shalt.err (!%p5296_p7)
}
  0x85   : > { %s5300_s18 = scalar_lea.vmem %s493_s25, 512  ;;  %p5308_p12 = scmp.lt.s32.totalorder %s493_s25, %s493_s25 }
  0x86   : > { %p5301_p9 = scmp.ne.s32.totalorder %s493_s25, %s5300_s18  ;;  %p5309_p4 = scmp.lt.s32.totalorder %s5300_s18, %s5300_s18 }
  0x88   : > { %p5303_p10 = pnand %p5301_p9, %p5859_p8  ;;  %p5310_p1 = por %p5309_p4, %p5308_p12 }
  0x8a   : > { %p5304_p11 = pneg %p5303_p10 }
  0x8c   : > { %p5311_p3 = pnand %p5310_p1, %p5304_p11 }
  0x8e   : > { %5314 = shalt.err (!%p5311_p3)
}
  0x8f   : > { %s7479_s1 = smov 8   ;;  %s7480_s19 = smov 128  }
  0x90   : > { %4830 = dma.hbm_to_vmem [thread:$0]  (!%p5845_p6), %s7478_s8, 512, %s493_s25, [#allocation15], %s7480_s19, %s7480_s19, %s7479_s1  }
  0x91   : > { %s7481_s11 = sld [smem:[#allocation56_spill]] }
  0x97   : > { %s5315_s26 = scalar_lea.hbm %s7481_s11, 16 }
  0x98   : > { %p5316_p1 = scmp.ne.s32.totalorder %s7481_s11, %s5315_s26  ;;  %p5322_p0 = scmp.lt.u32.totalorder %s5315_s26, %s7481_s11 }
  0x9a   : > { %p5318_p3 = pnand %p5316_p1, %p5859_p8 }
  0x9c   : > { %p5319_p13 = pneg %p5318_p3 }
  0x9e   : > { %p5324_p2 = pnand %p5322_p0, %p5319_p13 }
  0xa0   : > { %5327 = shalt.err (!%p5324_p2)
}
  0xa1   : > { %s5328_s28 = scalar_lea.vmem %s521_s10, 16  ;;  %s5335_s25 = scalar_lea.vmem %s521_s10, 32 }
  0xa2   : > { %p5329_p5 = scmp.ne.s32.totalorder %s521_s10, %s5328_s28  ;;  %p5336_p10 = scmp.lt.s32.totalorder %s521_s10, %s521_s10 }
  0xa3   : > { %p5337_p11 = scmp.lt.s32.totalorder %s5335_s25, %s5328_s28 }
  0xa4   : > { %p5331_p7 = pnand %p5329_p5, %p5859_p8 }
  0xa5   : > { %p5338_p12 = por %p5337_p11, %p5336_p10 }
  0xa6   : > { %p5332_p9 = pneg %p5331_p7 }
  0xa8   : > { %p5339_p4 = pnand %p5338_p12, %p5332_p9 }
  0xaa   : > { %5342 = shalt.err (!%p5339_p4)
}
  0xab   : > { %4836 = dma.hbm_to_vmem [thread:$0]  (!%p5845_p6), %s7481_s11, 16, %s521_s10, [#allocation18]  }
  0xac   : > { %s5706_s16 = smov [#allocation20]   ;;  %s5707_s30 = smov [#allocation10]  }
  0xad   : > { %s544_s26 = sshll.u32 %s5706_s16, 4  ;;  %s457_s2 = sshll.u32 %s5707_s30, 4  ;;  %s545_s26 = int_to_ptr.vmem [resolvable:$true] %s544_s26  ;;  %s458_s2 = int_to_ptr.vmem [resolvable:$true] %s457_s2 }
  0xae   : > { %s5343_s4 = scalar_lea.hbm %s7423_s13, 16 }
  0xaf   : > { %p5344_p1 = scmp.ne.s32.totalorder %s7423_s13, %s5343_s4  ;;  %p5350_p0 = scmp.lt.u32.totalorder %s5343_s4, %s7423_s13 }
  0xb1   : > { %p5346_p3 = pnand %p5344_p1, %p5859_p8 }
  0xb3   : > { %p5347_p13 = pneg %p5346_p3 }
  0xb5   : > { %p5352_p2 = pnand %p5350_p0, %p5347_p13 }
  0xb7   : > { %5355 = shalt.err (!%p5352_p2)
}
  0xb8   : > { %s5356_s10 = scalar_lea.vmem %s545_s26, 16  ;;  %s5363_s17 = scalar_lea.vmem %s545_s26, 32 }
  0xb9   : > { %p5357_p5 = scmp.ne.s32.totalorder %s545_s26, %s5356_s10  ;;  %p5364_p10 = scmp.lt.s32.totalorder %s545_s26, %s545_s26 }
  0xba   : > { %p5365_p11 = scmp.lt.s32.totalorder %s5363_s17, %s5356_s10 }
  0xbb   : > { %p5359_p7 = pnand %p5357_p5, %p5859_p8 }
  0xbc   : > { %p5366_p12 = por %p5365_p11, %p5364_p10 }
  0xbd   : > { %p5360_p9 = pneg %p5359_p7 }
  0xbf   : > { %p5367_p4 = pnand %p5366_p12, %p5360_p9 }
  0xc1   : > { %5370 = shalt.err (!%p5367_p4)
}
  0xc2   : > { %4842 = dma.hbm_to_vmem [thread:$0]  (!%p5845_p6), %s7423_s13, 16, %s545_s26, [#allocation21]  }
  0xc3   : > { %s7482_s5 = sld [smem:[#allocation50_spill]] }
  0xc9   : > { %s5371_s3 = scalar_lea.hbm %s7482_s5, 512 }
  0xca   : > { %p5372_p1 = scmp.ne.s32.totalorder %s7482_s5, %s5371_s3  ;;  %p5378_p0 = scmp.lt.u32.totalorder %s5371_s3, %s7482_s5 }
  0xcc   : > { %p5374_p3 = pnand %p5372_p1, %p5859_p8 }
  0xce   : > { %p5375_p13 = pneg %p5374_p3 }
  0xd0   : > { %p5380_p2 = pnand %p5378_p0, %p5375_p13 }
  0xd2   : > { %5383 = shalt.err (!%p5380_p2)
}
  0xd3   : > { %s5384_s10 = scalar_lea.vmem %s458_s2, 512  ;;  %p5392_p10 = scmp.lt.s32.totalorder %s458_s2, %s458_s2 }
  0xd4   : > { %p5385_p5 = scmp.ne.s32.totalorder %s458_s2, %s5384_s10  ;;  %p5393_p11 = scmp.lt.s32.totalorder %s5384_s10, %s5384_s10 }
  0xd6   : > { %p5387_p7 = pnand %p5385_p5, %p5859_p8  ;;  %p5394_p12 = por %p5393_p11, %p5392_p10 }
  0xd8   : > { %p5388_p9 = pneg %p5387_p7 }
  0xda   : > { %p5395_p4 = pnand %p5394_p12, %p5388_p9 }
  0xdc   : > { %5398 = shalt.err (!%p5395_p4)
}
  0xdd   : > { %4821 = dma.hbm_to_vmem [thread:$0]  (!%p5845_p6), %s7482_s5, 512, %s458_s2, [#allocation9], %s7480_s19, %s7480_s19, %s7479_s1  }
  0xde   : > { %s5708_s16 = smov [#allocation13]   ;;  %s5709_s4 = smov [#allocation16]  }
  0xdf   : > { %s482_s30 = sshll.u32 %s5708_s16, 4  ;;  %s506_s6 = sshll.u32 %s5709_s4, 4  ;;  %s483_s30 = int_to_ptr.vmem [resolvable:$true] %s482_s30  ;;  %s507_s6 = int_to_ptr.vmem [resolvable:$true] %s506_s6 }
  0xe0   : > { %s7483_s7 = sld [smem:[#allocation52_spill]] }
  0xe6   : > { %s5399_s28 = scalar_lea.hbm %s7483_s7, 16 }
  0xe7   : > { %p5400_p1 = scmp.ne.s32.totalorder %s7483_s7, %s5399_s28  ;;  %p5406_p0 = scmp.lt.u32.totalorder %s5399_s28, %s7483_s7 }
  0xe9   : > { %p5402_p3 = pnand %p5400_p1, %p5859_p8 }
  0xeb   : > { %p5403_p13 = pneg %p5402_p3 }
  0xed   : > { %p5408_p2 = pnand %p5406_p0, %p5403_p13 }
  0xef   : > { %5411 = shalt.err (!%p5408_p2)
}
  0xf0   : > { %s5412_s2 = scalar_lea.vmem %s483_s30, 16  ;;  %s5419_s17 = scalar_lea.vmem %s483_s30, 32 }
  0xf1   : > { %p5413_p5 = scmp.ne.s32.totalorder %s483_s30, %s5412_s2  ;;  %p5420_p10 = scmp.lt.s32.totalorder %s483_s30, %s483_s30 }
  0xf2   : > { %p5421_p11 = scmp.lt.s32.totalorder %s5419_s17, %s5412_s2 }
  0xf3   : > { %p5415_p7 = pnand %p5413_p5, %p5859_p8 }
  0xf4   : > { %p5422_p12 = por %p5421_p11, %p5420_p10 }
  0xf5   : > { %p5416_p9 = pneg %p5415_p7 }
  0xf7   : > { %p5423_p4 = pnand %p5422_p12, %p5416_p9 }
  0xf9   : > { %5426 = shalt.err (!%p5423_p4)
}
  0xfa   : > { %4827 = dma.hbm_to_vmem [thread:$0]  (!%p5845_p6), %s7483_s7, 16, %s483_s30, [#allocation12]  }
  0xfb   : > { %s7484_s9 = sld [smem:[#allocation54_spill]] }
 0x101   : > { %s5427_s28 = scalar_lea.hbm %s7484_s9, 16 }
 0x102   : > { %p5428_p1 = scmp.ne.s32.totalorder %s7484_s9, %s5427_s28  ;;  %p5434_p0 = scmp.lt.u32.totalorder %s5427_s28, %s7484_s9 }
 0x104   : > { %p5430_p3 = pnand %p5428_p1, %p5859_p8 }
 0x106   : > { %p5431_p13 = pneg %p5430_p3 }
 0x108   : > { %p5436_p2 = pnand %p5434_p0, %p5431_p13 }
 0x10a   : > { %5439 = shalt.err (!%p5436_p2)
}
 0x10b   : > { %s5440_s2 = scalar_lea.vmem %s507_s6, 16  ;;  %s5447_s30 = scalar_lea.vmem %s507_s6, 32 }
 0x10c   : > { %p5441_p5 = scmp.ne.s32.totalorder %s507_s6, %s5440_s2  ;;  %p5448_p10 = scmp.lt.s32.totalorder %s507_s6, %s507_s6 }
 0x10d   : > { %p5449_p11 = scmp.lt.s32.totalorder %s5447_s30, %s5440_s2 }
 0x10e   : > { %p5443_p7 = pnand %p5441_p5, %p5859_p8 }
 0x10f   : > { %p5450_p12 = por %p5449_p11, %p5448_p10 }
 0x110   : > { %p5444_p9 = pneg %p5443_p7 }
 0x112   : > { %p5451_p4 = pnand %p5450_p12, %p5444_p9 }
 0x114   : > { %5454 = shalt.err (!%p5451_p4)
}
 0x115   : > { %4833 = dma.hbm_to_vmem [thread:$0]  (!%p5845_p6), %s7484_s9, 16, %s507_s6, [#allocation15]  }
 0x116   : > { %s5710_s4 = smov [#allocation19]   ;;  %s5711_s18 = smov [#allocation22]  }
 0x117   : > { %s530_s3 = sshll.u32 %s5710_s4, 4  ;;  %s554_s28 = sshll.u32 %s5711_s18, 4  ;;  %s531_s3 = int_to_ptr.vmem [resolvable:$true] %s530_s3  ;;  %s555_s28 = int_to_ptr.vmem [resolvable:$true] %s554_s28 }
 0x118   : > { %s7485_s12 = sld [smem:[#allocation57_spill]] }
 0x11e   : > { %s5455_s10 = scalar_lea.hbm %s7485_s12, 512 }
 0x11f   : > { %p5456_p1 = scmp.ne.s32.totalorder %s7485_s12, %s5455_s10  ;;  %p5462_p0 = scmp.lt.u32.totalorder %s5455_s10, %s7485_s12 }
 0x121   : > { %p5458_p3 = pnand %p5456_p1, %p5859_p8 }
 0x123   : > { %p5459_p13 = pneg %p5458_p3 }
 0x125   : > { %p5464_p2 = pnand %p5462_p0, %p5459_p13 }
 0x127   : > { %5467 = shalt.err (!%p5464_p2)
}
 0x128   : > { %s5468_s6 = scalar_lea.vmem %s531_s3, 512  ;;  %p5476_p10 = scmp.lt.s32.totalorder %s531_s3, %s531_s3 }
 0x129   : > { %p5469_p5 = scmp.ne.s32.totalorder %s531_s3, %s5468_s6  ;;  %p5477_p11 = scmp.lt.s32.totalorder %s5468_s6, %s5468_s6 }
 0x12b   : > { %p5471_p7 = pnand %p5469_p5, %p5859_p8  ;;  %p5478_p12 = por %p5477_p11, %p5476_p10 }
 0x12d   : > { %p5472_p9 = pneg %p5471_p7 }
 0x12f   : > { %p5479_p4 = pnand %p5478_p12, %p5472_p9 }
 0x131   : > { %5482 = shalt.err (!%p5479_p4)
}
 0x132   : > { %4839 = dma.hbm_to_vmem [thread:$0]  (!%p5845_p6), %s7485_s12, 512, %s531_s3, [#allocation18], %s7480_s19, %s7480_s19, %s7479_s1  }
 0x133   : > { %s5483_s20 = scalar_lea.hbm %s7424_s14, 1024 }
 0x134   : > { %p5484_p1 = scmp.ne.s32.totalorder %s7424_s14, %s5483_s20  ;;  %p5490_p0 = scmp.lt.u32.totalorder %s5483_s20, %s7424_s14 }
 0x136   : > { %p5486_p3 = pnand %p5484_p1, %p5859_p8 }
 0x138   : > { %p5487_p13 = pneg %p5486_p3 }
 0x13a   : > { %p5492_p2 = pnand %p5490_p0, %p5487_p13 }
 0x13c   : > { %5495 = shalt.err (!%p5492_p2)
}
 0x13d   : > { %s5496_s17 = scalar_lea.vmem %s555_s28, 1024  ;;  %p5504_p10 = scmp.lt.s32.totalorder %s555_s28, %s555_s28 }
 0x13e   : > { %p5497_p5 = scmp.ne.s32.totalorder %s555_s28, %s5496_s17  ;;  %p5505_p11 = scmp.lt.s32.totalorder %s5496_s17, %s5496_s17 }
 0x140   : > { %p5499_p7 = pnand %p5497_p5, %p5859_p8  ;;  %p5506_p12 = por %p5505_p11, %p5504_p10 }
 0x142   : > { %p5500_p9 = pneg %p5499_p7 }
 0x144   : > { %p5507_p4 = pnand %p5506_p12, %p5500_p9 }
 0x146   : > { %5510 = shalt.err (!%p5507_p4)
}
 0x147   : > { %4845 = dma.hbm_to_vmem [thread:$0]  (!%p5845_p6), %s7424_s14, 1024, %s555_s28, [#allocation21], %s7480_s19, %s7480_s19, %s7479_s1  }
 0x148   : > { %s5712_s16 = smov [#allocation23]   ;;  %s5511_s20 = scalar_lea.hbm %s7425_s15, 16 }
 0x149   : > { %s568_s4 = sshll.u32 %s5712_s16, 4  ;;  %p5512_p1 = scmp.ne.s32.totalorder %s7425_s15, %s5511_s20  ;;  %s569_s4 = int_to_ptr.vmem [resolvable:$true] %s568_s4 }
 0x14a   : > { %p5518_p0 = scmp.lt.u32.totalorder %s5511_s20, %s7425_s15 }
 0x14b   : > { %p5514_p3 = pnand %p5512_p1, %p5859_p8 }
 0x14d   : > { %p5515_p13 = pneg %p5514_p3 }
 0x14f   : > { %p5520_p2 = pnand %p5518_p0, %p5515_p13 }
 0x151   : > { %5523 = shalt.err (!%p5520_p2)
}
 0x152   : > { %s5524_s28 = scalar_lea.vmem %s569_s4, 16  ;;  %s5531_s17 = scalar_lea.vmem %s569_s4, 32 }
 0x153   : > { %p5525_p5 = scmp.ne.s32.totalorder %s569_s4, %s5524_s28  ;;  %p5532_p10 = scmp.lt.s32.totalorder %s569_s4, %s569_s4 }
 0x154   : > { %p5533_p11 = scmp.lt.s32.totalorder %s5531_s17, %s5524_s28 }
 0x155   : > { %p5527_p7 = pnand %p5525_p5, %p5859_p8 }
 0x156   : > { %p5534_p12 = por %p5533_p11, %p5532_p10 }
 0x157   : > { %p5528_p9 = pneg %p5527_p7 }
 0x159   : > { %p5535_p4 = pnand %p5534_p12, %p5528_p9 }
 0x15b   : > { %5538 = shalt.err (!%p5535_p4)
}
 0x15c   : > { %4848 = dma.hbm_to_vmem [thread:$0]  (!%p5845_p6), %s7425_s15, 16, %s569_s4, [#allocation24]  }
 0x15d   : > { %s4338_s29 = sadd.s32 4294967294, %s5697_s24   ;;  %s6107_s0 = sadd.s32 1, %s5697_s24  }
 0x15e   : > { %s45_s16 = ssub.s32 %s5697_s24, %s6107_s0  ;;  %s48_s18 = sadd.s32 1, %s5693_s23 }
 0x15f   : > { %p46_p8 = scmp.eq.s32.totalorder %s45_s16, 0  ;;  %p55_p1 = scmp.ne.s32.totalorder %s5693_s23, %s5689_s22 }
 0x160   : > { %p56_p3 = scmp.eq.s32.totalorder %s5697_s24, 0  ;;  %p61_p13 = scmp.ne.s32.totalorder %s5689_s22, %s5685_s21 }
 0x161   : > { %s6118_s25 = scalar_select %p46_p8, %s5693_s23, %s48_s18  }
 0x162   : > { %p6120_p0 = por %p56_p3, %p55_p1  ;;  %p7487_p2 = scmp.eq.s32.totalorder %s5827_s27, 0 }
 0x163   : > { %p405_p5 = scmp.eq.s32.totalorder %s5827_s27, 1  ;;  %p411_p7 = scmp.eq.s32.totalorder %s4338_s29, 1 }
 0x164   : > { %p6126_p6 = por %p7487_p2, %p61_p13  ;;  %p4872_p9 = scmp.lt.s32.totalorder %s5697_s24, 2 }
 0x165   : > { %s6133_s10 = sand.u32 1, %s5693_s23   ;;  %p6135_p10 = por %p405_p5, %p55_p1 }
 0x166   : > { %s7488_s4 = scalar_select %p6126_p6, 1, 0 }
 0x167   : > { %s7489_s26 = scalar_select %p6135_p10, 1, 0 }
 0x168   : > { %p6139_p11 = por %p411_p7, %p61_p13  ;;  %s4353_s30 = sshll.u32 %s6133_s10, 5 }
 0x169   : > { %s4401_s28 = sshll.u32 %s5697_s24, 9  ;;  %s7491_s6 = sld [smem:[#allocation45_spill]] }
 0x16a   : > { %s7490_s2 = scalar_select %p6139_p11, 1, 0 }
 0x16b   : > { %s583_s16 = scalar_lea.vmem [#allocation2], %s4353_s30  ;;  %p6154_p12 = pnand %p4872_p9, %p6120_p0 }
 0x16c   : > { %s590_s18 = sshll.u32 %s583_s16, 4  ;;  %s4356_s8 = sshll.u32 %s6133_s10, 2  ;;  %s6150_s18 = int_to_ptr.vmem [resolvable:$true] %s590_s18 }
 0x16d   : > { %s580_s17 = scalar_lea.sflag [#allocation3], %s6133_s10  ;;  %p5541_p8 = pneg %p6154_p12 }
 0x16f   : > { %s6148_s29 = scalar_lea.hbm %s7491_s6, %s4401_s28  ;;  %s5544_s20 = scalar_lea.hbm %s7491_s6, 1024 }
 0x170   : > { %s5539_s28 = scalar_lea.hbm %s6148_s29, 512  ;;  %p5545_p13 = scmp.lt.u32.totalorder %s6148_s29, %s7491_s6 }
 0x171   : > { %p5540_p4 = scmp.ne.s32.totalorder %s6148_s29, %s5539_s28  ;;  %p5546_p0 = scmp.lt.u32.totalorder %s5544_s20, %s5539_s28 }
 0x172   : > { %p5548_p5 = scmp.lt.u32.totalorder %s5539_s28, %s6148_s29 }
 0x173   : > { %p5542_p1 = pnand %p5541_p8, %p5540_p4  ;;  %p5547_p2 = por %p5546_p0, %p5545_p13 }
 0x175   : > { %p5543_p3 = pneg %p5542_p1  ;;  %p5549_p7 = por %p5548_p5, %p5547_p2 }
 0x177   : > { %p5550_p9 = pnand %p5549_p7, %p5543_p3 }
 0x179   : > { %5553 = shalt.err (!%p5550_p9)
}
 0x17a   : > { %s5554_s7 = scalar_lea.vmem %s6150_s18, 512  ;;  %s5713_s30 = smov [#allocation2]  }
 0x17b   : > { %p5555_p4 = scmp.ne.s32.totalorder %s6150_s18, %s5554_s7  ;;  %s5559_s3 = sshll.u32 %s5713_s30, 4  ;;  %s5560_s3 = int_to_ptr.vmem [resolvable:$false] %s5559_s3 }
 0x17c   : > { %s5561_s9 = scalar_lea.vmem %s5560_s3, 1024  ;;  %p5562_p10 = scmp.lt.s32.totalorder %s6150_s18, %s5560_s3 }
 0x17d   : > { %p5557_p1 = pnand %p5555_p4, %p5541_p8  ;;  %p5563_p13 = scmp.lt.s32.totalorder %s5561_s9, %s5554_s7 }
 0x17f   : > { %p5558_p11 = pneg %p5557_p1  ;;  %p5564_p0 = por %p5563_p13, %p5562_p10 }
 0x181   : > { %p5565_p2 = pnand %p5564_p0, %p5558_p11 }
 0x183   : > { %5568 = shalt.err (!%p5565_p2)
}
 0x184   : > { %4852 = dma.hbm_to_vmem [thread:$0]  (!%p6154_p12), %s6148_s29, 512, %s6150_s18, %s580_s17, %s7480_s19, %s7480_s19, %s7479_s1  }
 0x185   : > { %s4357_s28 = sshll.u32 %s5697_s24, 6  ;;  %s7493_s16 = sld [smem:[#allocation46_spill]] }
 0x186   : > { %s604_s3 = scalar_lea.vmem [#allocation5], %s4356_s8  ;;  %s7494_s6 = sand.u32 1, %s5697_s24  }
 0x187   : > { %s611_s9 = sshll.u32 %s604_s3, 4  ;;  %s601_s11 = scalar_lea.sflag [#allocation6], %s7494_s6  ;;  %s612_s9 = int_to_ptr.vmem [resolvable:$true] %s611_s9 }
 0x18b   : > { %s6195_s30 = scalar_lea.hbm %s7493_s16, %s4357_s28  ;;  %s5574_s29 = scalar_lea.hbm %s7493_s16, 128 }
 0x18c   : > { %s5569_s12 = scalar_lea.hbm %s6195_s30, 64  ;;  %p5575_p5 = scmp.lt.u32.totalorder %s6195_s30, %s7493_s16 }
 0x18d   : > { %p5570_p10 = scmp.ne.s32.totalorder %s6195_s30, %s5569_s12  ;;  %p5576_p7 = scmp.lt.u32.totalorder %s5574_s29, %s5569_s12 }
 0x18e   : > { %p5578_p4 = scmp.lt.u32.totalorder %s5569_s12, %s6195_s30 }
 0x18f   : > { %p5572_p11 = pnand %p5570_p10, %p5541_p8  ;;  %p5577_p9 = por %p5576_p7, %p5575_p5 }
 0x191   : > { %p5573_p3 = pneg %p5572_p11  ;;  %p5579_p1 = por %p5578_p4, %p5577_p9 }
 0x193   : > { %p5580_p13 = pnand %p5579_p1, %p5573_p3 }
 0x195   : > { %5583 = shalt.err (!%p5580_p13)
}
 0x196   : > { %s5584_s8 = scalar_lea.vmem %s612_s9, 64  ;;  %s5714_s6 = smov [#allocation5]  }
 0x197   : > { %p5585_p0 = scmp.ne.s32.totalorder %s612_s9, %s5584_s8  ;;  %s5589_s17 = sshll.u32 %s5714_s6, 4  ;;  %s5590_s17 = int_to_ptr.vmem [resolvable:$false] %s5589_s17 }
 0x198   : > { %s5591_s28 = scalar_lea.vmem %s5590_s17, 128  ;;  %p5592_p11 = scmp.lt.s32.totalorder %s612_s9, %s5590_s17 }
 0x199   : > { %p5587_p2 = pnand %p5585_p0, %p5541_p8  ;;  %p5593_p6 = scmp.lt.s32.totalorder %s5591_s28, %s5584_s8 }
 0x19b   : > { %p5588_p10 = pneg %p5587_p2  ;;  %p5594_p5 = por %p5593_p6, %p5592_p11 }
 0x19d   : > { %p5595_p7 = pnand %p5594_p5, %p5588_p10 }
 0x19f   : > { %5598 = shalt.err (!%p5595_p7)
}
 0x1a0   : > { %4855 = dma.hbm_to_vmem [thread:$0]  (!%p6154_p12), %s6195_s30, 64, %s612_s9, %s601_s11  }
 0x1a1   : > { %s7495_s12 = sld [smem:[#allocation36_spill]] }
 0x1a7   : > { %p7496_p3 = scmp.ne.s32.totalorder %s7495_s12, 0 }
 0x1a9   : > { %620 = sbr.rel (%p7496_p3) target bundleno = 4227 (0x1083), region = 84 }
 0x1b0   : > { %s6223_s20 = sand.u32 1, %s5689_s22   ;;  %p7497_p6 = scmp.ne.s32.totalorder %s7488_s4, 0 }
 0x1b1   : > { %s4359_s7 = sshll.u32 %s6223_s20, 5  ;;  %s623_s3 = scalar_lea.sflag [#allocation3], %s6223_s20 }
 0x1b2   : > { %s6227_s1 = scalar_lea.vmem [#allocation2], %s4359_s7 }
 0x1b3   : > { %5644 = dma.done.wait (%p7497_p6), %s623_s3, 512  }
 0x1b4   : > { %5646 = vsyncadd (%p7497_p6), %s623_s3, 4294966784  ;;  %s631_s5 = sand.u32 1, %s5827_s27   ;;  %s4360_s11 = sshll.u32 %s6223_s20, 2 }
 0x1b5   : > { %s632_s30 = scalar_lea.sflag [#allocation6], %s631_s5  ;;  %s6237_s9 = scalar_lea.vmem [#allocation5], %s4360_s11 }
 0x1b6   : > { %5648 = dma.done.wait (%p7497_p6), %s632_s30, 64  }
 0x1b7   : > { %5650 = vsyncadd (%p7497_p6), %s632_s30, 4294967232  ;;  %p7498_p12 = scmp.eq.s32.totalorder %s5827_s27, 0 }
 0x1b9   : > { %5652 = dma.done.wait (%p7498_p12), [#allocation6], 16   ;;  %p7499_p8 = pmov %p7498_p12 }
 0x1bb   : > { %5654 = vsyncadd (%p7499_p8), [#allocation6], 4294967280  ;;  %p7500_p9 = pmov %p7499_p8 }
 0x1bc   : > { %p7501_p4 = pmov %p7499_p8 }
 0x1bd   : > { %5656 = dma.done.wait (%p7500_p9), [#allocation9], 1024  }
 0x1be   : > { %5658 = vsyncadd (%p7501_p4), [#allocation9], 4294966272  ;;  %p7502_p1 = pmov %p7501_p4 }
 0x1c0   : > { %5660 = dma.done.wait (%p7502_p1), [#allocation12], 32   ;;  %p7503_p13 = pmov %p7502_p1 }
 0x1c1   : > { %p7504_p0 = pmov %p7502_p1 }
 0x1c2   : > { %5662 = vsyncadd (%p7503_p13), [#allocation12], 4294967264 }
 0x1c3   : > { %5664 = dma.done.wait (%p7504_p0), [#allocation15], 528   ;;  %p7505_p2 = pmov %p7504_p0 }
 0x1c4   : > { %p7506_p10 = pmov %p7504_p0 }
 0x1c5   : > { %5666 = vsyncadd (%p7505_p2), [#allocation15], 4294966768 }
 0x1c6   : > { %5668 = dma.done.wait (%p7506_p10), [#allocation18], 528   ;;  %p7507_p11 = pmov %p7504_p0 }
 0x1c7   : > { %p7508_p5 = pmov %p7504_p0 }
 0x1c8   : > { %5670 = vsyncadd (%p7507_p11), [#allocation18], 4294966768 }
 0x1c9   : > { %5672 = dma.done.wait (%p7508_p5), [#allocation21], 1040   ;;  %p7509_p7 = pmov %p7504_p0 }
 0x1ca   : > { %p7510_p3 = pmov %p7504_p0 }
 0x1cb   : > { %5674 = vsyncadd (%p7509_p7), [#allocation21], 4294966256 }
 0x1cc   : > { %5676 = dma.done.wait (%p7510_p3), [#allocation24], 16   ;;  %p7511_p6 = pmov %p7504_p0 }
 0x1cd   : > { %v7444_v0 = vmov 0.0|0.0   ;;  %vm5716_vm0 = vmmov 0   ;;  %v7442_v1 = vmov 0.0   ;;  %vm752_vm1 = vcmask 261120   ;;  %v742_v2 = vld [vmem:[#allocation8] sm:$0xff]  ;;  %v743_v3 = vld [vmem:[#allocation8 + $0x8] sm:$0xff] }
 0x1ce   : > { %5678 = vsyncadd (%p7511_p6), [#allocation24], 4294967280  ;;  %4674 = vmatprep.subr.bf16.mxu0 %v7444_v0  ;;  %4517 = vmatprep.mubr.msk.f32.mxu0 %vm5716_vm0, %v7442_v1  ;;  %v744_v4 = vld [vmem:[#allocation8 + $0x10] sm:$0xff]  ;;  %v6274_v5 = vpack.c.bf16 %v743_v3, %v742_v2  ;;  %v745_v6 = vld [vmem:[#allocation8 + $0x18] sm:$0xff]  ;;  %s7512_s29 = sld [smem:[#allocation47_spill]]  ;;  %v1163_v40 = vlaneseq  ;;  %vm1766_vm2 = vcmask 257024  }
 0x1cf   : > { %v737_v7 = vld [vmem:[%s6227_s1] sm:$0xff]  ;;  %v6277_v8 = vpack.c.bf16 %v745_v6, %v744_v4  ;;  %v738_v11 = vld [vmem:[%s6227_s1 + $0x8] sm:$0xff]  ;;  %v739_v13 = vld [vmem:[%s6227_s1 + $0x10] sm:$0xff]  ;;  %v5718_v41 = vmov 1966171168   ;;  %vm1839_vm3 = vcmask 1041409  }
 0x1d0   : > { %4492 = vmatprep.mubr.msk.f32.mxu1 %vm752_vm1, %v737_v7  ;;  %4661 = vmatprep.subr.bf16.mxu1 %v6274_v5  ;;  %v740_v16 = vld [vmem:[%s6227_s1 + $0x18] sm:$0xff]  ;;  %v741_v18 = vld [vmem:[%s6237_s9] sm:$0xf]  ;;  %v746_v19 = vld [vmem:[#allocation10] sm:$0xff]  ;;  %v1619_v42 = vunpack.c.l.s4 %v5718_v41  ;;  %v1164_v43 = vshrl.u32 %v1163_v40, 7  ;;  %vm1842_vm4 = vcmask 1042434  }
 0x1d1   : > { %4663 = vmatpush3.bf16.msra.mxu1 %v6274_v5  ;;  %v747_v20 = vld [vmem:[#allocation10 + $0x8] sm:$0xff]  ;;  %v748_v25 = vld [vmem:[#allocation10 + $0x10] sm:$0xff]  ;;  %v749_v26 = vld [vmem:[#allocation10 + $0x18] sm:$0xff]  ;;  %vm1845_vm5 = vcmask 1043459   ;;  %vm1851_vm6 = vcmask 7168   ;;  %s7517_s3 = sld [smem:[#allocation55_spill]] }
 0x1d2   : > { %4665 = vmatprep.subr.bf16.mxu1 %v6277_v8  ;;  %v1008_v21 = vld [vmem:[#allocation14] sm:$0xff]  ;;  %v6311_v22 = vpack.c.bf16 %v747_v20, %v746_v19  ;;  %v1009_v23 = vld [vmem:[#allocation14 + $0x8] sm:$0xff]  ;;  %v1010_v27 = vld [vmem:[#allocation14 + $0x10] sm:$0xff]  ;;  %v6316_v28 = vpack.c.bf16 %v749_v26, %v748_v25  ;;  %v1620_v44 = vunpack.c.0.s8 %v1619_v42  ;;  %v6362_v54 = vsub.s32 1, %v1164_v43  ;;  %s736_s18 = scalar_lea.vmem [#allocation25], %s4360_s11  ;;  %s7534_s28 = sld [smem:[#allocation58_spill]] }
 0x1d3   : > { %v4681_v24 = vpack.c.bf16 %v1009_v23, %v1008_v21  ;;  %v1011_v29 = vld [vmem:[#allocation14 + $0x18] sm:$0xff]  ;;  %v6364_v55 = vsub.s32 2, %v1164_v43  ;;  %v6366_v56 = vsub.s32 0, %v1164_v43  ;;  %vm4041_vm7 = vcmask 523264   ;;  %s4131_s8 = sshll.u32 %s736_s18, 4  ;;  %s4118_s7 = scalar_lea.sflag [#allocation4], %s6223_s20  ;;  %s7368_s8 = int_to_ptr.vmem [resolvable:$true] %s4131_s8 }
 0x1d4   : > { %v850_v9 = vld [vmem:[%s7512_s29] sm:$0xff]  ;;  %v851_v10 = vld [vmem:[%s7512_s29 + $0x8] sm:$0xff]  ;;  %v852_v14 = vld [vmem:[%s7512_s29 + $0x10] sm:$0xff]  ;;  %4676 = vmatpush3.bf16.msra.mxu0 %v6311_v22  ;;  %v4684_v30 = vpack.c.bf16 %v1011_v29, %v1010_v27  ;;  %v1623_v45 = vsub.s32 %v1620_v44, %v1164_v43  ;;  %7514 = vst [vmem:[#allocation38_spill] sm:$0xff] %v6362_v54  ;;  %vm4115_vm8 = vcmask 519168   ;;  %p7535_p8 = scmp.ne.s32.totalorder %s7489_s26, 0 }
 0x1d5   : > { %4667 = vmatpush3.bf16.msra.mxu1 %v6277_v8  ;;  %v4669_v12 = vpack.c.bf16 %v851_v10, %v850_v9  ;;  %v853_v15 = vld [vmem:[%s7512_s29 + $0x18] sm:$0xff]  ;;  %4677 = vmatprep.subr.bf16.mxu0 %v7444_v0  ;;  %v4378_v35 = vld [vmem:[#allocation7] ss:$0 sm:$0xff]  ;;  %7515 = vst [vmem:[#allocation39_spill] sm:$0xff] %v6364_v55  ;;  %v6378_v9 = vld [vmem:[#allocation11] ss:$0 sm:$0xff] }
 0x1d6   : > { %4668 = vmatprep.subr.bf16.mxu1 %v7444_v0  ;;  %v4672_v17 = vpack.c.bf16 %v853_v15, %v852_v14  ;;  %v6391_v25 = vld [vmem:[#allocation13] ss:$0 sm:$0xff]  ;;  %s5720_s11 = smov [#allocation25]  }
 0x1d7   : > { %s5603_s5 = sshll.u32 %s5720_s11, 4  ;;  %s5604_s5 = int_to_ptr.vmem [resolvable:$false] %s5603_s5 }
 0x1d8   : > { %4493 = vmatmul.mubr.msk.f32.vlgmr.msra.gmra.mrb[0].mxu1 %vm752_vm1, %v738_v11  ;;  %4679 = vmatpush3.bf16.msra.mxu0 %v6316_v28  ;;  %s5605_s30 = scalar_lea.vmem %s5604_s5, 128  ;;  %p5606_p1 = scmp.lt.s32.totalorder %s7368_s8, %s5604_s5 }
 0x1d9   : > { %4670 = vmatpush3.bf16.msra.mxu1 %v4669_v12  ;;  %4495 = vmatprep.mubr.msk.f32.mxu1 %vm752_vm1, %v739_v13 }
 0x1da   : > { %4671 = vmatprep.subr.bf16.mxu1 %v7444_v0  ;;  %4686 = vmatprep.subr.bf16.mxu0 %v7444_v0 }
 0x1dc   : > { %4496 = vmatmul.mubr.msk.f32.gmra.mrb[2].mxu1 %vm752_vm1, %v740_v16 }
 0x1dd   : > { %4673 = vmatpush3.bf16.msra.mxu1 %v4672_v17  ;;  %4506 = vmatprep.mubr.msk.f32.mxu1 %vm5716_vm0, %v7442_v1  ;;  %v6387_v17 = vsub.s32 3, %v1164_v43 }
 0x1de   : > { %4680 = vmatprep.subr.bf16.mxu1 %v7444_v0 }
 0x1df   : > { %7516 = vst [vmem:[#allocation40_spill] sm:$0xff] %v6387_v17 }
 0x1e0   : > { %4507 = vmatmul.mubr.msk.f32.vlgmr.msra.gmra.mrb[4].mxu1 %vm752_vm1, %v741_v18 }
 0x1e1   : > { %4528 = vmatprep.mubr.msk.f32.mxu1 %vm5716_vm0, %v7442_v1  ;;  %4682 = vmatpush3.bf16.msra.mxu1 %v4681_v24 }
 0x1e2   : > { %4683 = vmatprep.subr.bf16.mxu1 %v7444_v0 }
 0x1e5   : > { %4685 = vmatpush3.bf16.msra.mxu1 %v4684_v30 }
 0x1e6   : > { %4692 = vmatprep.subr.bf16.mxu1 %v7444_v0 }
 0x2ab   : > { %v6321_v31 = vpop.f32.mrb[0].mxu1 }
 0x2ac   : > { %v6323_v32 = vpop.f32.mrb[1].mxu1 }
 0x2af   : > { %v6325_v33 = vpop.f32.mrb[2].mxu1 }
 0x2b0   : > { %v6327_v34 = vpop.f32.mrb[3].mxu1 }
 0x2b3   : > { %v930_v36 = vpop.f32.mrb[4].mxu1 }
 0x2b4   : > { %v931_v37 = vadd.f32 %v4378_v35, %v930_v36  ;;  %v4508_v38 = vpop.f32.mrb[5].mxu1 }
 0x2b6   : > { %v934_v39 = vmax.f32 %v931_v37, 0.0 }
 0x2b8   : > { %4518 = vmatmul.mubr.msk.f32.vlgmr.msra.gmra.mrb[0].mxu0 %vm752_vm1, %v934_v39  ;;  %4529 = vmatmul.mubr.msk.f32.vlgmr.msra.gmra.mrb[6].mxu1 %vm752_vm1, %v934_v39 }
 0x2b9   : > { %4688 = vmatpush3.bf16.msra.mxu0 %v6311_v22  ;;  %4694 = vmatpush3.bf16.msra.mxu1 %v6274_v5 }
 0x2ba   : > { %4689 = vmatprep.subr.bf16.mxu0 %v7444_v0  ;;  %4695 = vmatprep.subr.bf16.mxu1 %v7444_v0 }
 0x2bb   : > { %4539 = vmatprep.mubr.msk.f32.mxu0 %vm5716_vm0, %v7442_v1  ;;  %4550 = vmatprep.mubr.msk.f32.mxu1 %vm5716_vm0, %v7442_v1 }
 0x2bd   : > { %4691 = vmatpush3.bf16.msra.mxu0 %v6316_v28  ;;  %4697 = vmatpush3.bf16.msra.mxu1 %v6277_v8 }
 0x2be   : > { %4698 = vmatprep.subr.bf16.mxu0 %v7444_v0  ;;  %4704 = vmatprep.subr.bf16.mxu1 %v7444_v0 }
 0x2c0   : > { %4540 = vmatmul.mubr.f32.vlgmr.msra.gmra.mrb[2].mxu0 %v7442_v1  ;;  %4551 = vmatmul.mubr.f32.vlgmr.msra.gmra.mrb[8].mxu1 %v7442_v1 }
 0x2c1   : > { %4561 = vmatprep.mubr.msk.f32.mxu0 %vm5716_vm0, %v7442_v1  ;;  %4706 = vmatpush3.bf16.msra.mxu1 %v6311_v22 }
 0x2c2   : > { %4707 = vmatprep.subr.bf16.mxu1 %v7444_v0  ;;  %4572 = vmatprep.mubr.msk.f32.mxu1 %vm5716_vm0, %v7442_v1 }
 0x2c5   : > { %4709 = vmatpush3.bf16.msra.mxu1 %v6316_v28 }
 0x2c6   : > { %4716 = vmatprep.subr.bf16.mxu1 %v7444_v0 }
 0x38b   : > { %v6353_v46 = vpop.f32.mrb[0].mxu0  ;;  %v6355_v47 = vpop.f32.mrb[6].mxu1 }
 0x38c   : > { %7513 = vst [vmem:[#allocation37_spill] sm:$0xff] %v6353_v46  ;;  %v1624_v48 = vrot.slane %v6353_v46, %v1623_v45  ;;  %v4519_v49 = vpop.f32.mrb[1].mxu0  ;;  %v4530_v50 = vpop.f32.mrb[7].mxu1 }
 0x38e   : > { %v1625_v51 = vcombine.high %v1624_v48, %v1624_v48  ;;  %v6358_v52 = vrot.slane %v1624_v48, %v1623_v45 }
 0x390   : > { %v6360_v53 = vrot.slane %v1625_v51, %v1623_v45 }
 0x393   : > { %v1159_v57 = vpop.f32.mrb[2].mxu0  ;;  %v1759_v58 = vpop.f32.mrb[8].mxu1 }
 0x394   : > { %v1166_v59 = vrot.slane %v1159_v57, %v6366_v56  ;;  %v1288_v60 = vrot.slane %v1159_v57, %v6362_v54  ;;  %v1396_v61 = vrot.slane %v1159_v57, %v6364_v55  ;;  %v4541_v62 = vpop.f32.mrb[3].mxu0  ;;  %v4552_v63 = vpop.f32.mrb[9].mxu1  ;;  %v6372_v2 = vadd.f32 %v1759_v58, %v6353_v46 }
 0x395   : > { %v1504_v37 = vrot.slane %v1159_v57, %v6387_v17 }
 0x396   : > { %v1290_v3 = vadd.f32 %v6321_v31, %v1288_v60  ;;  %v1168_v4 = vadd.f32 %v6321_v31, %v1166_v59  ;;  %v1169_v6 = vadd.f32 %v1166_v59, %v6327_v34  ;;  %v1167_v7 = vadd.f32 %v1166_v59, %v6323_v32 }
 0x397   : > { %v1399_v10 = vadd.f32 %v1396_v61, %v6327_v34  ;;  %v1291_v11 = vadd.f32 %v1288_v60, %v6327_v34  ;;  %v1289_v12 = vadd.f32 %v1288_v60, %v6323_v32  ;;  %v1170_v30 = vadd.f32 %v6325_v33, %v1166_v59 }
 0x398   : > { %v1294_v13 = vadd.f32 %v6378_v9, %v1290_v3  ;;  %v1178_v14 = vadd.f32 %v6378_v9, %v1168_v4  ;;  %v1179_v15 = vadd.f32 %v6378_v9, %v1169_v6  ;;  %v1177_v16 = vadd.f32 %v6378_v9, %v1167_v7 }
 0x399   : > { %v1403_v18 = vadd.f32 %v6378_v9, %v1399_v10  ;;  %v1295_v19 = vadd.f32 %v6378_v9, %v1291_v11  ;;  %v1293_v29 = vadd.f32 %v6378_v9, %v1289_v12  ;;  %v1180_v42 = vadd.f32 %v6378_v9, %v1170_v30 }
 0x39a   : > { %v1298_v20 = vmax.f32 %v1294_v13, 0.0  ;;  %v1182_v21 = vmax.f32 %v1178_v14, 0.0  ;;  %v1183_v23 = vmax.f32 %v1179_v15, 0.0  ;;  %v1181_v24 = vmax.f32 %v1177_v16, 0.0 }
 0x39b   : > { %v1407_v26 = vmax.f32 %v1403_v18, 0.0  ;;  %v1299_v27 = vmax.f32 %v1295_v19, 0.0  ;;  %v1297_v45 = vmax.f32 %v1293_v29, 0.0  ;;  %v1398_v48 = vadd.f32 %v6321_v31, %v1396_v61 }
 0x39c   : > { %v1302_v35 = vmul.f32 %v6391_v25, %v1298_v20  ;;  %v1192_v36 = vmul.f32 %v6391_v25, %v1182_v21  ;;  %v1193_v38 = vmul.f32 %v6391_v25, %v1183_v23  ;;  %v1191_v41 = vmul.f32 %v6391_v25, %v1181_v24 }
 0x39d   : > { %v1411_v43 = vmul.f32 %v6391_v25, %v1407_v26  ;;  %v1303_v44 = vmul.f32 %v6391_v25, %v1299_v27  ;;  %v1292_v49 = vadd.f32 %v6325_v33, %v1288_v60  ;;  %v1400_v50 = vadd.f32 %v6325_v33, %v1396_v61 }
 0x39e   : > { %v1308_v39 = vsel %vm752_vm1, %v1302_v35, 0.0  ;;  %v1198_v40 = vsel %vm752_vm1, %v1192_v36, 0.0  ;;  %v1397_v51 = vadd.f32 %v1396_v61, %v6323_v32  ;;  %v1201_v57 = vsel %vm752_vm1, %v1193_v38, 0.0 }
 0x39f   : > { %1309 = vadd.xlane.f32.xlu0 %v1308_v39  ;;  %1199 = vadd.xlane.f32.xlu1 %v1198_v40  ;;  %v1508_v58 = vadd.f32 %v6325_v33, %v1504_v37  ;;  %v1506_v59 = vadd.f32 %v6321_v31, %v1504_v37  ;;  %v1505_v62 = vadd.f32 %v1504_v37, %v6323_v32  ;;  %v1195_v63 = vsel %vm752_vm1, %v1191_v41, 0.0 }
 0x3a0   : > { %v1184_v3 = vmax.f32 %v1180_v42, 0.0  ;;  %v1402_v4 = vadd.f32 %v6378_v9, %v1398_v48  ;;  %v1296_v6 = vadd.f32 %v6378_v9, %v1292_v49  ;;  %v1301_v60 = vmul.f32 %v6391_v25, %v1297_v45 }
 0x3a1   : > { %v1419_v61 = vsel %vm752_vm1, %v1411_v43, 0.0  ;;  %v1311_v7 = vsel %vm752_vm1, %v1303_v44, 0.0  ;;  %v1404_v10 = vadd.f32 %v6378_v9, %v1400_v50  ;;  %v1507_v11 = vadd.f32 %v1504_v37, %v6327_v34 }
 0x3a2   : > { %v1194_v12 = vmul.f32 %v6391_v25, %v1184_v3  ;;  %v1406_v13 = vmax.f32 %v1402_v4, 0.0  ;;  %v1300_v14 = vmax.f32 %v1296_v6, 0.0  ;;  %v1401_v15 = vadd.f32 %v6378_v9, %v1397_v51 }
 0x3a3   : > { %1202 = vadd.xlane.f32.xlu1 %v1201_v57  ;;  %1196 = vadd.xlane.f32.xlu0 %v1195_v63  ;;  %v1305_v16 = vsel %vm752_vm1, %v1301_v60, 0.0  ;;  %v1408_v18 = vmax.f32 %v1404_v10, 0.0  ;;  %v1512_v19 = vadd.f32 %v6378_v9, %v1508_v58  ;;  %v1510_v20 = vadd.f32 %v6378_v9, %v1506_v59 }
 0x3a4   : > { %v1204_v21 = vsel %vm752_vm1, %v1194_v12, 0.0  ;;  %v1410_v23 = vmul.f32 %v6391_v25, %v1406_v13  ;;  %v1304_v24 = vmul.f32 %v6391_v25, %v1300_v14  ;;  %v1405_v26 = vmax.f32 %v1401_v15, 0.0 }
 0x3a5   : > { %v1412_v27 = vmul.f32 %v6391_v25, %v1408_v18  ;;  %v1516_v29 = vmax.f32 %v1512_v19, 0.0  ;;  %v1514_v30 = vmax.f32 %v1510_v20, 0.0  ;;  %v1509_v35 = vadd.f32 %v6378_v9, %v1505_v62 }
 0x3a6   : > { %v1416_v36 = vsel %vm752_vm1, %v1410_v23, 0.0  ;;  %v1314_v37 = vsel %vm752_vm1, %v1304_v24, 0.0  ;;  %v1409_v38 = vmul.f32 %v6391_v25, %v1405_v26  ;;  %v1511_v39 = vadd.f32 %v6378_v9, %v1507_v11 }
 0x3a7   : > { %1420 = vadd.xlane.f32.xlu1 %v1419_v61  ;;  %1312 = vadd.xlane.f32.xlu0 %v1311_v7  ;;  %v1520_v40 = vmul.f32 %v6391_v25, %v1516_v29  ;;  %v1513_v41 = vmax.f32 %v1509_v35, 0.0  ;;  %v1422_v42 = vsel %vm752_vm1, %v1412_v27, 0.0  ;;  %v1518_v44 = vmul.f32 %v6391_v25, %v1514_v30 }
 0x3a8   : > { %v1413_v43 = vsel %vm752_vm1, %v1409_v38, 0.0  ;;  %v1515_v45 = vmax.f32 %v1511_v39, 0.0 }
 0x3a9   : > { %v1530_v48 = vsel %vm752_vm1, %v1520_v40, 0.0  ;;  %v1524_v49 = vsel %vm752_vm1, %v1518_v44, 0.0  ;;  %v1517_v50 = vmul.f32 %v6391_v25, %v1513_v41 }
 0x3aa   : > { %v1519_v51 = vmul.f32 %v6391_v25, %v1515_v45 }
 0x3ab   : > { %1306 = vadd.xlane.f32.xlu1 %v1305_v16  ;;  %1205 = vadd.xlane.f32.xlu0 %v1204_v21  ;;  %v1521_v57 = vsel %vm752_vm1, %v1517_v50, 0.0 }
 0x3ac   : > { %v1527_v58 = vsel %vm752_vm1, %v1519_v51, 0.0 }
 0x3af   : > { %1417 = vadd.xlane.f32.xlu1 %v1416_v36  ;;  %1315 = vadd.xlane.f32.xlu0 %v1314_v37 }
 0x3b3   : > { %1423 = vadd.xlane.f32.xlu1 %v1422_v42  ;;  %1414 = vadd.xlane.f32.xlu0 %v1413_v43 }
 0x3b7   : > { %1531 = vadd.xlane.f32.xlu1 %v1530_v48  ;;  %1525 = vadd.xlane.f32.xlu0 %v1524_v49 }
 0x3bb   : > { %1522 = vadd.xlane.f32.xlu1 %v1521_v57  ;;  %1528 = vadd.xlane.f32.xlu0 %v1527_v58 }
 0x42c   : > { %v1310_v59 = vpop.xlane.xlu0 %1309  ;;  %v1200_v62 = vpop.xlane.xlu1 %1199 }
 0x42d   : > { %v1323_v63 = vrot.slane %v1310_v59, 4  ;;  %v1213_v3 = vrot.slane %v1200_v62, 4 }
 0x42f   : > { %v1324_v4 = vmax.f32 %v1310_v59, %v1323_v63  ;;  %v1214_v6 = vmax.f32 %v1200_v62, %v1213_v3 }
 0x430   : > { %v1203_v60 = vpop.xlane.xlu1 %1202  ;;  %v1197_v61 = vpop.xlane.xlu0 %1196 }
 0x431   : > { %v1325_v7 = vrot.slane %v1324_v4, 2  ;;  %v1215_v10 = vrot.slane %v1214_v6, 2  ;;  %v1219_v11 = vrot.slane %v1203_v60, 4  ;;  %v1207_v12 = vrot.slane %v1197_v61, 4 }
 0x433   : > { %v1326_v13 = vmax.f32 %v1324_v4, %v1325_v7  ;;  %v1216_v14 = vmax.f32 %v1214_v6, %v1215_v10  ;;  %v1220_v15 = vmax.f32 %v1203_v60, %v1219_v11  ;;  %v1208_v16 = vmax.f32 %v1197_v61, %v1207_v12 }
 0x434   : > { %v6445_v18 = vpop.xlane.xlu1 %1420  ;;  %v6447_v19 = vpop.xlane.xlu0 %1312 }
 0x435   : > { %v1327_v20 = vrot.slane %v1326_v13, 1  ;;  %v1217_v21 = vrot.slane %v1216_v14, 1  ;;  %v1221_v23 = vrot.slane %v1220_v15, 2  ;;  %v1209_v24 = vrot.slane %v1208_v16, 2 }
 0x436   : > { %v1437_v26 = vrot.slane %v6445_v18, 4  ;;  %v1329_v27 = vrot.slane %v6447_v19, 4 }
 0x437   : > { %v1328_v29 = vmax.f32 %v1326_v13, %v1327_v20  ;;  %v1218_v30 = vmax.f32 %v1216_v14, %v1217_v21  ;;  %v1222_v35 = vmax.f32 %v1220_v15, %v1221_v23  ;;  %v1210_v36 = vmax.f32 %v1208_v16, %v1209_v24 }
 0x438   : > { %v1438_v37 = vmax.f32 %v6445_v18, %v1437_v26  ;;  %v1330_v38 = vmax.f32 %v6447_v19, %v1329_v27  ;;  %v6453_v39 = vpop.xlane.xlu1 %1306  ;;  %v6455_v40 = vpop.xlane.xlu0 %1205 }
 0x439   : > { %v1342_v41 = vsub.f32 %v1310_v59, %v1328_v29  ;;  %v1232_v42 = vsub.f32 %v1200_v62, %v1218_v30  ;;  %v1223_v43 = vrot.slane %v1222_v35, 1  ;;  %v1211_v44 = vrot.slane %v1210_v36, 1 }
 0x43a   : > { %v1439_v45 = vrot.slane %v1438_v37, 2  ;;  %v1331_v48 = vrot.slane %v1330_v38, 2  ;;  %v1317_v49 = vrot.slane %v6453_v39, 4  ;;  %v1225_v50 = vrot.slane %v6455_v40, 4 }
 0x43b   : > { %v1347_v51 = vmul.f32 1.442695, %v1342_v41  ;;  %v1237_v57 = vmul.f32 1.442695, %v1232_v42  ;;  %v1224_v58 = vmax.f32 %v1222_v35, %v1223_v43  ;;  %v1212_v63 = vmax.f32 %v1210_v36, %v1211_v44 }
 0x43c   : > { %v1440_v3 = vmax.f32 %v1438_v37, %v1439_v45  ;;  %v1332_v4 = vmax.f32 %v1330_v38, %v1331_v48  ;;  %v1318_v6 = vmax.f32 %v6453_v39, %v1317_v49  ;;  %v1226_v7 = vmax.f32 %v6455_v40, %v1225_v50  ;;  %v6461_v59 = vpop.xlane.xlu1 %1417  ;;  %v6463_v62 = vpop.xlane.xlu0 %1315 }
 0x43d   : > { %4939 = vpow2.f32 %v1347_v51  ;;  %v1233_v10 = vsub.f32 %v1203_v60, %v1224_v58  ;;  %v1231_v11 = vsub.f32 %v1197_v61, %v1212_v63  ;;  %v1431_v12 = vrot.slane %v6461_v59, 4 }
 0x43e   : > { %4941 = vpow2.f32 %v1237_v57  ;;  %v1441_v13 = vrot.slane %v1440_v3, 1  ;;  %v1333_v14 = vrot.slane %v1332_v4, 1  ;;  %v1319_v15 = vrot.slane %v1318_v6, 2 }
 0x43f   : > { %v1239_v16 = vmul.f32 1.442695, %v1233_v10  ;;  %v1235_v20 = vmul.f32 1.442695, %v1231_v11  ;;  %v1227_v21 = vrot.slane %v1226_v7, 2  ;;  %v1432_v23 = vmax.f32 %v6461_v59, %v1431_v12 }
 0x440   : > { %v1442_v24 = vmax.f32 %v1440_v3, %v1441_v13  ;;  %v1334_v26 = vmax.f32 %v1332_v4, %v1333_v14  ;;  %v1320_v27 = vmax.f32 %v1318_v6, %v1319_v15  ;;  %v1335_v29 = vrot.slane %v6463_v62, 4  ;;  %v6468_v30 = vpop.xlane.xlu1 %1423  ;;  %v6471_v36 = vpop.xlane.xlu0 %1414 }
 0x441   : > { %4943 = vpow2.f32 %v1239_v16  ;;  %v1228_v60 = vmax.f32 %v1226_v7, %v1227_v21  ;;  %v1433_v61 = vrot.slane %v1432_v23, 2  ;;  %v1443_v35 = vrot.slane %v6468_v30, 4 }
 0x442   : > { %4945 = vpow2.f32 %v1235_v20  ;;  %v1451_v37 = vsub.f32 %v6445_v18, %v1442_v24  ;;  %v1343_v38 = vsub.f32 %v6447_v19, %v1334_v26  ;;  %v1321_v41 = vrot.slane %v1320_v27, 1 }
 0x443   : > { %v1229_v42 = vrot.slane %v1228_v60, 1  ;;  %v1434_v43 = vmax.f32 %v1432_v23, %v1433_v61  ;;  %v1336_v44 = vmax.f32 %v6463_v62, %v1335_v29  ;;  %v1444_v45 = vmax.f32 %v6468_v30, %v1443_v35 }
 0x444   : > { %v1457_v48 = vmul.f32 1.442695, %v1451_v37  ;;  %v1349_v49 = vmul.f32 1.442695, %v1343_v38  ;;  %v1322_v50 = vmax.f32 %v1320_v27, %v1321_v41  ;;  %v1425_v51 = vrot.slane %v6471_v36, 4  ;;  %v6480_v4 = vpop.xlane.xlu1 %1531  ;;  %v6491_v27 = vpop.xlane.xlu0 %1525 }
 0x445   : > { %v1230_v57 = vmax.f32 %v1228_v60, %v1229_v42  ;;  %v1435_v58 = vrot.slane %v1434_v43, 1  ;;  %v1337_v63 = vrot.slane %v1336_v44, 2  ;;  %v1445_v3 = vrot.slane %v1444_v45, 2 }
 0x446   : > { %4947 = vpow2.f32 %v1457_v48  ;;  %v1341_v18 = vsub.f32 %v6453_v39, %v1322_v50  ;;  %v1426_v19 = vmax.f32 %v6471_v36, %v1425_v51 }
 0x447   : > { %v6482_v6 = vpop.eup %4939  ;;  %4949 = vpow2.f32 %v1349_v49  ;;  %v1234_v7 = vsub.f32 %v6455_v40, %v1230_v57  ;;  %v1436_v10 = vmax.f32 %v1434_v43, %v1435_v58  ;;  %v1338_v11 = vmax.f32 %v1336_v44, %v1337_v63 }
 0x448   : > { %v6485_v12 = vpop.eup %4941  ;;  %v1359_v13 = vrot.slane %v6482_v6, 4  ;;  %v1345_v14 = vmul.f32 1.442695, %v1341_v18  ;;  %v1446_v15 = vmax.f32 %v1444_v45, %v1445_v3  ;;  %v1427_v16 = vrot.slane %v1426_v19, 2  ;;  %v6501_v42 = vpop.xlane.xlu1 %1522 }
 0x449   : > { %v1249_v39 = vrot.slane %v6485_v12, 4  ;;  %v1241_v20 = vmul.f32 1.442695, %v1234_v7  ;;  %v1450_v21 = vsub.f32 %v6461_v59, %v1436_v10  ;;  %v1339_v23 = vrot.slane %v1338_v11, 1 }
 0x44a   : > { %4951 = vpow2.f32 %v1345_v14  ;;  %v1447_v24 = vrot.slane %v1446_v15, 1  ;;  %v1428_v26 = vmax.f32 %v1426_v19, %v1427_v16  ;;  %v1551_v40 = vrot.slane %v6480_v4, 4 }
 0x44b   : > { %v6493_v29 = vpop.eup %4943  ;;  %v6496_v60 = vadd.f32 %v6482_v6, %v1359_v13  ;;  %4953 = vpow2.f32 %v1241_v20  ;;  %v1455_v61 = vmul.f32 1.442695, %v1450_v21  ;;  %v1340_v35 = vmax.f32 %v1338_v11, %v1339_v23 }
 0x44c   : > { %v6498_v37 = vpop.eup %4945  ;;  %v1250_v59 = vadd.f32 %v6485_v12, %v1249_v39  ;;  %v1448_v38 = vmax.f32 %v1446_v15, %v1447_v24  ;;  %v1429_v41 = vrot.slane %v1428_v26, 1  ;;  %v1255_v43 = vrot.slane %v6493_v29, 4 }
 0x44d   : > { %v1243_v44 = vrot.slane %v6498_v37, 4  ;;  %4955 = vpow2.f32 %v1455_v61  ;;  %v1344_v45 = vsub.f32 %v6463_v62, %v1340_v35  ;;  %v1552_v50 = vmax.f32 %v6480_v4, %v1551_v40  ;;  %v6514_v62 = vpop.xlane.xlu0 %1528 }
 0x44e   : > { %v1452_v48 = vsub.f32 %v6468_v30, %v1448_v38  ;;  %v1430_v49 = vmax.f32 %v1428_v26, %v1429_v41  ;;  %v1361_v51 = vrot.slane %v6496_v60, 2  ;;  %v1539_v58 = vrot.slane %v6491_v27, 4 }
 0x44f   : > { %v1351_v57 = vmul.f32 1.442695, %v1344_v45  ;;  %v1533_v63 = vrot.slane %v6501_v42, 4  ;;  %v1251_v18 = vrot.slane %v1250_v59, 2  ;;  %v1553_v10 = vrot.slane %v1552_v50, 2 }
 0x450   : > { %v6511_v3 = vpop.eup %4947  ;;  %v1459_v19 = vmul.f32 1.442695, %v1452_v48  ;;  %v1449_v7 = vsub.f32 %v6471_v36, %v1430_v49  ;;  %v6519_v11 = vadd.f32 %v6493_v29, %v1255_v43  ;;  %v1244_v13 = vadd.f32 %v6498_v37, %v1243_v44 }
 0x451   : > { %v6516_v30 = vpop.eup %4949  ;;  %4957 = vpow2.f32 %v1351_v57  ;;  %v1540_v14 = vmax.f32 %v6491_v27, %v1539_v58  ;;  %v1473_v15 = vrot.slane %v6511_v3, 4  ;;  %v1554_v20 = vmax.f32 %v1552_v50, %v1553_v10 }
 0x452   : > { %v1365_v16 = vrot.slane %v6516_v30, 4  ;;  %v1453_v39 = vmul.f32 1.442695, %v1449_v7  ;;  %4959 = vpow2.f32 %v1459_v19  ;;  %v1534_v21 = vmax.f32 %v6501_v42, %v1533_v63 }
 0x453   : > { %v1541_v36 = vrot.slane %v1540_v14, 2  ;;  %v1545_v23 = vrot.slane %v6514_v62, 4  ;;  %v1555_v40 = vrot.slane %v1554_v20, 1  ;;  %v1252_v61 = vadd.f32 %v1251_v18, %v1250_v59 }
 0x454   : > { %v6527_v24 = vpop.eup %4951  ;;  %v6530_v26 = vadd.f32 %v6516_v30, %v1365_v16  ;;  %4961 = vpow2.f32 %v1453_v39  ;;  %v1535_v43 = vrot.slane %v1534_v21, 2  ;;  %v1257_v45 = vrot.slane %v6519_v11, 2 }
 0x455   : > { %v6532_v35 = vpop.eup %4953  ;;  %v1353_v38 = vrot.slane %v6527_v24, 4  ;;  %v1542_v41 = vmax.f32 %v1540_v14, %v1541_v36  ;;  %v1546_v44 = vmax.f32 %v6514_v62, %v1545_v23  ;;  %v1556_v49 = vmax.f32 %v1554_v20, %v1555_v40 }
 0x456   : > { %v1261_v48 = vrot.slane %v6532_v35, 4  ;;  %v1253_v50 = vrot.slane %v1252_v61, 1  ;;  %v1245_v58 = vrot.slane %v1244_v13, 2  ;;  %v1536_v19 = vmax.f32 %v1534_v21, %v1535_v43 }
 0x457   : > { %v6538_v57 = vpop.eup %4955  ;;  %v1543_v63 = vrot.slane %v1542_v41, 1  ;;  %v1547_v59 = vrot.slane %v1546_v44, 2  ;;  %v1474_v18 = vadd.f32 %v6511_v3, %v1473_v15  ;;  %v1367_v7 = vrot.slane %v6530_v26, 2 }
 0x458   : > { %v1467_v10 = vrot.slane %v6538_v57, 4  ;;  %v1560_v14 = vsub.f32 %v6480_v4, %v1556_v49  ;;  %v1354_v16 = vadd.f32 %v6527_v24, %v1353_v38  ;;  %v1537_v36 = vrot.slane %v1536_v19, 1 }
 0x459   : > { %v1544_v39 = vmax.f32 %v1542_v41, %v1543_v63  ;;  %v1548_v20 = vmax.f32 %v1546_v44, %v1547_v59  ;;  %v1262_v23 = vadd.f32 %v6532_v35, %v1261_v48  ;;  %v1254_v21 = vadd.f32 %v1253_v50, %v1252_v61 }
 0x45a   : > { %v1468_v40 = vadd.f32 %v6538_v57, %v1467_v10  ;;  %v1567_v1 = vmul.f32 1.442695, %v1560_v14  ;;  %v1538_v0 = vmax.f32 %v1536_v19, %v1537_v36  ;;  %v1362_v17 = vadd.f32 %v1361_v51, %v6496_v60 }
 0x45b   : > { %v6547_v43 = vpop.eup %4957  ;;  %v1558_v15 = vsub.f32 %v6491_v27, %v1544_v39  ;;  %v1549_v46 = vrot.slane %v1548_v20, 1  ;;  %v1246_v41 = vadd.f32 %v1245_v58, %v1244_v13  ;;  %v1355_v48 = vrot.slane %v1354_v16, 2 }
 0x45c   : > { %v1371_v4 = vrot.slane %v6547_v43, 4  ;;  %4963 = vpow2.f32 %v1567_v1  ;;  %v1469_v38 = vrot.slane %v1468_v40, 2  ;;  %v6552_v44 = vpop.eup %4959  ;;  %v1557_v63 = vsub.f32 %v6501_v42, %v1538_v0 }
 0x45d   : > { %v1563_v49 = vmul.f32 1.442695, %v1558_v15  ;;  %v1550_v61 = vmax.f32 %v1548_v20, %v1549_v46  ;;  %v1363_v19 = vrot.slane %v1362_v17, 1  ;;  %v1247_v10 = vrot.slane %v1246_v41, 1 }
 0x45e   : > { %v6555_v50 = vpop.eup %4961  ;;  %v1372_v27 = vadd.f32 %v6547_v43, %v1371_v4  ;;  %v1470_v59 = vadd.f32 %v1469_v38, %v1468_v40  ;;  %v1263_v60 = vrot.slane %v1262_v23, 2  ;;  %v1561_v1 = vmul.f32 1.442695, %v1557_v63 }
 0x45f   : > { %v1461_v51 = vrot.slane %v6555_v50, 4  ;;  %4965 = vpow2.f32 %v1563_v49  ;;  %v1479_v13 = vrot.slane %v6552_v44, 4  ;;  %v1559_v58 = vsub.f32 %v6514_v62, %v1550_v61 }
 0x460   : > { %4967 = vrcp.f32 %v1254_v21  ;;  %v1471_v14 = vrot.slane %v1470_v59, 1  ;;  %v1364_v46 = vadd.f32 %v1363_v19, %v1362_v17  ;;  %v1356_v42 = vadd.f32 %v1355_v48, %v1354_v16 }
 0x461   : > { %v1462_v0 = vadd.f32 %v6555_v50, %v1461_v51  ;;  %4969 = vpow2.f32 %v1561_v1  ;;  %v1373_v39 = vrot.slane %v1372_v27, 2  ;;  %v1565_v36 = vmul.f32 1.442695, %v1559_v58 }
 0x462   : > { %v1248_v20 = vadd.f32 %v1247_v10, %v1246_v41  ;;  %v1258_v40 = vadd.f32 %v1257_v45, %v6519_v11  ;;  %v1472_v15 = vadd.f32 %v1471_v14, %v1470_v59  ;;  %v1357_v4 = vrot.slane %v1356_v42, 1 }
 0x463   : > { %v1463_v38 = vrot.slane %v1462_v0, 2  ;;  %v1368_v49 = vadd.f32 %v1367_v7, %v6530_v26  ;;  %4971 = vpow2.f32 %v1565_v36  ;;  %v1475_v62 = vrot.slane %v1474_v18, 2 }
 0x464   : > { %v1259_v63 = vrot.slane %v1258_v40, 1  ;;  %v1264_v21 = vadd.f32 %v1263_v60, %v1262_v23  ;;  %v1480_v61 = vadd.f32 %v6552_v44, %v1479_v13  ;;  %4973 = vrcp.f32 %v1364_v46 }
 0x465   : > { %v1358_v17 = vadd.f32 %v1357_v4, %v1356_v42  ;;  %v1464_v16 = vadd.f32 %v1463_v38, %v1462_v0  ;;  %v1369_v48 = vrot.slane %v1368_v49, 1  ;;  %v1476_v41 = vadd.f32 %v1475_v62, %v1474_v18 }
 0x466   : > { %v6565_v51 = vpop.eup %4963  ;;  %4975 = vrcp.f32 %v1248_v20  ;;  %v1265_v45 = vrot.slane %v1264_v21, 1  ;;  %v1374_v19 = vadd.f32 %v1373_v39, %v1372_v27  ;;  %v1260_v26 = vadd.f32 %v1259_v63, %v1258_v40 }
 0x467   : > { %v1587_v11 = vrot.slane %v6565_v51, 4  ;;  %4977 = vrcp.f32 %v1472_v15  ;;  %v1477_v7 = vrot.slane %v1476_v41, 1  ;;  %v1370_v23 = vadd.f32 %v1369_v48, %v1368_v49 }
 0x468   : > { %v1375_v10 = vrot.slane %v1374_v19, 1  ;;  %v1481_v60 = vrot.slane %v1480_v61, 2  ;;  %4979 = vrcp.f32 %v1358_v17  ;;  %v1465_v18 = vrot.slane %v1464_v16, 1 }
 0x469   : > { %v6568_v59 = vpop.eup %4965  ;;  %v1588_v1 = vadd.f32 %v6565_v51, %v1587_v11  ;;  %v1266_v0 = vadd.f32 %v1265_v45, %v1264_v21  ;;  %4981 = vrcp.f32 %v1260_v26  ;;  %v1478_v20 = vadd.f32 %v1477_v7, %v1476_v41 }
 0x46a   : > { %v6571_v13 = vpop.eup %4967  ;;  %v1575_v58 = vrot.slane %v6568_v59, 4  ;;  %v1376_v27 = vadd.f32 %v1375_v10, %v1374_v19  ;;  %v1482_v46 = vadd.f32 %v1481_v60, %v1480_v61  ;;  %4983 = vrcp.f32 %v1370_v23 }
 0x46b   : > { %v6574_v14 = vpop.eup %4969  ;;  %v1589_v42 = vrot.slane %v1588_v1, 2  ;;  %v1466_v49 = vadd.f32 %v1465_v18, %v1464_v16 }
 0x46c   : > { %v1569_v39 = vrot.slane %v6574_v14, 4  ;;  %v1576_v36 = vadd.f32 %v6568_v59, %v1575_v58  ;;  %v1483_v40 = vrot.slane %v1482_v46, 1  ;;  %4985 = vrcp.f32 %v1376_v27 }
 0x46d   : > { %v1590_v15 = vadd.f32 %v1589_v42, %v1588_v1  ;;  %v6578_v4 = vpop.eup %4971  ;;  %4987 = vrcp.f32 %v1266_v0 }
 0x46e   : > { %v1577_v38 = vrot.slane %v1576_v36, 2  ;;  %v1570_v63 = vadd.f32 %v6574_v14, %v1569_v39  ;;  %v4974_v62 = vpop.eup %4973  ;;  %v1581_v21 = vrot.slane %v6578_v4, 4  ;;  %v1484_v61 = vadd.f32 %v1483_v40, %v1482_v46 }
 0x46f   : > { %v1591_v17 = vrot.slane %v1590_v15, 1  ;;  %4989 = vrcp.f32 %v1478_v20  ;;  %v1382_v46 = vmul.f32 %v4974_v62, %v6482_v6  ;;  %v1272_v6 = vmul.f32 %v6571_v13, %v6485_v12 }
 0x470   : > { %v1578_v48 = vadd.f32 %v1577_v38, %v1576_v36  ;;  %v1571_v11 = vrot.slane %v1570_v63, 2  ;;  %v4976_v41 = vpop.eup %4975  ;;  %v1582_v45 = vadd.f32 %v6578_v4, %v1581_v21  ;;  %4991 = vrcp.f32 %v1484_v61 }
 0x471   : > { %v1592_v19 = vadd.f32 %v1591_v17, %v1590_v15  ;;  %v4978_v26 = vpop.eup %4977  ;;  %4993 = vrcp.f32 %v1466_v49  ;;  %v1386_v49 = vmul.f32 0.0, %v1382_v46 }
 0x472   : > { %v1579_v7 = vrot.slane %v1578_v48, 1  ;;  %v1572_v16 = vadd.f32 %v1571_v11, %v1570_v63  ;;  %v1583_v23 = vrot.slane %v1582_v45, 2  ;;  %v4980_v10 = vpop.eup %4979  ;;  %v1271_v63 = vmul.f32 %v4976_v41, %v6498_v37 }
 0x473   : > { %4995 = vrcp.f32 %v1592_v19  ;;  %v4982_v18 = vpop.eup %4981  ;;  %v1490_v62 = vmul.f32 %v4978_v26, %v6538_v57  ;;  %v1381_v11 = vmul.f32 %v4980_v10, %v6527_v24  ;;  %v1390_v41 = vadd.f32 %v1386_v49, %v1272_v6 }
 0x474   : > { %v1580_v60 = vadd.f32 %v1579_v7, %v1578_v48  ;;  %v1573_v1 = vrot.slane %v1572_v16, 1  ;;  %v1584_v58 = vadd.f32 %v1583_v23, %v1582_v45  ;;  %v4984_v27 = vpop.eup %4983  ;;  %v1277_v7 = vmul.f32 0.0, %v1271_v63 }
 0x475   : > { %v1498_v13 = vadd.f32 %v1490_v62, %v1390_v41 }
 0x476   : > { %4997 = vrcp.f32 %v1580_v60  ;;  %v1574_v0 = vadd.f32 %v1573_v1, %v1572_v16  ;;  %v1585_v42 = vrot.slane %v1584_v58, 1  ;;  %v4986_v39 = vpop.eup %4985  ;;  %v1273_v16 = vmul.f32 %v4982_v18, %v6493_v29 }
 0x477   : > { %v4988_v36 = vpop.eup %4987  ;;  %v1384_v15 = vmul.f32 %v4986_v39, %v6547_v43  ;;  %v1383_v43 = vmul.f32 %v4984_v27, %v6516_v30  ;;  %v1389_v24 = vadd.f32 %v1381_v11, %v1277_v7  ;;  %v6611_v18 = vrot.slane %v6360_v53, %v6366_v56 }
 0x478   : > { %4999 = vrcp.f32 %v1574_v0  ;;  %v1586_v20 = vadd.f32 %v1585_v42, %v1584_v58  ;;  %v1274_v61 = vmul.f32 %v4988_v36, %v6532_v35  ;;  %v1640_v27 = vcombine.high %v6358_v52, %v6358_v52 }
 0x479   : > { %v4990_v40 = vpop.eup %4989  ;;  %v1391_v30 = vadd.f32 %v1383_v43, %v1273_v16  ;;  %v6623_v39 = vrot.slane %v6358_v52, %v6366_v56  ;;  %v1763_v52 = vadd.f32 %v6378_v9, %v6372_v2 }
 0x47a   : > { %v4992_v38 = vpop.eup %4991  ;;  %5001 = vrcp.f32 %v1586_v20  ;;  %v1491_v45 = vmul.f32 %v4990_v40, %v6511_v3  ;;  %v1392_v19 = vadd.f32 %v1384_v15, %v1274_v61  ;;  %v1641_v3 = vcombine.high %v6360_v53, %v6360_v53 }
 0x47b   : > { %v4994_v21 = vpop.eup %4993  ;;  %v1492_v17 = vmul.f32 %v4992_v38, %v6552_v44  ;;  %v6636_v49 = vrot.slane %v1640_v27, %v6366_v56  ;;  %v1764_v11 = vmax.f32 %v1763_v52, 0.0 }
 0x47c   : > { %v1489_v35 = vmul.f32 %v4994_v21, %v6555_v50  ;;  %v1495_v10 = vmul.f32 0.0, %v1491_v45 }
 0x47d   : > { %v4996_v48 = vpop.eup %4995  ;;  %v1500_v23 = vadd.f32 %v1492_v17, %v1392_v19  ;;  %v1765_v7 = vmul.f32 %v6391_v25, %v1764_v11 }
 0x47e   : > { %v1600_v37 = vmul.f32 %v4996_v48, %v6565_v51  ;;  %v1497_v50 = vadd.f32 %v1489_v35, %v1389_v24  ;;  %v1499_v46 = vadd.f32 %v1495_v10, %v1391_v30 }
 0x480   : > { %v4998_v44 = vpop.eup %4997  ;;  %v1604_v12 = vmul.f32 0.0, %v1600_v37 }
 0x481   : > { %v1598_v57 = vmul.f32 %v4998_v44, %v6568_v59 }
 0x482   : > { %v5000_v26 = vpop.eup %4999  ;;  %v6600_v51 = vadd.f32 %v1604_v12, %v1500_v23  ;;  %v5719_v23 = vmov 0  }
 0x483   : > { %v6602_v60 = vadd.f32 %v1598_v57, %v1498_v13  ;;  %v1597_v1 = vmul.f32 %v5000_v26, %v6574_v14  ;;  %v6619_v14 = vrot.slane %v1641_v3, %v6366_v56  ;;  %4937 = vset.pattern.permute.xlu0 %v5719_v23  ;;  %4938 = vset.pattern.permute.xlu1 %v5719_v23 }
 0x484   : > { %v1616_v29 = vmul.f32 %v6325_v33, %v6600_v51  ;;  %v5002_v58 = vpop.eup %5001 }
 0x485   : > { %v1614_v59 = vmul.f32 %v6321_v31, %v6602_v60  ;;  %v6613_v0 = vadd.f32 %v1597_v1, %v1497_v50  ;;  %v1599_v42 = vmul.f32 %v5002_v58, %v6578_v4 }
 0x486   : > { %v1665_v40 = vadd.f32 %v6619_v14, %v1616_v29 }
 0x487   : > { %v1663_v36 = vadd.f32 %v6611_v18, %v1614_v59  ;;  %v1613_v53 = vmul.f32 %v6613_v0, %v6323_v32  ;;  %v6628_v20 = vadd.f32 %v1599_v42, %v1499_v46 }
 0x488   : > { %v1669_v17 = vadd.f32 %v6378_v9, %v1665_v40 }
 0x489   : > { %v1667_v15 = vadd.f32 %v6378_v9, %v1663_v36  ;;  %v1662_v4 = vadd.f32 %v6623_v39, %v1613_v53  ;;  %v1615_v38 = vmul.f32 %v6628_v20, %v6327_v34 }
 0x48a   : > { %v1673_v2 = vmax.f32 %v1669_v17, 0.0 }
 0x48b   : > { %v1671_v63 = vmax.f32 %v1667_v15, 0.0  ;;  %v1666_v21 = vadd.f32 %v6378_v9, %v1662_v4  ;;  %v1664_v61 = vadd.f32 %v6636_v49, %v1615_v38 }
 0x48c   : > { %v1677_v44 = vmul.f32 %v6391_v25, %v1673_v2 }
 0x48d   : > { %v1675_v48 = vmul.f32 %v6391_v25, %v1671_v63  ;;  %v1670_v6 = vmax.f32 %v1666_v21, 0.0  ;;  %v1668_v62 = vadd.f32 %v6378_v9, %v1664_v61  ;;  %v1767_v9 = vsel %vm1766_vm2, %v1765_v7, 0.0 }
 0x48e   : > { %v1687_v16 = vsel %vm752_vm1, %v1677_v44, 0.0 }
 0x48f   : > { %v1681_v43 = vsel %vm752_vm1, %v1675_v48, 0.0  ;;  %v1674_v45 = vmul.f32 %v6391_v25, %v1670_v6  ;;  %v1672_v19 = vmax.f32 %v1668_v62, 0.0 }
 0x490   : > { %1682 = vadd.xlane.f32.xlu0 %v1681_v43 }
 0x491   : > { %v1678_v37 = vsel %vm752_vm1, %v1674_v45, 0.0  ;;  %v1676_v41 = vmul.f32 %v6391_v25, %v1672_v19 }
 0x493   : > { %v1684_v35 = vsel %vm752_vm1, %v1676_v41, 0.0 }
 0x494   : > { %1679 = vadd.xlane.f32.xlu0 %v1678_v37  ;;  %1685 = vadd.xlane.f32.xlu1 %v1684_v35 }
 0x498   : > { %1768 = vadd.xlane.f32.xlu0 %v1767_v9  ;;  %1688 = vadd.xlane.f32.xlu1 %v1687_v16 }
 0x51d   : > { %v1683_v12 = vpop.xlane.xlu0 %1682 }
 0x51e   : > { %v1776_v13 = vrot.slane %v1683_v12, 4 }
 0x520   : > { %v1777_v57 = vmax.f32 %v1683_v12, %v1776_v13 }
 0x521   : > { %v1680_v24 = vpop.xlane.xlu0 %1679  ;;  %v1686_v3 = vpop.xlane.xlu1 %1685 }
 0x522   : > { %v1778_v26 = vrot.slane %v1777_v57, 2  ;;  %v1770_v30 = vrot.slane %v1680_v24, 4  ;;  %v1782_v10 = vrot.slane %v1686_v3, 4 }
 0x524   : > { %v1779_v25 = vmax.f32 %v1777_v57, %v1778_v26  ;;  %v1771_v50 = vmax.f32 %v1680_v24, %v1770_v30  ;;  %v1783_v1 = vmax.f32 %v1686_v3, %v1782_v10 }
 0x525   : > { %v1769_v29 = vpop.xlane.xlu0 %1768  ;;  %v1689_v27 = vpop.xlane.xlu1 %1688 }
 0x526   : > { %v1780_v58 = vrot.slane %v1779_v25, 1  ;;  %v1772_v59 = vrot.slane %v1771_v50, 2  ;;  %v1784_v46 = vrot.slane %v1783_v1, 2  ;;  %v1788_v42 = vrot.slane %v1689_v27, 4 }
 0x527   : > { %v1795_v40 = vrot.slane %v1769_v29, 1  ;;  %v1796_v62 = vrot.slane %v1769_v29, 2  ;;  %v1797_v7 = vrot.slane %v1769_v29, 3 }
 0x528   : > { %v1781_v36 = vmax.f32 %v1779_v25, %v1780_v58  ;;  %v1773_v53 = vmax.f32 %v1771_v50, %v1772_v59  ;;  %v1785_v15 = vmax.f32 %v1783_v1, %v1784_v46  ;;  %v1789_v4 = vmax.f32 %v1689_v27, %v1788_v42 }
 0x52a   : > { %v1774_v38 = vrot.slane %v1773_v53, 1  ;;  %v1803_v52 = vmax.f32 %v1781_v36, %v1795_v40  ;;  %v1786_v63 = vrot.slane %v1785_v15, 1  ;;  %v1790_v21 = vrot.slane %v1789_v4, 2 }
 0x52c   : > { %v1775_v61 = vmax.f32 %v1773_v53, %v1774_v38  ;;  %v1813_v17 = vrot.slane %v1803_v52, %v6366_v56  ;;  %v1787_v48 = vmax.f32 %v1785_v15, %v1786_v63  ;;  %v1791_v6 = vmax.f32 %v1789_v4, %v1790_v21 }
 0x52d   : > { %v1838_v44 = vrot.slane %v1803_v52, 7 }
 0x52e   : > { %v1802_v11 = vmax.f32 %v1775_v61, %v1769_v29  ;;  %v1823_v43 = vsub.f32 %v1683_v12, %v1813_v17  ;;  %v1792_v45 = vrot.slane %v1791_v6, 1  ;;  %v1804_v19 = vmax.f32 %v1787_v48, %v1796_v62 }
 0x530   : > { %v1809_v2 = vrot.slane %v1802_v11, %v6366_v56  ;;  %v1828_v37 = vmul.f32 1.442695, %v1823_v43  ;;  %v1793_v41 = vmax.f32 %v1791_v6, %v1792_v45  ;;  %v1817_v35 = vrot.slane %v1804_v19, %v6366_v56 }
 0x531   : > { %v1841_v16 = vrot.slane %v1804_v19, 6  ;;  %v1840_v57 = vsel %vm1839_vm3, %v1838_v44, %v1802_v11 }
 0x532   : > { %v1822_v9 = vsub.f32 %v1680_v24, %v1809_v2  ;;  %5003 = vpow2.f32 %v1828_v37  ;;  %v1805_v23 = vmax.f32 %v1793_v41, %v1797_v7  ;;  %v1824_v13 = vsub.f32 %v1686_v3, %v1817_v35 }
 0x533   : > { %v1843_v25 = vsel %vm1842_vm4, %v1841_v16, %v1840_v57 }
 0x534   : > { %v1826_v12 = vmul.f32 1.442695, %v1822_v9  ;;  %v1821_v26 = vrot.slane %v1805_v23, %v6366_v56  ;;  %v1830_v30 = vmul.f32 1.442695, %v1824_v13  ;;  %v1844_v10 = vrot.slane %v1805_v23, 5 }
 0x536   : > { %5005 = vpow2.f32 %v1826_v12  ;;  %v1825_v50 = vsub.f32 %v1689_v27, %v1821_v26  ;;  %v1846_v24 = vsel %vm1845_vm5, %v1844_v10, %v1843_v25 }
 0x537   : > { %5007 = vpow2.f32 %v1830_v30  ;;  %v1848_v1 = vsub.f32 %v1769_v29, %v1846_v24 }
 0x538   : > { %v1832_v58 = vmul.f32 1.442695, %v1825_v50 }
 0x539   : > { %v1849_v3 = vmul.f32 1.442695, %v1848_v1 }
 0x53a   : > { %5009 = vpow2.f32 %v1832_v58 }
 0x53b   : > { %5011 = vpow2.f32 %v1849_v3 }
 0x53c   : > { %v5004_v59 = vpop.eup %5003 }
 0x53d   : > { %v1859_v46 = vsel %vm1851_vm6, %v5004_v59, 0.0 }
 0x53e   : > { %v1860_v42 = vrot.slane %v1859_v46, 4 }
 0x540   : > { %v5006_v36 = vpop.eup %5005  ;;  %v1861_v53 = vadd.f32 %v1860_v42, %v1859_v46  ;;  %v1990_v46 = vld [vmem:[%s7517_s3 + $0x8] sm:$0xff] }
 0x541   : > { %v5008_v40 = vpop.eup %5007  ;;  %v1852_v15 = vsel %vm1851_vm6, %v5006_v36, 0.0 }
 0x542   : > { %v1853_v4 = vrot.slane %v1852_v15, 4  ;;  %v1862_v27 = vrot.slane %v1861_v53, 2  ;;  %v1866_v38 = vsel %vm1851_vm6, %v5008_v40, 0.0  ;;  %1908 = vperm.xlu0 %4937, %v5008_v40   ;;  %v1992_v40 = vld [vmem:[%s7517_s3 + $0x18] sm:$0xff] }
 0x543   : > { %v1867_v29 = vrot.slane %v1866_v38, 4 }
 0x544   : > { %v1854_v52 = vadd.f32 %v1853_v4, %v1852_v15  ;;  %v5010_v63 = vpop.eup %5009  ;;  %v1863_v61 = vadd.f32 %v1862_v27, %v1861_v53  ;;  %v1991_v53 = vld [vmem:[%s7517_s3 + $0x10] sm:$0xff] }
 0x545   : > { %v1868_v21 = vadd.f32 %v1867_v29, %v1866_v38  ;;  %v1873_v48 = vsel %vm1851_vm6, %v5010_v63, 0.0  ;;  %1913 = vperm.xlu1 %4938, %v5010_v63   ;;  %v5012_v11 = vpop.eup %5011  ;;  %v6681_v15 = vpack.c.bf16 %v1992_v40, %v1991_v53  ;;  %v5185_v4 = vld [vmem:[%s6227_s1 + $0x10] sm:$0xff] }
 0x546   : > { %v1855_v17 = vrot.slane %v1854_v52, 2  ;;  %v1874_v62 = vrot.slane %v1873_v48, 4  ;;  %v1864_v2 = vrot.slane %v1863_v61, 1  ;;  %v1882_v7 = vrot.slane %v5012_v11, 2 }
 0x547   : > { %v1869_v6 = vrot.slane %v1868_v21, 2  ;;  %v1881_v13 = vrot.slane %v5012_v11, 1  ;;  %v1883_v25 = vrot.slane %v5012_v11, 3  ;;  %7520 = vst [vmem:[#allocation42_spill] sm:$0xff] %v6681_v15  ;;  %v1611_v27 = vmul.f32 %v5185_v4, %v6628_v20  ;;  %v5188_v20 = vld [vmem:[%s6227_s1] sm:$0xff] }
 0x548   : > { %v1856_v43 = vadd.f32 %v1855_v17, %v1854_v52  ;;  %v1875_v45 = vadd.f32 %v1874_v62, %v1873_v48  ;;  %v1865_v44 = vadd.f32 %v1864_v2, %v1863_v61  ;;  %v5186_v52 = vld [vmem:[%s6227_s1 + $0x18] sm:$0xff]  ;;  %v5187_v48 = vld [vmem:[%s6227_s1 + $0x8] sm:$0xff]  ;;  %v1609_v2 = vmul.f32 %v5188_v20, %v6613_v0 }
 0x549   : > { %v1870_v19 = vadd.f32 %v1869_v6, %v1868_v21  ;;  %1903 = vperm.xlu1 %4938, %v5004_v59   ;;  %v1989_v59 = vld [vmem:[%s7517_s3] sm:$0xff]  ;;  %v1612_v63 = vmul.f32 %v5186_v52, %v6600_v51  ;;  %v1610_v6 = vmul.f32 %v5187_v48, %v6602_v60 }
 0x54a   : > { %v1876_v37 = vrot.slane %v1875_v45, 2  ;;  %v1857_v9 = vrot.slane %v1856_v43, 1  ;;  %v1889_v57 = vadd.f32 %v1881_v13, %v1865_v44  ;;  %v6671_v42 = vpack.c.bf16 %v1990_v46, %v1989_v59 }
 0x54b   : > { %v1871_v41 = vrot.slane %v1870_v19, 1 }
 0x54c   : > { %v1877_v16 = vadd.f32 %v1876_v37, %v1875_v45  ;;  %v1858_v12 = vadd.f32 %v1857_v9, %v1856_v43  ;;  %7518 = vst [vmem:[#allocation41_spill] sm:$0xff] %v6671_v42  ;;  %4700 = vmatpush3.bf16.msra.mxu0 %v6671_v42 }
 0x54d   : > { %v1872_v35 = vadd.f32 %v1871_v41, %v1870_v19  ;;  %1898 = vperm.xlu1 %4938, %v5006_v36   ;;  %v7519_v36 = vmov 0.0|0.0  }
 0x54e   : > { %v1878_v26 = vrot.slane %v1877_v16, 1  ;;  %v1888_v30 = vadd.f32 %v5012_v11, %v1858_v12  ;;  %4701 = vmatprep.subr.bf16.mxu0 %v7519_v36 }
 0x54f   : > { %v1890_v23 = vadd.f32 %v1882_v7, %v1872_v35 }
 0x550   : > { %v1879_v10 = vadd.f32 %v1878_v26, %v1877_v16  ;;  %4703 = vmatpush3.bf16.msra.mxu0 %v6681_v15 }
 0x551   : > { %5013 = vrcp.f32 %v1890_v23  ;;  %1949 = vperm.xlu1 %4938, %v5012_v11   ;;  %4710 = vmatprep.subr.bf16.mxu0 %v7519_v36 }
 0x552   : > { %5015 = vrcp.f32 %v1889_v57  ;;  %v1891_v50 = vadd.f32 %v1883_v25, %v1879_v10 }
 0x553   : > { %5017 = vrcp.f32 %v1888_v30 }
 0x554   : > { %5019 = vrcp.f32 %v1891_v50 }
 0x55b   : > { %v5014_v24 = vpop.eup %5013 }
 0x55c   : > { %1977 = vperm.xlu1 %4938, %v5014_v24   ;;  %v5016_v1 = vpop.eup %5015 }
 0x55d   : > { %v5018_v58 = vpop.eup %5017 }
 0x55e   : > { %v5020_v3 = vpop.eup %5019 }
 0x560   : > { %1972 = vperm.xlu1 %4938, %v5016_v1  }
 0x564   : > { %1967 = vperm.xlu1 %4938, %v5018_v58  }
 0x568   : > { %1982 = vperm.xlu1 %4938, %v5020_v3  }
 0x5c1   : > { %v1909_v38 = vpop.permute.xlu0 %1908 }
 0x5c2   : > { %v1918_v29 = vmul.f32 %v1909_v38, %v1611_v27 }
 0x5c4   : > { %v1914_v21 = vpop.permute.xlu1 %1913  ;;  %v1934_v61 = vsel %vm752_vm1, %v1918_v29, 0.0 }
 0x5c5   : > { %v1919_v17 = vmul.f32 %v1914_v21, %v1612_v63  ;;  %v1935_v62 = vrot.slane %v1934_v61, 4 }
 0x5c7   : > { %v1941_v45 = vsel %vm752_vm1, %v1919_v17, 0.0  ;;  %v1936_v37 = vadd.f32 %v1935_v62, %v1934_v61 }
 0x5c8   : > { %v1904_v11 = vpop.permute.xlu1 %1903  ;;  %v1942_v7 = vrot.slane %v1941_v45, 4 }
 0x5c9   : > { %v1917_v43 = vmul.f32 %v1904_v11, %v1610_v6  ;;  %v1937_v16 = vrot.slane %v1936_v37, 2 }
 0x5ca   : > { %v1943_v13 = vadd.f32 %v1942_v7, %v1941_v45 }
 0x5cb   : > { %v1927_v19 = vsel %vm752_vm1, %v1917_v43, 0.0  ;;  %v1938_v30 = vadd.f32 %v1937_v16, %v1936_v37 }
 0x5cc   : > { %v1928_v41 = vrot.slane %v1927_v19, 4  ;;  %v1899_v51 = vpop.permute.xlu1 %1898  ;;  %v1944_v25 = vrot.slane %v1943_v13, 2 }
 0x5cd   : > { %v1916_v35 = vmul.f32 %v1899_v51, %v1609_v2  ;;  %v1939_v1 = vrot.slane %v1938_v30, 1 }
 0x5ce   : > { %v1929_v44 = vadd.f32 %v1928_v41, %v1927_v19  ;;  %v1945_v58 = vadd.f32 %v1944_v25, %v1943_v13 }
 0x5cf   : > { %v1920_v9 = vsel %vm752_vm1, %v1916_v35, 0.0  ;;  %v1940_v4 = vadd.f32 %v1939_v1, %v1938_v30  ;;  %v7521_v35 = vmov 0.0  }
 0x5d0   : > { %v1930_v60 = vrot.slane %v1929_v44, 2  ;;  %v1921_v23 = vrot.slane %v1920_v9, 4  ;;  %v1950_v26 = vpop.permute.xlu1 %1949  ;;  %v1946_v29 = vrot.slane %v1945_v58, 1 }
 0x5d1   : > { %v1952_v24 = vmul.f32 0.0, %v1950_v26 }
 0x5d2   : > { %v1931_v57 = vadd.f32 %v1930_v60, %v1929_v44  ;;  %v1922_v12 = vadd.f32 %v1921_v23, %v1920_v9  ;;  %v1947_v48 = vadd.f32 %v1946_v29, %v1945_v58  ;;  %v4381_v44 = vld [vmem:[#allocation16] ss:$0 sm:$0xff]  ;;  %v4385_v9 = vld [vmem:[#allocation17] ss:$0 sm:$0xff] }
 0x5d3   : > { %v1955_v46 = vrot.slane %v1952_v24, 2  ;;  %v1954_v40 = vrot.slane %v1952_v24, 1  ;;  %v1956_v6 = vrot.slane %v1952_v24, 3  ;;  %v1086_v16 = vadd.f32 %v4381_v44, %v6355_v47 }
 0x5d4   : > { %v1923_v10 = vrot.slane %v1922_v12, 2  ;;  %v1932_v50 = vrot.slane %v1931_v57, 1 }
 0x5d5   : > { %v1963_v52 = vadd.f32 %v1955_v46, %v1940_v4  ;;  %v1964_v20 = vadd.f32 %v1956_v6, %v1947_v48 }
 0x5d6   : > { %v1924_v0 = vadd.f32 %v1923_v10, %v1922_v12  ;;  %v1933_v3 = vadd.f32 %v1932_v50, %v1931_v57  ;;  %v6708_v57 = vmax.f32 %v1086_v16, 0.0 }
 0x5d8   : > { %v1925_v59 = vrot.slane %v1924_v0, 1  ;;  %v1962_v27 = vadd.f32 %v1954_v40, %v1933_v3  ;;  %7522 = vst [vmem:[#allocation43_spill] sm:$0xff] %v6708_v57 }
 0x5da   : > { %v1926_v38 = vadd.f32 %v1925_v59, %v1924_v0 }
 0x5db   : > { %v1978_v53 = vpop.permute.xlu1 %1977 }
 0x5dc   : > { %v1987_v61 = vmul.f32 %v1978_v53, %v1963_v52  ;;  %v1961_v17 = vadd.f32 %v1952_v24, %v1926_v38 }
 0x5de   : > { %v2006_v45 = vrot.slane %v1987_v61, 6 }
 0x5df   : > { %v1973_v63 = vpop.permute.xlu1 %1972 }
 0x5e0   : > { %v1986_v21 = vmul.f32 %v1973_v63, %v1962_v27  ;;  %v6745_v63 = vld [vmem:[#allocation11] ss:$0 sm:$0xff] }
 0x5e2   : > { %v2004_v11 = vrot.slane %v1986_v21, 7 }
 0x5e3   : > { %v1968_v62 = vpop.permute.xlu1 %1967 }
 0x5e4   : > { %v1985_v43 = vmul.f32 %v1968_v62, %v1961_v17 }
 0x5e6   : > { %v2005_v19 = vsel %vm1839_vm3, %v2004_v11, %v1985_v43 }
 0x5e7   : > { %v2007_v2 = vsel %vm1842_vm4, %v2006_v45, %v2005_v19  ;;  %v1983_v37 = vpop.permute.xlu1 %1982 }
 0x5e8   : > { %v1988_v41 = vmul.f32 %v1983_v37, %v1964_v20 }
 0x5ea   : > { %v2008_v51 = vrot.slane %v1988_v41, 5 }
 0x5ec   : > { %v2009_v7 = vsel %vm1845_vm5, %v2008_v51, %v2007_v2  ;;  %v6755_v51 = vld [vmem:[#allocation13] ss:$0 sm:$0xff] }
 0x5ed   : > { %4562 = vmatmul.mubr.msk.f32.vlgmr.msra.gmra.mrb[4].mxu0 %vm752_vm1, %v2009_v7 }
 0x5ee   : > { %4712 = vmatpush3.bf16.msra.mxu0 %v6274_v5  ;;  %4583 = vmatprep.mubr.msk.f32.mxu0 %vm5716_vm0, %v7521_v35 }
 0x5ef   : > { %4713 = vmatprep.subr.bf16.mxu0 %v7519_v36 }
 0x5f2   : > { %4715 = vmatpush3.bf16.msra.mxu0 %v6277_v8 }
 0x5f3   : > { %4722 = vmatprep.subr.bf16.mxu0 %v7519_v36 }
 0x6c0   : > { %v2078_v60 = vpop.f32.mrb[4].mxu0 }
 0x6c1   : > { %v2079_v23 = vadd.f32 %v4385_v9, %v2078_v60  ;;  %v4563_v13 = vpop.f32.mrb[5].mxu0  ;;  %v7524_v9 = vld [vmem:[#allocation40_spill] sm:$0xff] }
 0x6c3   : > { %v2082_v12 = vmax.f32 %v2079_v23, 0.0 }
 0x6c5   : > { %v6711_v26 = vmul.f32 %v2082_v12, %v6708_v57 }
 0x6c7   : > { %7523 = vst [vmem:[#allocation44_spill] sm:$0xff] %v6711_v26  ;;  %v2598_v30 = vsel %vm1766_vm2, %v6711_v26, 0.0  ;;  %4573 = vmatmul.mubr.msk.f32.vlgmr.msra.gmra.mrb[10].mxu1 %vm752_vm1, %v6711_v26 }
 0x6c8   : > { %v2599_v10 = vrot.slane %v2598_v30, 4  ;;  %4718 = vmatpush3.bf16.msra.mxu1 %v6671_v42  ;;  %4594 = vmatprep.mubr.msk.f32.mxu1 %vm5716_vm0, %v7521_v35 }
 0x6c9   : > { %4719 = vmatprep.subr.bf16.mxu1 %v7519_v36 }
 0x6ca   : > { %v2600_v47 = vadd.f32 %v2599_v10, %v2598_v30 }
 0x6cc   : > { %v2601_v25 = vrot.slane %v2600_v47, 2  ;;  %4721 = vmatpush3.bf16.msra.mxu1 %v6681_v15 }
 0x6cd   : > { %4728 = vmatprep.subr.bf16.mxu1 %v7519_v36 }
 0x6ce   : > { %v2602_v50 = vadd.f32 %v2601_v25, %v2600_v47 }
 0x6d0   : > { %v2603_v0 = vrot.slane %v2602_v50, 1 }
 0x6d2   : > { %v2604_v24 = vadd.f32 %v2603_v0, %v2602_v50 }
 0x6d4   : > { %v6724_v1 = vsub.f32 %v2604_v24, %v6711_v26 }
 0x6d6   : > { %4584 = vmatmul.mubr.msk.f32.vlgmr.msra.gmra.mrb[6].mxu0 %vm752_vm1, %v6724_v1 }
 0x6d7   : > { %4724 = vmatpush3.bf16.msra.mxu0 %v6311_v22  ;;  %4605 = vmatprep.mubr.msk.f32.mxu0 %vm5716_vm0, %v7521_v35 }
 0x6d8   : > { %4725 = vmatprep.subr.bf16.mxu0 %v7519_v36 }
 0x6db   : > { %4727 = vmatpush3.bf16.msra.mxu0 %v6316_v28 }
 0x6dc   : > { %4734 = vmatprep.subr.bf16.mxu0 %v7519_v36 }
 0x79a   : > { %v2154_v58 = vpop.f32.mrb[10].mxu1 }
 0x79b   : > { %v2161_v3 = vrot.slane %v2154_v58, %v6366_v56  ;;  %v2269_v59 = vrot.slane %v2154_v58, %v6362_v54  ;;  %v2377_v46 = vrot.slane %v2154_v58, %v6364_v55  ;;  %v4574_v53 = vpop.f32.mrb[11].mxu1  ;;  %v2485_v16 = vrot.slane %v2154_v58, %v7524_v9 }
 0x79d   : > { %v2271_v40 = vadd.f32 %v6321_v31, %v2269_v59  ;;  %v2162_v22 = vadd.f32 %v2161_v3, %v6323_v32  ;;  %v2164_v4 = vadd.f32 %v2161_v3, %v6327_v34  ;;  %v2163_v27 = vadd.f32 %v6321_v31, %v2161_v3 }
 0x79e   : > { %v2380_v28 = vadd.f32 %v2377_v46, %v6327_v34  ;;  %v2272_v38 = vadd.f32 %v2269_v59, %v6327_v34  ;;  %v2270_v29 = vadd.f32 %v2269_v59, %v6323_v32  ;;  %v2165_v52 = vadd.f32 %v6325_v33, %v2161_v3 }
 0x79f   : > { %v2275_v21 = vadd.f32 %v6745_v63, %v2271_v40  ;;  %v2166_v61 = vadd.f32 %v6745_v63, %v2162_v22  ;;  %v2168_v17 = vadd.f32 %v6745_v63, %v2164_v4  ;;  %v2167_v48 = vadd.f32 %v6745_v63, %v2163_v27 }
 0x7a0   : > { %v2384_v6 = vadd.f32 %v6745_v63, %v2380_v28  ;;  %v2276_v62 = vadd.f32 %v6745_v63, %v2272_v38  ;;  %v2274_v37 = vadd.f32 %v6745_v63, %v2270_v29  ;;  %v2169_v41 = vadd.f32 %v6745_v63, %v2165_v52  ;;  %v7525_v29 = vld [vmem:[#allocation37_spill] sm:$0xff] }
 0x7a1   : > { %v2279_v11 = vmax.f32 %v2275_v21, 0.0  ;;  %v2170_v43 = vmax.f32 %v2166_v61, 0.0  ;;  %v2172_v45 = vmax.f32 %v2168_v17, 0.0  ;;  %v2171_v19 = vmax.f32 %v2167_v48, 0.0 }
 0x7a2   : > { %v2388_v20 = vmax.f32 %v2384_v6, 0.0  ;;  %v2280_v2 = vmax.f32 %v2276_v62, 0.0  ;;  %v2278_v47 = vmax.f32 %v2274_v37, 0.0  ;;  %v2173_v25 = vmax.f32 %v2169_v41, 0.0 }
 0x7a3   : > { %v2283_v7 = vmul.f32 %v6755_v51, %v2279_v11  ;;  %v2174_v44 = vmul.f32 %v6755_v51, %v2170_v43  ;;  %v2176_v13 = vmul.f32 %v6755_v51, %v2172_v45  ;;  %v2175_v12 = vmul.f32 %v6755_v51, %v2171_v19 }
 0x7a4   : > { %v2392_v30 = vmul.f32 %v6755_v51, %v2388_v20  ;;  %v2284_v10 = vmul.f32 %v6755_v51, %v2280_v2  ;;  %v2379_v50 = vadd.f32 %v6321_v31, %v2377_v46  ;;  %v2273_v0 = vadd.f32 %v6325_v33, %v2269_v59 }
 0x7a5   : > { %v2289_v60 = vsel %vm752_vm1, %v2283_v7, 0.0  ;;  %v2178_v23 = vsel %vm752_vm1, %v2174_v44, 0.0  ;;  %v2381_v24 = vadd.f32 %v6325_v33, %v2377_v46  ;;  %v2378_v58 = vadd.f32 %v2377_v46, %v6323_v32 }
 0x7a6   : > { %2290 = vadd.xlane.f32.xlu1 %v2289_v60  ;;  %2179 = vadd.xlane.f32.xlu0 %v2178_v23  ;;  %v2489_v3 = vadd.f32 %v6325_v33, %v2485_v16  ;;  %v2487_v53 = vadd.f32 %v6321_v31, %v2485_v16  ;;  %v2486_v40 = vadd.f32 %v2485_v16, %v6323_v32  ;;  %v2184_v27 = vsel %vm752_vm1, %v2176_v13, 0.0 }
 0x7a7   : > { %v2488_v22 = vadd.f32 %v2485_v16, %v6327_v34  ;;  %v2181_v28 = vsel %vm752_vm1, %v2175_v12, 0.0  ;;  %v2383_v38 = vadd.f32 %v6745_v63, %v2379_v50  ;;  %v2277_v59 = vadd.f32 %v6745_v63, %v2273_v0 }
 0x7a8   : > { %v2400_v21 = vsel %vm752_vm1, %v2392_v30, 0.0  ;;  %v2282_v61 = vmul.f32 %v6755_v51, %v2278_v47  ;;  %v2177_v17 = vmul.f32 %v6755_v51, %v2173_v25  ;;  %v2385_v48 = vadd.f32 %v6745_v63, %v2381_v24 }
 0x7a9   : > { %v2703_v4 = vpop.f32.mrb[6].mxu0  ;;  %v2292_v6 = vsel %vm752_vm1, %v2284_v10, 0.0  ;;  %v2387_v62 = vmax.f32 %v2383_v38, 0.0  ;;  %v2281_v11 = vmax.f32 %v2277_v59, 0.0  ;;  %v2382_v43 = vadd.f32 %v6745_v63, %v2378_v58 }
 0x7aa   : > { %v6779_v52 = vadd.f32 %v2703_v4, %v7525_v29  ;;  %v4585_v46 = vpop.f32.mrb[7].mxu0  ;;  %2185 = vadd.xlane.f32.xlu1 %v2184_v27  ;;  %2182 = vadd.xlane.f32.xlu0 %v2181_v28  ;;  %v2286_v45 = vsel %vm752_vm1, %v2282_v61, 0.0  ;;  %v2389_v19 = vmax.f32 %v2385_v48, 0.0  ;;  %v2493_v20 = vadd.f32 %v6745_v63, %v2489_v3 }
 0x7ab   : > { %v2491_v2 = vadd.f32 %v6745_v63, %v2487_v53  ;;  %v2187_v37 = vsel %vm752_vm1, %v2177_v17, 0.0  ;;  %v2391_v41 = vmul.f32 %v6755_v51, %v2387_v62  ;;  %v2285_v7 = vmul.f32 %v6755_v51, %v2281_v11 }
 0x7ac   : > { %v2386_v44 = vmax.f32 %v2382_v43, 0.0  ;;  %v2393_v16 = vmul.f32 %v6755_v51, %v2389_v19  ;;  %v2497_v60 = vmax.f32 %v2493_v20, 0.0  ;;  %v2490_v13 = vadd.f32 %v6745_v63, %v2486_v40 }
 0x7ad   : > { %v2495_v23 = vmax.f32 %v2491_v2, 0.0  ;;  %v2397_v12 = vsel %vm752_vm1, %v2391_v41, 0.0  ;;  %v2295_v30 = vsel %vm752_vm1, %v2285_v7, 0.0  ;;  %v2492_v47 = vadd.f32 %v6745_v63, %v2488_v22 }
 0x7ae   : > { %2401 = vadd.xlane.f32.xlu1 %v2400_v21  ;;  %2293 = vadd.xlane.f32.xlu0 %v2292_v6  ;;  %v2390_v10 = vmul.f32 %v6755_v51, %v2386_v44  ;;  %v2501_v25 = vmul.f32 %v6755_v51, %v2497_v60  ;;  %v2403_v0 = vsel %vm752_vm1, %v2393_v16, 0.0  ;;  %v2494_v58 = vmax.f32 %v2490_v13, 0.0 }
 0x7af   : > { %v2499_v50 = vmul.f32 %v6755_v51, %v2495_v23  ;;  %v2496_v3 = vmax.f32 %v2492_v47, 0.0 }
 0x7b0   : > { %v2394_v24 = vsel %vm752_vm1, %v2390_v10, 0.0  ;;  %v2511_v53 = vsel %vm752_vm1, %v2501_v25, 0.0  ;;  %v2498_v22 = vmul.f32 %v6755_v51, %v2494_v58 }
 0x7b1   : > { %v2505_v40 = vsel %vm752_vm1, %v2499_v50, 0.0  ;;  %v2500_v4 = vmul.f32 %v6755_v51, %v2496_v3 }
 0x7b2   : > { %2287 = vadd.xlane.f32.xlu1 %v2286_v45  ;;  %2188 = vadd.xlane.f32.xlu0 %v2187_v37  ;;  %v2502_v27 = vsel %vm752_vm1, %v2498_v22, 0.0 }
 0x7b3   : > { %v2508_v28 = vsel %vm752_vm1, %v2500_v4, 0.0 }
 0x7b6   : > { %2398 = vadd.xlane.f32.xlu1 %v2397_v12  ;;  %2296 = vadd.xlane.f32.xlu0 %v2295_v30 }
 0x7ba   : > { %2404 = vadd.xlane.f32.xlu1 %v2403_v0  ;;  %2395 = vadd.xlane.f32.xlu0 %v2394_v24 }
 0x7be   : > { %2512 = vadd.xlane.f32.xlu1 %v2511_v53  ;;  %2506 = vadd.xlane.f32.xlu0 %v2505_v40 }
 0x7c2   : > { %2503 = vadd.xlane.f32.xlu1 %v2502_v27  ;;  %2509 = vadd.xlane.f32.xlu0 %v2508_v28 }
 0x833   : > { %v2291_v38 = vpop.xlane.xlu1 %2290  ;;  %v2180_v59 = vpop.xlane.xlu0 %2179 }
 0x834   : > { %v2304_v46 = vrot.slane %v2291_v38, 4  ;;  %v2190_v21 = vrot.slane %v2180_v59, 4 }
 0x836   : > { %v2305_v61 = vmax.f32 %v2291_v38, %v2304_v46  ;;  %v2191_v17 = vmax.f32 %v2180_v59, %v2190_v21 }
 0x837   : > { %v2186_v48 = vpop.xlane.xlu1 %2185  ;;  %v2183_v6 = vpop.xlane.xlu0 %2182 }
 0x838   : > { %v2306_v62 = vrot.slane %v2305_v61, 2  ;;  %v2192_v11 = vrot.slane %v2191_v17, 2  ;;  %v2202_v43 = vrot.slane %v2186_v48, 4  ;;  %v2196_v45 = vrot.slane %v2183_v6, 4 }
 0x83a   : > { %v2307_v19 = vmax.f32 %v2305_v61, %v2306_v62  ;;  %v2193_v20 = vmax.f32 %v2191_v17, %v2192_v11  ;;  %v2203_v2 = vmax.f32 %v2186_v48, %v2202_v43  ;;  %v2197_v37 = vmax.f32 %v2183_v6, %v2196_v45 }
 0x83b   : > { %v6809_v41 = vpop.xlane.xlu1 %2401  ;;  %v6811_v7 = vpop.xlane.xlu0 %2293 }
 0x83c   : > { %v2308_v44 = vrot.slane %v2307_v19, 1  ;;  %v2194_v16 = vrot.slane %v2193_v20, 1  ;;  %v2204_v60 = vrot.slane %v2203_v2, 2  ;;  %v2198_v23 = vrot.slane %v2197_v37, 2 }
 0x83d   : > { %v2418_v13 = vrot.slane %v6809_v41, 4  ;;  %v2310_v12 = vrot.slane %v6811_v7, 4 }
 0x83e   : > { %v2309_v30 = vmax.f32 %v2307_v19, %v2308_v44  ;;  %v2195_v10 = vmax.f32 %v2193_v20, %v2194_v16  ;;  %v2205_v47 = vmax.f32 %v2203_v2, %v2204_v60  ;;  %v2199_v25 = vmax.f32 %v2197_v37, %v2198_v23 }
 0x83f   : > { %v2419_v50 = vmax.f32 %v6809_v41, %v2418_v13  ;;  %v2311_v0 = vmax.f32 %v6811_v7, %v2310_v12  ;;  %v6817_v24 = vpop.xlane.xlu1 %2287  ;;  %v6819_v58 = vpop.xlane.xlu0 %2188 }
 0x840   : > { %v2323_v3 = vsub.f32 %v2291_v38, %v2309_v30  ;;  %v2214_v53 = vsub.f32 %v2180_v59, %v2195_v10  ;;  %v2206_v40 = vrot.slane %v2205_v47, 1  ;;  %v2200_v22 = vrot.slane %v2199_v25, 1 }
 0x841   : > { %v2420_v4 = vrot.slane %v2419_v50, 2  ;;  %v2312_v27 = vrot.slane %v2311_v0, 2  ;;  %v2298_v28 = vrot.slane %v6817_v24, 4  ;;  %v2208_v46 = vrot.slane %v6819_v58, 4 }
 0x842   : > { %v2328_v21 = vmul.f32 1.442695, %v2323_v3  ;;  %v2218_v61 = vmul.f32 1.442695, %v2214_v53  ;;  %v2207_v17 = vmax.f32 %v2205_v47, %v2206_v40  ;;  %v2201_v62 = vmax.f32 %v2199_v25, %v2200_v22 }
 0x843   : > { %v2421_v11 = vmax.f32 %v2419_v50, %v2420_v4  ;;  %v2313_v43 = vmax.f32 %v2311_v0, %v2312_v27  ;;  %v2299_v45 = vmax.f32 %v6817_v24, %v2298_v28  ;;  %v2209_v19 = vmax.f32 %v6819_v58, %v2208_v46  ;;  %v6825_v38 = vpop.xlane.xlu1 %2398  ;;  %v6827_v59 = vpop.xlane.xlu0 %2296 }
 0x844   : > { %5021 = vpow2.f32 %v2328_v21  ;;  %v2216_v20 = vsub.f32 %v2186_v48, %v2207_v17  ;;  %v2215_v2 = vsub.f32 %v2183_v6, %v2201_v62  ;;  %v2412_v37 = vrot.slane %v6825_v38, 4 }
 0x845   : > { %5023 = vpow2.f32 %v2218_v61  ;;  %v2422_v44 = vrot.slane %v2421_v11, 1  ;;  %v2314_v16 = vrot.slane %v2313_v43, 1  ;;  %v2300_v60 = vrot.slane %v2299_v45, 2 }
 0x846   : > { %v2222_v23 = vmul.f32 1.442695, %v2216_v20  ;;  %v2220_v13 = vmul.f32 1.442695, %v2215_v2  ;;  %v2210_v12 = vrot.slane %v2209_v19, 2  ;;  %v2413_v30 = vmax.f32 %v6825_v38, %v2412_v37 }
 0x847   : > { %v2423_v10 = vmax.f32 %v2421_v11, %v2422_v44  ;;  %v2315_v47 = vmax.f32 %v2313_v43, %v2314_v16  ;;  %v2301_v25 = vmax.f32 %v2299_v45, %v2300_v60  ;;  %v2316_v50 = vrot.slane %v6827_v59, 4  ;;  %v6832_v0 = vpop.xlane.xlu1 %2404  ;;  %v6835_v53 = vpop.xlane.xlu0 %2395 }
 0x848   : > { %5025 = vpow2.f32 %v2222_v23  ;;  %v2211_v48 = vmax.f32 %v2209_v19, %v2210_v12  ;;  %v2414_v6 = vrot.slane %v2413_v30, 2  ;;  %v2424_v3 = vrot.slane %v6832_v0, 4 }
 0x849   : > { %5027 = vpow2.f32 %v2220_v13  ;;  %v2432_v40 = vsub.f32 %v6809_v41, %v2423_v10  ;;  %v2324_v22 = vsub.f32 %v6811_v7, %v2315_v47  ;;  %v2302_v4 = vrot.slane %v2301_v25, 1 }
 0x84a   : > { %v2212_v27 = vrot.slane %v2211_v48, 1  ;;  %v2415_v28 = vmax.f32 %v2413_v30, %v2414_v6  ;;  %v2317_v46 = vmax.f32 %v6827_v59, %v2316_v50  ;;  %v2425_v21 = vmax.f32 %v6832_v0, %v2424_v3 }
 0x84b   : > { %v2438_v61 = vmul.f32 1.442695, %v2432_v40  ;;  %v2330_v17 = vmul.f32 1.442695, %v2324_v22  ;;  %v2303_v62 = vmax.f32 %v2301_v25, %v2302_v4  ;;  %v2406_v11 = vrot.slane %v6835_v53, 4  ;;  %v6844_v2 = vpop.xlane.xlu1 %2512  ;;  %v6855_v3 = vpop.xlane.xlu0 %2506 }
 0x84c   : > { %v2213_v43 = vmax.f32 %v2211_v48, %v2212_v27  ;;  %v2416_v45 = vrot.slane %v2415_v28, 1  ;;  %v2318_v19 = vrot.slane %v2317_v46, 2  ;;  %v2426_v20 = vrot.slane %v2425_v21, 2 }
 0x84d   : > { %5029 = vpow2.f32 %v2438_v61  ;;  %v2322_v41 = vsub.f32 %v6817_v24, %v2303_v62  ;;  %v2407_v7 = vmax.f32 %v6835_v53, %v2406_v11  ;;  %v2532_v50 = vrot.slane %v6844_v2, 4 }
 0x84e   : > { %v6846_v37 = vpop.eup %5021  ;;  %5031 = vpow2.f32 %v2330_v17  ;;  %v2217_v44 = vsub.f32 %v6819_v58, %v2213_v43  ;;  %v2417_v16 = vmax.f32 %v2415_v28, %v2416_v45  ;;  %v2319_v60 = vmax.f32 %v2317_v46, %v2318_v19 }
 0x84f   : > { %v6849_v23 = vpop.eup %5023  ;;  %v2340_v13 = vrot.slane %v6846_v37, 4  ;;  %v2326_v12 = vmul.f32 1.442695, %v2322_v41  ;;  %v2427_v30 = vmax.f32 %v2425_v21, %v2426_v20  ;;  %v2408_v10 = vrot.slane %v2407_v7, 2  ;;  %v6864_v21 = vpop.xlane.xlu1 %2503 }
 0x850   : > { %v2224_v47 = vmul.f32 1.442695, %v2217_v44  ;;  %v2431_v24 = vsub.f32 %v6825_v38, %v2417_v16  ;;  %v2320_v25 = vrot.slane %v2319_v60, 1  ;;  %v2226_v48 = vrot.slane %v6849_v23, 4 }
 0x851   : > { %5033 = vpow2.f32 %v2326_v12  ;;  %v2428_v6 = vrot.slane %v2427_v30, 1  ;;  %v2409_v58 = vmax.f32 %v2407_v7, %v2408_v10  ;;  %v6862_v28 = vadd.f32 %v6846_v37, %v2340_v13 }
 0x852   : > { %v6857_v40 = vpop.eup %5025  ;;  %5035 = vpow2.f32 %v2224_v47  ;;  %v2436_v22 = vmul.f32 1.442695, %v2431_v24  ;;  %v2321_v4 = vmax.f32 %v2319_v60, %v2320_v25  ;;  %v6870_v11 = vadd.f32 %v6849_v23, %v2226_v48 }
 0x853   : > { %v6859_v27 = vpop.eup %5027  ;;  %v2429_v38 = vmax.f32 %v2427_v30, %v2428_v6  ;;  %v2410_v46 = vrot.slane %v2409_v58, 1  ;;  %v2238_v61 = vrot.slane %v6857_v40, 4  ;;  %v2533_v19 = vmax.f32 %v6844_v2, %v2532_v50  ;;  %v6881_v30 = vpop.xlane.xlu0 %2509 }
 0x854   : > { %v2232_v17 = vrot.slane %v6859_v27, 4  ;;  %5037 = vpow2.f32 %v2436_v22  ;;  %v2325_v62 = vsub.f32 %v6827_v59, %v2321_v4  ;;  %v2520_v7 = vrot.slane %v6855_v3, 4 }
 0x855   : > { %v2433_v43 = vsub.f32 %v6832_v0, %v2429_v38  ;;  %v2411_v45 = vmax.f32 %v2409_v58, %v2410_v46  ;;  %v2514_v44 = vrot.slane %v6864_v21, 4  ;;  %v2342_v60 = vrot.slane %v6862_v28, 2 }
 0x856   : > { %v2233_v20 = vadd.f32 %v6859_v27, %v2232_v17  ;;  %v2332_v41 = vmul.f32 1.442695, %v2325_v62  ;;  %v2534_v12 = vrot.slane %v2533_v19, 2  ;;  %v6886_v10 = vadd.f32 %v6857_v40, %v2238_v61 }
 0x857   : > { %v6877_v16 = vpop.eup %5029  ;;  %v2440_v59 = vmul.f32 1.442695, %v2433_v43  ;;  %v2430_v13 = vsub.f32 %v6835_v53, %v2411_v45  ;;  %v2521_v24 = vmax.f32 %v6855_v3, %v2520_v7  ;;  %v2515_v58 = vmax.f32 %v6864_v21, %v2514_v44 }
 0x858   : > { %v6883_v0 = vpop.eup %5031  ;;  %v2234_v47 = vrot.slane %v2233_v20, 2  ;;  %5039 = vpow2.f32 %v2332_v41  ;;  %v2454_v25 = vrot.slane %v6877_v16, 4  ;;  %v2535_v6 = vmax.f32 %v2533_v19, %v2534_v12 }
 0x859   : > { %v2346_v50 = vrot.slane %v6883_v0, 4  ;;  %v2434_v48 = vmul.f32 1.442695, %v2430_v13  ;;  %5041 = vpow2.f32 %v2440_v59  ;;  %v2522_v53 = vrot.slane %v2521_v24, 2 }
 0x85a   : > { %v2526_v22 = vrot.slane %v6881_v30, 4  ;;  %v2536_v46 = vrot.slane %v2535_v6, 1  ;;  %v2235_v61 = vadd.f32 %v2234_v47, %v2233_v20  ;;  %v2516_v45 = vrot.slane %v2515_v58, 2 }
 0x85b   : > { %v6893_v4 = vpop.eup %5033  ;;  %v6896_v38 = vadd.f32 %v6883_v0, %v2346_v50  ;;  %5043 = vpow2.f32 %v2434_v48  ;;  %v2523_v43 = vmax.f32 %v2521_v24, %v2522_v53  ;;  %v2228_v41 = vrot.slane %v6870_v11, 2 }
 0x85c   : > { %v6898_v17 = vpop.eup %5035  ;;  %v2334_v62 = vrot.slane %v6893_v4, 4  ;;  %v2527_v19 = vmax.f32 %v6881_v30, %v2526_v22  ;;  %v2537_v44 = vmax.f32 %v2535_v6, %v2536_v46  ;;  %v2236_v59 = vrot.slane %v2235_v61, 1 }
 0x85d   : > { %v2244_v7 = vrot.slane %v6898_v17, 4  ;;  %v2240_v12 = vrot.slane %v6886_v10, 2  ;;  %v2524_v50 = vrot.slane %v2523_v43, 1  ;;  %v2517_v20 = vmax.f32 %v2515_v58, %v2516_v45 }
 0x85e   : > { %v6904_v13 = vpop.eup %5037  ;;  %v2528_v47 = vrot.slane %v2527_v19, 2  ;;  %v2455_v48 = vadd.f32 %v6877_v16, %v2454_v25  ;;  %v2348_v24 = vrot.slane %v6896_v38, 2  ;;  %v2541_v22 = vsub.f32 %v6844_v2, %v2537_v44 }
 0x85f   : > { %v2448_v53 = vrot.slane %v6904_v13, 4  ;;  %v2335_v29 = vadd.f32 %v6893_v4, %v2334_v62  ;;  %v2525_v9 = vmax.f32 %v2523_v43, %v2524_v50  ;;  %v2518_v6 = vrot.slane %v2517_v20, 1 }
 0x860   : > { %v2529_v46 = vmax.f32 %v2527_v19, %v2528_v47  ;;  %v2245_v55 = vadd.f32 %v6898_v17, %v2244_v7  ;;  %v2548_v15 = vmul.f32 1.442695, %v2541_v22  ;;  %v2237_v58 = vadd.f32 %v2236_v59, %v2235_v61 }
 0x861   : > { %v2449_v54 = vadd.f32 %v6904_v13, %v2448_v53  ;;  %v2539_v25 = vsub.f32 %v6855_v3, %v2525_v9  ;;  %v2519_v42 = vmax.f32 %v2517_v20, %v2518_v6  ;;  %v2343_v57 = vadd.f32 %v2342_v60, %v6862_v28 }
 0x862   : > { %v6914_v45 = vpop.eup %5039  ;;  %v2530_v26 = vrot.slane %v2529_v46, 1  ;;  %5045 = vpow2.f32 %v2548_v15  ;;  %v2229_v43 = vadd.f32 %v2228_v41, %v6870_v11  ;;  %v2336_v7 = vrot.slane %v2335_v29, 2 }
 0x863   : > { %v2352_v2 = vrot.slane %v6914_v45, 4  ;;  %v2450_v62 = vrot.slane %v2449_v54, 2  ;;  %v6920_v19 = vpop.eup %5041  ;;  %v2544_v44 = vmul.f32 1.442695, %v2539_v25  ;;  %v2538_v61 = vsub.f32 %v6864_v21, %v2519_v42 }
 0x864   : > { %v2531_v59 = vmax.f32 %v2529_v46, %v2530_v26  ;;  %v2344_v3 = vrot.slane %v2343_v57, 1  ;;  %v2230_v28 = vrot.slane %v2229_v43, 1  ;;  %v2246_v60 = vrot.slane %v2245_v55, 2 }
 0x865   : > { %v6923_v50 = vpop.eup %5043  ;;  %v2353_v9 = vadd.f32 %v6914_v45, %v2352_v2  ;;  %v2451_v20 = vadd.f32 %v2450_v62, %v2449_v54  ;;  %5047 = vpow2.f32 %v2544_v44  ;;  %v2542_v47 = vmul.f32 1.442695, %v2538_v61 }
 0x866   : > { %v2442_v15 = vrot.slane %v6923_v50, 4  ;;  %v2460_v11 = vrot.slane %v6920_v19, 4  ;;  %v2540_v41 = vsub.f32 %v6881_v30, %v2531_v59  ;;  %5049 = vrcp.f32 %v2237_v58 }
 0x867   : > { %v2452_v53 = vrot.slane %v2451_v20, 1  ;;  %5051 = vpow2.f32 %v2542_v47  ;;  %v2345_v26 = vadd.f32 %v2344_v3, %v2343_v57  ;;  %v2337_v21 = vadd.f32 %v2336_v7, %v2335_v29 }
 0x868   : > { %v2443_v42 = vadd.f32 %v6923_v50, %v2442_v15  ;;  %v2354_v22 = vrot.slane %v2353_v9, 2  ;;  %v2546_v6 = vmul.f32 1.442695, %v2540_v41  ;;  %v2231_v54 = vadd.f32 %v2230_v28, %v2229_v43 }
 0x869   : > { %v2241_v46 = vadd.f32 %v2240_v12, %v6886_v10  ;;  %v2453_v25 = vadd.f32 %v2452_v53, %v2451_v20  ;;  %v2338_v2 = vrot.slane %v2337_v21, 1  ;;  %v2349_v44 = vadd.f32 %v2348_v24, %v6896_v38 }
 0x86a   : > { %v2444_v62 = vrot.slane %v2443_v42, 2  ;;  %5053 = vpow2.f32 %v2546_v6  ;;  %v2456_v30 = vrot.slane %v2455_v48, 2  ;;  %v2247_v58 = vadd.f32 %v2246_v60, %v2245_v55 }
 0x86b   : > { %v2242_v61 = vrot.slane %v2241_v46, 1  ;;  %v2461_v59 = vadd.f32 %v6920_v19, %v2460_v11  ;;  %5055 = vrcp.f32 %v2345_v26  ;;  %v2339_v57 = vadd.f32 %v2338_v2, %v2337_v21 }
 0x86c   : > { %v6933_v15 = vpop.eup %5045  ;;  %v2445_v29 = vadd.f32 %v2444_v62, %v2443_v42  ;;  %v2350_v7 = vrot.slane %v2349_v44, 1  ;;  %v2457_v43 = vadd.f32 %v2456_v30, %v2455_v48  ;;  %5057 = vrcp.f32 %v2231_v54 }
 0x86d   : > { %v2568_v10 = vrot.slane %v6933_v15, 4  ;;  %v2248_v12 = vrot.slane %v2247_v58, 1  ;;  %v2355_v3 = vadd.f32 %v2354_v22, %v2353_v9  ;;  %5059 = vrcp.f32 %v2453_v25 }
 0x86e   : > { %v2243_v38 = vadd.f32 %v2242_v61, %v2241_v46  ;;  %v2458_v24 = vrot.slane %v2457_v43, 1  ;;  %v2351_v55 = vadd.f32 %v2350_v7, %v2349_v44  ;;  %v2462_v60 = vrot.slane %v2461_v59, 2 }
 0x86f   : > { %v6936_v20 = vpop.eup %5047  ;;  %v2356_v28 = vrot.slane %v2355_v3, 1  ;;  %v2569_v47 = vadd.f32 %v6933_v15, %v2568_v10  ;;  %5061 = vrcp.f32 %v2339_v57  ;;  %v2446_v48 = vrot.slane %v2445_v29, 1 }
 0x870   : > { %v5050_v11 = vpop.eup %5049  ;;  %v2556_v41 = vrot.slane %v6936_v20, 4  ;;  %v2249_v42 = vadd.f32 %v2248_v12, %v2247_v58  ;;  %v2463_v9 = vadd.f32 %v2462_v60, %v2461_v59  ;;  %5063 = vrcp.f32 %v2243_v38 }
 0x871   : > { %v6940_v53 = vpop.eup %5051  ;;  %v2357_v26 = vadd.f32 %v2356_v28, %v2355_v3  ;;  %v2570_v21 = vrot.slane %v2569_v47, 2  ;;  %v2459_v54 = vadd.f32 %v2458_v24, %v2457_v43  ;;  %5065 = vrcp.f32 %v2351_v55 }
 0x872   : > { %v2550_v22 = vrot.slane %v6940_v53, 4  ;;  %v2557_v6 = vadd.f32 %v6936_v20, %v2556_v41  ;;  %v2464_v46 = vrot.slane %v2463_v9, 1  ;;  %v2447_v44 = vadd.f32 %v2446_v48, %v2445_v29 }
 0x873   : > { %v2571_v25 = vadd.f32 %v2570_v21, %v2569_v47  ;;  %5067 = vrcp.f32 %v2357_v26 }
 0x874   : > { %v6944_v2 = vpop.eup %5053  ;;  %v2558_v62 = vrot.slane %v2557_v6, 2  ;;  %v2551_v61 = vadd.f32 %v6940_v53, %v2550_v22  ;;  %5069 = vrcp.f32 %v2249_v42  ;;  %v2465_v59 = vadd.f32 %v2464_v46, %v2463_v9 }
 0x875   : > { %v5056_v30 = vpop.eup %5055  ;;  %v2562_v58 = vrot.slane %v6944_v2, 4  ;;  %v2572_v57 = vrot.slane %v2571_v25, 1  ;;  %5071 = vrcp.f32 %v2459_v54 }
 0x876   : > { %v2559_v7 = vadd.f32 %v2558_v62, %v2557_v6  ;;  %v2552_v10 = vrot.slane %v2551_v61, 2  ;;  %v5058_v43 = vpop.eup %5057  ;;  %5073 = vrcp.f32 %v2465_v59  ;;  %v2363_v6 = vmul.f32 %v5056_v30, %v6846_v37 }
 0x877   : > { %v2563_v12 = vadd.f32 %v6944_v2, %v2562_v58  ;;  %v2573_v3 = vadd.f32 %v2572_v57, %v2571_v25  ;;  %v5060_v38 = vpop.eup %5059  ;;  %5075 = vrcp.f32 %v2447_v44  ;;  %v2255_v44 = vmul.f32 %v5050_v11, %v6859_v27 }
 0x878   : > { %v2560_v24 = vrot.slane %v2559_v7, 1  ;;  %v2553_v29 = vadd.f32 %v2552_v10, %v2551_v61  ;;  %v2254_v61 = vmul.f32 %v5058_v43, %v6849_v23  ;;  %v2367_v10 = vmul.f32 0.0, %v2363_v6 }
 0x879   : > { %v2564_v55 = vrot.slane %v2563_v12, 2  ;;  %5077 = vrcp.f32 %v2573_v3  ;;  %v5062_v28 = vpop.eup %5061 }
 0x87a   : > { %v2561_v60 = vadd.f32 %v2560_v24, %v2559_v7  ;;  %v2554_v47 = vrot.slane %v2553_v29, 1  ;;  %v5064_v48 = vpop.eup %5063  ;;  %v2362_v37 = vmul.f32 %v5062_v28, %v6893_v4  ;;  %v2371_v23 = vadd.f32 %v2367_v10, %v2255_v44 }
 0x87b   : > { %v2565_v41 = vadd.f32 %v2564_v55, %v2563_v12  ;;  %v5066_v26 = vpop.eup %5065  ;;  %v2471_v12 = vmul.f32 %v5060_v38, %v6904_v13  ;;  %v2258_v11 = vmul.f32 0.0, %v2254_v61 }
 0x87c   : > { %5079 = vrcp.f32 %v2561_v60  ;;  %v2555_v42 = vadd.f32 %v2554_v47, %v2553_v29  ;;  %v2364_v30 = vmul.f32 %v5066_v26, %v6883_v0 }
 0x87d   : > { %v2566_v9 = vrot.slane %v2565_v41, 1  ;;  %v5068_v21 = vpop.eup %5067  ;;  %v2479_v55 = vadd.f32 %v2471_v12, %v2371_v23  ;;  %v2370_v4 = vadd.f32 %v2362_v37, %v2258_v11 }
 0x87e   : > { %5081 = vrcp.f32 %v2555_v42  ;;  %v5070_v22 = vpop.eup %5069  ;;  %v2365_v25 = vmul.f32 %v5068_v21, %v6914_v45 }
 0x87f   : > { %v2567_v54 = vadd.f32 %v2566_v9, %v2565_v41  ;;  %v5072_v46 = vpop.eup %5071  ;;  %v2257_v59 = vmul.f32 %v5070_v22, %v6898_v17 }
 0x880   : > { %v5074_v62 = vpop.eup %5073  ;;  %v2472_v45 = vmul.f32 %v5072_v46, %v6877_v16  ;;  %v2707_v46 = vadd.f32 %v6745_v63, %v6779_v52 }
 0x881   : > { %5083 = vrcp.f32 %v2567_v54  ;;  %v5076_v58 = vpop.eup %5075  ;;  %v2473_v57 = vmul.f32 %v5074_v62, %v6920_v19  ;;  %v2373_v3 = vadd.f32 %v2365_v25, %v2257_v59  ;;  %v2256_v19 = vmul.f32 %v5064_v48, %v6857_v40 }
 0x882   : > { %v2470_v43 = vmul.f32 %v5076_v58, %v6923_v50  ;;  %v2476_v28 = vmul.f32 0.0, %v2472_v45 }
 0x883   : > { %v5078_v7 = vpop.eup %5077  ;;  %v2481_v24 = vadd.f32 %v2473_v57, %v2373_v3  ;;  %v2372_v0 = vadd.f32 %v2364_v30, %v2256_v19  ;;  %v2708_v57 = vmax.f32 %v2707_v46, 0.0 }
 0x884   : > { %v2581_v27 = vmul.f32 %v5078_v7, %v6933_v15  ;;  %v2478_v15 = vadd.f32 %v2470_v43, %v2370_v4 }
 0x885   : > { %v2709_v45 = vmul.f32 %v6755_v51, %v2708_v57 }
 0x886   : > { %v5080_v17 = vpop.eup %5079  ;;  %v2585_v29 = vmul.f32 0.0, %v2581_v27 }
 0x887   : > { %v2579_v13 = vmul.f32 %v5080_v17, %v6936_v20  ;;  %v2480_v20 = vadd.f32 %v2476_v28, %v2372_v0 }
 0x888   : > { %v5082_v38 = vpop.eup %5081  ;;  %v6963_v16 = vadd.f32 %v2585_v29, %v2481_v24 }
 0x889   : > { %v6965_v60 = vadd.f32 %v2579_v13, %v2479_v55  ;;  %v2578_v47 = vmul.f32 %v5082_v38, %v6940_v53 }
 0x88a   : > { %v2597_v50 = vmul.f32 %v6325_v33, %v6963_v16 }
 0x88b   : > { %v5084_v40 = vpop.eup %5083  ;;  %v2595_v41 = vmul.f32 %v6321_v31, %v6965_v60  ;;  %v6972_v48 = vadd.f32 %v2578_v47, %v2478_v15 }
 0x88c   : > { %v2580_v42 = vmul.f32 %v5084_v40, %v6944_v2  ;;  %v2609_v53 = vadd.f32 %v2597_v50, %v6619_v14 }
 0x88d   : > { %v2607_v26 = vadd.f32 %v2595_v41, %v6611_v18  ;;  %v2594_v9 = vmul.f32 %v6972_v48, %v6323_v32 }
 0x88e   : > { %v6978_v21 = vadd.f32 %v2580_v42, %v2480_v20  ;;  %v2613_v44 = vadd.f32 %v6745_v63, %v2609_v53 }
 0x88f   : > { %v2611_v22 = vadd.f32 %v6745_v63, %v2607_v26  ;;  %v2606_v6 = vadd.f32 %v2594_v9, %v6623_v39 }
 0x890   : > { %v2596_v54 = vmul.f32 %v6978_v21, %v6327_v34  ;;  %v2617_v52 = vmax.f32 %v2613_v44, 0.0 }
 0x891   : > { %v2615_v2 = vmax.f32 %v2611_v22, 0.0  ;;  %v2610_v25 = vadd.f32 %v6745_v63, %v2606_v6 }
 0x892   : > { %v2608_v62 = vadd.f32 %v2596_v54, %v6636_v49  ;;  %v2621_v27 = vmul.f32 %v6755_v51, %v2617_v52 }
 0x893   : > { %v2619_v61 = vmul.f32 %v6755_v51, %v2615_v2  ;;  %v2614_v58 = vmax.f32 %v2610_v25, 0.0 }
 0x894   : > { %v2612_v59 = vadd.f32 %v6745_v63, %v2608_v62  ;;  %v2710_v63 = vsel %vm1766_vm2, %v2709_v45, 0.0  ;;  %v2631_v23 = vsel %vm752_vm1, %v2621_v27, 0.0 }
 0x895   : > { %v2625_v7 = vsel %vm752_vm1, %v2619_v61, 0.0  ;;  %v2618_v10 = vmul.f32 %v6755_v51, %v2614_v58 }
 0x896   : > { %2626 = vadd.xlane.f32.xlu0 %v2625_v7  ;;  %v2616_v12 = vmax.f32 %v2612_v59, 0.0 }
 0x897   : > { %v2622_v37 = vsel %vm752_vm1, %v2618_v10, 0.0 }
 0x898   : > { %v2620_v30 = vmul.f32 %v6755_v51, %v2616_v12 }
 0x89a   : > { %2623 = vadd.xlane.f32.xlu0 %v2622_v37  ;;  %v2628_v3 = vsel %vm752_vm1, %v2620_v30, 0.0 }
 0x89b   : > { %2629 = vadd.xlane.f32.xlu1 %v2628_v3 }
 0x89e   : > { %2711 = vadd.xlane.f32.xlu0 %v2710_v63 }
 0x89f   : > { %2632 = vadd.xlane.f32.xlu1 %v2631_v23 }
 0x923   : > { %v2627_v11 = vpop.xlane.xlu0 %2626 }
 0x924   : > { %v2719_v43 = vrot.slane %v2627_v11, 4 }
 0x926   : > { %v2720_v17 = vmax.f32 %v2627_v11, %v2719_v43 }
 0x927   : > { %v2624_v19 = vpop.xlane.xlu0 %2623 }
 0x928   : > { %v2721_v24 = vrot.slane %v2720_v17, 2  ;;  %v2630_v29 = vpop.xlane.xlu1 %2629  ;;  %v2713_v55 = vrot.slane %v2624_v19, 4 }
 0x929   : > { %v2725_v13 = vrot.slane %v2630_v29, 4 }
 0x92a   : > { %v2722_v4 = vmax.f32 %v2720_v17, %v2721_v24  ;;  %v2714_v38 = vmax.f32 %v2624_v19, %v2713_v55 }
 0x92b   : > { %v2726_v0 = vmax.f32 %v2630_v29, %v2725_v13  ;;  %v2712_v28 = vpop.xlane.xlu0 %2711 }
 0x92c   : > { %v2723_v51 = vrot.slane %v2722_v4, 1  ;;  %v2715_v15 = vrot.slane %v2714_v38, 2  ;;  %v2633_v47 = vpop.xlane.xlu1 %2632  ;;  %v2738_v42 = vrot.slane %v2712_v28, 1  ;;  %v2739_v44 = vrot.slane %v2712_v28, 2 }
 0x92d   : > { %v2727_v50 = vrot.slane %v2726_v0, 2  ;;  %v2731_v40 = vrot.slane %v2633_v47, 4  ;;  %v2740_v52 = vrot.slane %v2712_v28, 3 }
 0x92e   : > { %v2724_v41 = vmax.f32 %v2722_v4, %v2723_v51  ;;  %v2716_v20 = vmax.f32 %v2714_v38, %v2715_v15 }
 0x92f   : > { %v2728_v26 = vmax.f32 %v2726_v0, %v2727_v50  ;;  %v2732_v9 = vmax.f32 %v2633_v47, %v2731_v40 }
 0x930   : > { %v2717_v53 = vrot.slane %v2716_v20, 1  ;;  %v2746_v22 = vmax.f32 %v2724_v41, %v2738_v42 }
 0x931   : > { %v2729_v6 = vrot.slane %v2728_v26, 1  ;;  %v2733_v54 = vrot.slane %v2732_v9, 2 }
 0x932   : > { %v2718_v46 = vmax.f32 %v2716_v20, %v2717_v53  ;;  %v2756_v2 = vrot.slane %v2746_v22, %v6366_v56  ;;  %v2781_v30 = vrot.slane %v2746_v22, 7 }
 0x933   : > { %v2730_v25 = vmax.f32 %v2728_v26, %v2729_v6  ;;  %v2734_v62 = vmax.f32 %v2732_v9, %v2733_v54 }
 0x934   : > { %v2745_v61 = vmax.f32 %v2718_v46, %v2712_v28  ;;  %v2766_v58 = vsub.f32 %v2627_v11, %v2756_v2 }
 0x935   : > { %v2735_v59 = vrot.slane %v2734_v62, 1  ;;  %v2747_v57 = vmax.f32 %v2730_v25, %v2739_v44 }
 0x936   : > { %v2752_v7 = vrot.slane %v2745_v61, %v6366_v56  ;;  %v2771_v10 = vmul.f32 1.442695, %v2766_v58  ;;  %v2782_v23 = vsel %vm1839_vm3, %v2781_v30, %v2745_v61 }
 0x937   : > { %v2736_v12 = vmax.f32 %v2734_v62, %v2735_v59  ;;  %v2760_v37 = vrot.slane %v2747_v57, %v6366_v56  ;;  %v2783_v3 = vrot.slane %v2747_v57, 6 }
 0x938   : > { %v2765_v45 = vsub.f32 %v2624_v19, %v2752_v7  ;;  %5085 = vpow2.f32 %v2771_v10 }
 0x939   : > { %v2748_v27 = vmax.f32 %v2736_v12, %v2740_v52  ;;  %v2767_v63 = vsub.f32 %v2630_v29, %v2760_v37  ;;  %v2784_v55 = vsel %vm1842_vm4, %v2783_v3, %v2782_v23 }
 0x93a   : > { %v2769_v43 = vmul.f32 1.442695, %v2765_v45 }
 0x93b   : > { %v2764_v11 = vrot.slane %v2748_v27, %v6366_v56  ;;  %v2773_v17 = vmul.f32 1.442695, %v2767_v63  ;;  %v2785_v24 = vrot.slane %v2748_v27, 5 }
 0x93c   : > { %5087 = vpow2.f32 %v2769_v43 }
 0x93d   : > { %v2768_v13 = vsub.f32 %v2633_v47, %v2764_v11  ;;  %5089 = vpow2.f32 %v2773_v17  ;;  %v2786_v4 = vsel %vm1845_vm5, %v2785_v24, %v2784_v55 }
 0x93e   : > { %v2788_v38 = vsub.f32 %v2712_v28, %v2786_v4 }
 0x93f   : > { %v2775_v19 = vmul.f32 1.442695, %v2768_v13 }
 0x940   : > { %v2789_v0 = vmul.f32 1.442695, %v2788_v38 }
 0x941   : > { %5091 = vpow2.f32 %v2775_v19  ;;  %v5191_v19 = vld [vmem:[%s6227_s1 + $0x8] sm:$0xff] }
 0x942   : > { %v5086_v51 = vpop.eup %5085  ;;  %5093 = vpow2.f32 %v2789_v0  ;;  %v2591_v0 = vmul.f32 %v5191_v19, %v6965_v60 }
 0x943   : > { %v2798_v29 = vsel %vm1851_vm6, %v5086_v51, 0.0  ;;  %2842 = vperm.xlu1 %4938, %v5086_v51  }
 0x944   : > { %v2799_v15 = vrot.slane %v2798_v29, 4 }
 0x946   : > { %v5088_v50 = vpop.eup %5087  ;;  %v2800_v40 = vadd.f32 %v2799_v15, %v2798_v29 }
 0x947   : > { %v5090_v41 = vpop.eup %5089  ;;  %v2791_v20 = vsel %vm1851_vm6, %v5088_v50, 0.0  ;;  %2837 = vperm.xlu1 %4938, %v5088_v50   ;;  %v5192_v50 = vld [vmem:[%s6227_s1] sm:$0xff] }
 0x948   : > { %v2792_v47 = vrot.slane %v2791_v20, 4  ;;  %v2801_v42 = vrot.slane %v2800_v40, 2  ;;  %v2805_v26 = vsel %vm1851_vm6, %v5090_v41, 0.0  ;;  %2847 = vperm.xlu0 %4937, %v5090_v41  }
 0x949   : > { %v2806_v28 = vrot.slane %v2805_v26, 4 }
 0x94a   : > { %v2793_v9 = vadd.f32 %v2792_v47, %v2791_v20  ;;  %v2802_v53 = vadd.f32 %v2801_v42, %v2800_v40  ;;  %v2590_v40 = vmul.f32 %v5192_v50, %v6972_v48  ;;  %v5193_v20 = vld [vmem:[%s6227_s1 + $0x10] sm:$0xff] }
 0x94b   : > { %v5092_v22 = vpop.eup %5091  ;;  %v2807_v6 = vadd.f32 %v2806_v28, %v2805_v26  ;;  %v2592_v47 = vmul.f32 %v5193_v20, %v6978_v21 }
 0x94c   : > { %v5094_v54 = vpop.eup %5093  ;;  %v2794_v46 = vrot.slane %v2793_v9, 2  ;;  %v2812_v2 = vsel %vm1851_vm6, %v5092_v22, 0.0  ;;  %2852 = vperm.xlu1 %4938, %v5092_v22   ;;  %v2803_v25 = vrot.slane %v2802_v53, 1 }
 0x94d   : > { %v2808_v62 = vrot.slane %v2807_v6, 2  ;;  %v2813_v44 = vrot.slane %v2812_v2, 4  ;;  %2888 = vperm.xlu0 %4937, %v5094_v54   ;;  %v2820_v59 = vrot.slane %v5094_v54, 1  ;;  %v2821_v3 = vrot.slane %v5094_v54, 2 }
 0x94e   : > { %v2795_v61 = vadd.f32 %v2794_v46, %v2793_v9  ;;  %v2804_v58 = vadd.f32 %v2803_v25, %v2802_v53  ;;  %v2822_v17 = vrot.slane %v5094_v54, 3 }
 0x94f   : > { %v2814_v57 = vadd.f32 %v2813_v44, %v2812_v2  ;;  %v2809_v7 = vadd.f32 %v2808_v62, %v2807_v6 }
 0x950   : > { %v2828_v10 = vadd.f32 %v2820_v59, %v2804_v58  ;;  %v2796_v12 = vrot.slane %v2795_v61, 1 }
 0x951   : > { %v2815_v52 = vrot.slane %v2814_v57, 2  ;;  %v2810_v37 = vrot.slane %v2809_v7, 1 }
 0x952   : > { %5095 = vrcp.f32 %v2828_v10  ;;  %v2797_v30 = vadd.f32 %v2796_v12, %v2795_v61 }
 0x953   : > { %v2811_v45 = vadd.f32 %v2810_v37, %v2809_v7  ;;  %v2816_v27 = vadd.f32 %v2815_v52, %v2814_v57 }
 0x954   : > { %v2827_v63 = vadd.f32 %v5094_v54, %v2797_v30  ;;  %v5194_v54 = vld [vmem:[%s6227_s1 + $0x18] sm:$0xff] }
 0x955   : > { %v2829_v23 = vadd.f32 %v2821_v3, %v2811_v45  ;;  %v2817_v43 = vrot.slane %v2816_v27, 1  ;;  %v2593_v46 = vmul.f32 %v5194_v54, %v6963_v16 }
 0x956   : > { %5097 = vrcp.f32 %v2827_v63 }
 0x957   : > { %5099 = vrcp.f32 %v2829_v23  ;;  %v2818_v11 = vadd.f32 %v2817_v43, %v2816_v27 }
 0x959   : > { %v2830_v24 = vadd.f32 %v2822_v17, %v2818_v11 }
 0x95b   : > { %5101 = vrcp.f32 %v2830_v24 }
 0x95c   : > { %v5096_v55 = vpop.eup %5095 }
 0x95d   : > { %2911 = vperm.xlu1 %4938, %v5096_v55  }
 0x960   : > { %v5098_v13 = vpop.eup %5097 }
 0x961   : > { %v5100_v4 = vpop.eup %5099  ;;  %2906 = vperm.xlu1 %4938, %v5098_v13  }
 0x962   : > { %2916 = vperm.xlu0 %4937, %v5100_v4  }
 0x965   : > { %v5102_v38 = vpop.eup %5101 }
 0x966   : > { %2921 = vperm.xlu0 %4937, %v5102_v38  }
 0x9c2   : > { %v2843_v51 = vpop.permute.xlu1 %2842 }
 0x9c3   : > { %v2856_v29 = vmul.f32 %v2843_v51, %v2591_v0 }
 0x9c5   : > { %v2866_v15 = vsel %vm752_vm1, %v2856_v29, 0.0 }
 0x9c6   : > { %v2867_v41 = vrot.slane %v2866_v15, 4  ;;  %v2838_v42 = vpop.permute.xlu1 %2837 }
 0x9c7   : > { %v2848_v26 = vpop.permute.xlu0 %2847  ;;  %v2855_v28 = vmul.f32 %v2838_v42, %v2590_v40 }
 0x9c8   : > { %v2868_v9 = vadd.f32 %v2867_v41, %v2866_v15  ;;  %v2857_v53 = vmul.f32 %v2848_v26, %v2592_v47 }
 0x9c9   : > { %v2859_v22 = vsel %vm752_vm1, %v2855_v28, 0.0 }
 0x9ca   : > { %v2873_v60 = vsel %vm752_vm1, %v2857_v53, 0.0  ;;  %v2860_v6 = vrot.slane %v2859_v22, 4  ;;  %v2869_v2 = vrot.slane %v2868_v9, 2 }
 0x9cb   : > { %v2874_v25 = vrot.slane %v2873_v60, 4  ;;  %v2853_v48 = vpop.permute.xlu1 %2852 }
 0x9cc   : > { %v2861_v62 = vadd.f32 %v2860_v6, %v2859_v22  ;;  %v2858_v44 = vmul.f32 %v2853_v48, %v2593_v46  ;;  %v2870_v58 = vadd.f32 %v2869_v2, %v2868_v9  ;;  %v2889_v12 = vpop.permute.xlu0 %2888  ;;  %v5195_v6 = vld [vmem:[#allocation17] ss:$0 sm:$0xff] }
 0x9cd   : > { %v2875_v61 = vadd.f32 %v2874_v25, %v2873_v60  ;;  %v2891_v16 = vmul.f32 %v2889_v12, %v6724_v1  ;;  %v7526_v25 = vld [vmem:[#allocation43_spill] sm:$0xff] }
 0x9ce   : > { %v2880_v21 = vsel %vm752_vm1, %v2858_v44, 0.0  ;;  %v2862_v59 = vrot.slane %v2861_v62, 2  ;;  %v2871_v37 = vrot.slane %v2870_v58, 1 }
 0x9cf   : > { %v2881_v57 = vrot.slane %v2880_v21, 4  ;;  %v2876_v7 = vrot.slane %v2875_v61, 2  ;;  %v2893_v43 = vrot.slane %v2891_v16, 1  ;;  %v2894_v38 = vrot.slane %v2891_v16, 2 }
 0x9d0   : > { %v2863_v52 = vadd.f32 %v2862_v59, %v2861_v62  ;;  %v2872_v3 = vadd.f32 %v2871_v37, %v2870_v58  ;;  %v2895_v41 = vrot.slane %v2891_v16, 3  ;;  %v7527_v62 = vld [vmem:[#allocation44_spill] sm:$0xff]  ;;  %v7529_v59 = vld [vmem:[#allocation42_spill] sm:$0xff] }
 0x9d1   : > { %v2882_v10 = vadd.f32 %v2881_v57, %v2880_v21  ;;  %v2877_v30 = vadd.f32 %v2876_v7, %v2875_v61 }
 0x9d2   : > { %v2864_v27 = vrot.slane %v2863_v52, 1  ;;  %v2901_v11 = vadd.f32 %v2893_v43, %v2872_v3 }
 0x9d3   : > { %v2883_v45 = vrot.slane %v2882_v10, 2  ;;  %v2878_v23 = vrot.slane %v2877_v30, 1 }
 0x9d4   : > { %v2865_v17 = vadd.f32 %v2864_v27, %v2863_v52 }
 0x9d5   : > { %v2884_v63 = vadd.f32 %v2883_v45, %v2882_v10  ;;  %v2879_v55 = vadd.f32 %v2878_v23, %v2877_v30  ;;  %v7530_v30 = vld [vmem:[#allocation38_spill] sm:$0xff] }
 0x9d6   : > { %v2900_v19 = vadd.f32 %v2891_v16, %v2865_v17  ;;  %v7531_v16 = vld [vmem:[#allocation39_spill] sm:$0xff] }
 0x9d7   : > { %v2885_v13 = vrot.slane %v2884_v63, 1  ;;  %v2902_v0 = vadd.f32 %v2894_v38, %v2879_v55 }
 0x9d9   : > { %v2886_v29 = vadd.f32 %v2885_v13, %v2884_v63 }
 0x9db   : > { %v2903_v42 = vadd.f32 %v2895_v41, %v2886_v29 }
 0x9dc   : > { %v2912_v24 = vpop.permute.xlu1 %2911 }
 0x9dd   : > { %v2925_v4 = vmul.f32 %v2912_v24, %v2901_v11 }
 0x9df   : > { %v2932_v15 = vrot.slane %v2925_v4, 7  ;;  %v7067_v4 = vld [vmem:[#allocation11] ss:$0 sm:$0xff] }
 0x9e0   : > { %v2907_v51 = vpop.permute.xlu1 %2906 }
 0x9e1   : > { %v2917_v50 = vpop.permute.xlu0 %2916  ;;  %v2924_v40 = vmul.f32 %v2907_v51, %v2900_v19 }
 0x9e2   : > { %v2926_v1 = vmul.f32 %v2917_v50, %v2902_v0 }
 0x9e3   : > { %v2933_v20 = vsel %vm1839_vm3, %v2932_v15, %v2924_v40 }
 0x9e4   : > { %v2934_v47 = vrot.slane %v2926_v1, 6 }
 0x9e5   : > { %v2922_v26 = vpop.permute.xlu0 %2921 }
 0x9e6   : > { %v2935_v28 = vsel %vm1842_vm4, %v2934_v47, %v2933_v20  ;;  %v2927_v9 = vmul.f32 %v2922_v26, %v2903_v42 }
 0x9e8   : > { %v2936_v53 = vrot.slane %v2927_v9, 5 }
 0x9ea   : > { %v2937_v22 = vsel %vm1845_vm5, %v2936_v53, %v2935_v28  ;;  %v7077_v28 = vld [vmem:[#allocation13] ss:$0 sm:$0xff] }
 0x9eb   : > { %4595 = vmatmul.mubr.msk.f32.vlgmr.msra.gmra.mrb[12].mxu1 %vm752_vm1, %v2937_v22  ;;  %v7532_v22 = vld [vmem:[#allocation40_spill] sm:$0xff] }
 0x9ec   : > { %4730 = vmatpush3.bf16.msra.mxu1 %v6274_v5  ;;  %4616 = vmatprep.mubr.msk.f32.mxu1 %vm5716_vm0, %v7521_v35 }
 0x9ed   : > { %4731 = vmatprep.subr.bf16.mxu1 %v7519_v36 }
 0x9f0   : > { %4733 = vmatpush3.bf16.msra.mxu1 %v6277_v8  ;;  %v7528_v8 = vld [vmem:[#allocation41_spill] sm:$0xff] }
 0x9f1   : > { %4740 = vmatprep.subr.bf16.mxu1 %v7519_v36 }
 0xabe   : > { %v3006_v60 = vpop.f32.mrb[12].mxu1 }
 0xabf   : > { %v3007_v54 = vadd.f32 %v5195_v6, %v3006_v60  ;;  %v4596_v46 = vpop.f32.mrb[13].mxu1 }
 0xac1   : > { %v3010_v2 = vmax.f32 %v3007_v54, 0.0 }
 0xac3   : > { %v3011_v48 = vmul.f32 %v3010_v2, %v7526_v25 }
 0xac5   : > { %v7037_v44 = vadd.f32 %v3011_v48, %v7527_v62 }
 0xac7   : > { %v3526_v5 = vsel %vm1766_vm2, %v7037_v44, 0.0  ;;  %4606 = vmatmul.mubr.msk.f32.vlgmr.msra.gmra.mrb[8].mxu0 %vm752_vm1, %v7037_v44 }
 0xac8   : > { %v3527_v61 = vrot.slane %v3526_v5, 4  ;;  %4736 = vmatpush3.bf16.msra.mxu0 %v7528_v8  ;;  %4627 = vmatprep.mubr.msk.f32.mxu0 %vm5716_vm0, %v7521_v35 }
 0xac9   : > { %4737 = vmatprep.subr.bf16.mxu0 %v7519_v36 }
 0xaca   : > { %v3528_v21 = vadd.f32 %v3527_v61, %v3526_v5 }
 0xacc   : > { %v3529_v58 = vrot.slane %v3528_v21, 2  ;;  %4739 = vmatpush3.bf16.msra.mxu0 %v7529_v59 }
 0xacd   : > { %4746 = vmatprep.subr.bf16.mxu0 %v7519_v36 }
 0xace   : > { %v3530_v57 = vadd.f32 %v3529_v58, %v3528_v21 }
 0xad0   : > { %v3531_v7 = vrot.slane %v3530_v57, 1 }
 0xad2   : > { %v3532_v10 = vadd.f32 %v3531_v7, %v3530_v57 }
 0xad4   : > { %v7050_v12 = vsub.f32 %v3532_v10, %v7037_v44 }
 0xad6   : > { %4617 = vmatmul.mubr.msk.f32.vlgmr.msra.gmra.mrb[14].mxu1 %vm752_vm1, %v7050_v12 }
 0xad7   : > { %4638 = vmatprep.mubr.msk.f32.mxu1 %vm5716_vm0, %v7521_v35 }
 0xb9a   : > { %v3082_v52 = vpop.f32.mrb[8].mxu0 }
 0xb9b   : > { %v3089_v37 = vrot.slane %v3082_v52, %v6366_v56  ;;  %v3197_v45 = vrot.slane %v3082_v52, %v7530_v30  ;;  %v3305_v3 = vrot.slane %v3082_v52, %v7531_v16  ;;  %v4607_v27 = vpop.f32.mrb[9].mxu0  ;;  %v3413_v60 = vrot.slane %v3082_v52, %v7532_v22 }
 0xb9d   : > { %v3199_v63 = vadd.f32 %v6321_v31, %v3197_v45  ;;  %v3090_v23 = vadd.f32 %v3089_v37, %v6323_v32  ;;  %v3092_v43 = vadd.f32 %v3089_v37, %v6327_v34  ;;  %v3091_v11 = vadd.f32 %v6321_v31, %v3089_v37 }
 0xb9e   : > { %v3308_v17 = vadd.f32 %v3305_v3, %v6327_v34  ;;  %v3200_v24 = vadd.f32 %v3197_v45, %v6327_v34  ;;  %v3198_v55 = vadd.f32 %v3197_v45, %v6323_v32  ;;  %v3093_v13 = vadd.f32 %v6325_v33, %v3089_v37 }
 0xb9f   : > { %v3203_v38 = vadd.f32 %v7067_v4, %v3199_v63  ;;  %v3094_v19 = vadd.f32 %v7067_v4, %v3090_v23  ;;  %v3096_v0 = vadd.f32 %v7067_v4, %v3092_v43  ;;  %v3095_v51 = vadd.f32 %v7067_v4, %v3091_v11  ;;  %v7533_v63 = vld [vmem:[#allocation37_spill] sm:$0xff] }
 0xba0   : > { %v3312_v29 = vadd.f32 %v7067_v4, %v3308_v17  ;;  %v3204_v15 = vadd.f32 %v7067_v4, %v3200_v24  ;;  %v3202_v42 = vadd.f32 %v7067_v4, %v3198_v55  ;;  %v3097_v26 = vadd.f32 %v7067_v4, %v3093_v13 }
 0xba1   : > { %v3207_v50 = vmax.f32 %v3203_v38, 0.0  ;;  %v3098_v40 = vmax.f32 %v3094_v19, 0.0  ;;  %v3100_v1 = vmax.f32 %v3096_v0, 0.0  ;;  %v3099_v41 = vmax.f32 %v3095_v51, 0.0 }
 0xba2   : > { %v3316_v20 = vmax.f32 %v3312_v29, 0.0  ;;  %v3208_v47 = vmax.f32 %v3204_v15, 0.0  ;;  %v3206_v5 = vmax.f32 %v3202_v42, 0.0  ;;  %v3101_v61 = vmax.f32 %v3097_v26, 0.0 }
 0xba3   : > { %v3211_v9 = vmul.f32 %v7077_v28, %v3207_v50  ;;  %v3102_v53 = vmul.f32 %v7077_v28, %v3098_v40  ;;  %v3104_v46 = vmul.f32 %v7077_v28, %v3100_v1  ;;  %v3103_v2 = vmul.f32 %v7077_v28, %v3099_v41 }
 0xba4   : > { %v3320_v48 = vmul.f32 %v7077_v28, %v3316_v20  ;;  %v3212_v62 = vmul.f32 %v7077_v28, %v3208_v47  ;;  %v3307_v8 = vadd.f32 %v6321_v31, %v3305_v3  ;;  %v3201_v21 = vadd.f32 %v6325_v33, %v3197_v45 }
 0xba5   : > { %v3217_v6 = vsel %vm752_vm1, %v3211_v9, 0.0  ;;  %v3106_v54 = vsel %vm752_vm1, %v3102_v53, 0.0  ;;  %v3309_v58 = vadd.f32 %v6325_v33, %v3305_v3  ;;  %v3306_v59 = vadd.f32 %v3305_v3, %v6323_v32 }
 0xba6   : > { %3218 = vadd.xlane.f32.xlu1 %v3217_v6  ;;  %3107 = vadd.xlane.f32.xlu0 %v3106_v54  ;;  %v3417_v57 = vadd.f32 %v6325_v33, %v3413_v60  ;;  %v3415_v7 = vadd.f32 %v6321_v31, %v3413_v60  ;;  %v3414_v10 = vadd.f32 %v3413_v60, %v6323_v32  ;;  %v3112_v30 = vsel %vm752_vm1, %v3104_v46, 0.0 }
 0xba7   : > { %v3416_v52 = vadd.f32 %v3413_v60, %v6327_v34  ;;  %v3109_v16 = vsel %vm752_vm1, %v3103_v2, 0.0  ;;  %v3311_v27 = vadd.f32 %v7067_v4, %v3307_v8  ;;  %v3205_v45 = vadd.f32 %v7067_v4, %v3201_v21 }
 0xba8   : > { %v3328_v43 = vsel %vm752_vm1, %v3320_v48, 0.0  ;;  %v3210_v11 = vmul.f32 %v7077_v28, %v3206_v5  ;;  %v3105_v17 = vmul.f32 %v7077_v28, %v3101_v61  ;;  %v3313_v24 = vadd.f32 %v7067_v4, %v3309_v58 }
 0xba9   : > { %v3631_v37 = vpop.f32.mrb[14].mxu1  ;;  %v3220_v55 = vsel %vm752_vm1, %v3212_v62, 0.0  ;;  %v3315_v13 = vmax.f32 %v3311_v27, 0.0  ;;  %v3209_v38 = vmax.f32 %v3205_v45, 0.0  ;;  %v3310_v19 = vadd.f32 %v7067_v4, %v3306_v59 }
 0xbaa   : > { %v7101_v23 = vadd.f32 %v3631_v37, %v7533_v63  ;;  %3113 = vadd.xlane.f32.xlu1 %v3112_v30  ;;  %3110 = vadd.xlane.f32.xlu0 %v3109_v16  ;;  %v4618_v3 = vpop.f32.mrb[15].mxu1  ;;  %v3214_v0 = vsel %vm752_vm1, %v3210_v11, 0.0  ;;  %v3317_v51 = vmax.f32 %v3313_v24, 0.0  ;;  %v3421_v29 = vadd.f32 %v7067_v4, %v3417_v57 }
 0xbab   : > { %v3419_v15 = vadd.f32 %v7067_v4, %v3415_v7  ;;  %v3115_v50 = vsel %vm752_vm1, %v3105_v17, 0.0  ;;  %v3319_v40 = vmul.f32 %v7077_v28, %v3315_v13  ;;  %v3213_v1 = vmul.f32 %v7077_v28, %v3209_v38 }
 0xbac   : > { %v3314_v41 = vmax.f32 %v3310_v19, 0.0  ;;  %v3321_v20 = vmul.f32 %v7077_v28, %v3317_v51  ;;  %v3425_v47 = vmax.f32 %v3421_v29, 0.0  ;;  %v3418_v26 = vadd.f32 %v7067_v4, %v3414_v10 }
 0xbad   : > { %v3423_v42 = vmax.f32 %v3419_v15, 0.0  ;;  %v3325_v9 = vsel %vm752_vm1, %v3319_v40, 0.0  ;;  %v3223_v53 = vsel %vm752_vm1, %v3213_v1, 0.0  ;;  %v3420_v60 = vadd.f32 %v7067_v4, %v3416_v52 }
 0xbae   : > { %3329 = vadd.xlane.f32.xlu1 %v3328_v43  ;;  %3221 = vadd.xlane.f32.xlu0 %v3220_v55  ;;  %v3318_v22 = vmul.f32 %v7077_v28, %v3314_v41  ;;  %v3429_v6 = vmul.f32 %v7077_v28, %v3425_v47  ;;  %v3331_v46 = vsel %vm752_vm1, %v3321_v20, 0.0  ;;  %v3422_v48 = vmax.f32 %v3418_v26, 0.0 }
 0xbaf   : > { %v3427_v54 = vmul.f32 %v7077_v28, %v3423_v42  ;;  %v3424_v62 = vmax.f32 %v3420_v60, 0.0 }
 0xbb0   : > { %v3322_v2 = vsel %vm752_vm1, %v3318_v22, 0.0  ;;  %v3439_v5 = vsel %vm752_vm1, %v3429_v6, 0.0  ;;  %v3426_v8 = vmul.f32 %v7077_v28, %v3422_v48 }
 0xbb1   : > { %v3433_v61 = vsel %vm752_vm1, %v3427_v54, 0.0  ;;  %v3428_v21 = vmul.f32 %v7077_v28, %v3424_v62 }
 0xbb2   : > { %3215 = vadd.xlane.f32.xlu1 %v3214_v0  ;;  %3116 = vadd.xlane.f32.xlu0 %v3115_v50  ;;  %v3430_v58 = vsel %vm752_vm1, %v3426_v8, 0.0 }
 0xbb3   : > { %v3436_v59 = vsel %vm752_vm1, %v3428_v21, 0.0 }
 0xbb6   : > { %3326 = vadd.xlane.f32.xlu1 %v3325_v9  ;;  %3224 = vadd.xlane.f32.xlu0 %v3223_v53 }
 0xbba   : > { %3332 = vadd.xlane.f32.xlu1 %v3331_v46  ;;  %3323 = vadd.xlane.f32.xlu0 %v3322_v2 }
 0xbbe   : > { %3440 = vadd.xlane.f32.xlu1 %v3439_v5  ;;  %3434 = vadd.xlane.f32.xlu0 %v3433_v61 }
 0xbc2   : > { %3431 = vadd.xlane.f32.xlu1 %v3430_v58  ;;  %3437 = vadd.xlane.f32.xlu0 %v3436_v59 }
 0xc33   : > { %v3219_v57 = vpop.xlane.xlu1 %3218  ;;  %v3108_v7 = vpop.xlane.xlu0 %3107 }
 0xc34   : > { %v3232_v10 = vrot.slane %v3219_v57, 4  ;;  %v3118_v52 = vrot.slane %v3108_v7, 4 }
 0xc36   : > { %v3233_v37 = vmax.f32 %v3219_v57, %v3232_v10  ;;  %v3119_v30 = vmax.f32 %v3108_v7, %v3118_v52 }
 0xc37   : > { %v3114_v16 = vpop.xlane.xlu1 %3113  ;;  %v3111_v27 = vpop.xlane.xlu0 %3110 }
 0xc38   : > { %v3234_v45 = vrot.slane %v3233_v37, 2  ;;  %v3120_v63 = vrot.slane %v3119_v30, 2  ;;  %v3130_v3 = vrot.slane %v3114_v16, 4  ;;  %v3124_v43 = vrot.slane %v3111_v27, 4 }
 0xc3a   : > { %v3235_v11 = vmax.f32 %v3233_v37, %v3234_v45  ;;  %v3121_v17 = vmax.f32 %v3119_v30, %v3120_v63  ;;  %v3131_v24 = vmax.f32 %v3114_v16, %v3130_v3  ;;  %v3125_v55 = vmax.f32 %v3111_v27, %v3124_v43 }
 0xc3b   : > { %v7131_v13 = vpop.xlane.xlu1 %3329  ;;  %v7133_v38 = vpop.xlane.xlu0 %3221 }
 0xc3c   : > { %v3236_v19 = vrot.slane %v3235_v11, 1  ;;  %v3122_v0 = vrot.slane %v3121_v17, 1  ;;  %v3132_v51 = vrot.slane %v3131_v24, 2  ;;  %v3126_v29 = vrot.slane %v3125_v55, 2 }
 0xc3d   : > { %v3346_v15 = vrot.slane %v7131_v13, 4  ;;  %v3238_v50 = vrot.slane %v7133_v38, 4 }
 0xc3e   : > { %v3237_v40 = vmax.f32 %v3235_v11, %v3236_v19  ;;  %v3123_v1 = vmax.f32 %v3121_v17, %v3122_v0  ;;  %v3133_v41 = vmax.f32 %v3131_v24, %v3132_v51  ;;  %v3127_v20 = vmax.f32 %v3125_v55, %v3126_v29 }
 0xc3f   : > { %v3347_v47 = vmax.f32 %v7131_v13, %v3346_v15  ;;  %v3239_v42 = vmax.f32 %v7133_v38, %v3238_v50  ;;  %v7139_v26 = vpop.xlane.xlu1 %3215  ;;  %v7141_v9 = vpop.xlane.xlu0 %3116 }
 0xc40   : > { %v3251_v53 = vsub.f32 %v3219_v57, %v3237_v40  ;;  %v3142_v22 = vsub.f32 %v3108_v7, %v3123_v1  ;;  %v3134_v60 = vrot.slane %v3133_v41, 1  ;;  %v3128_v6 = vrot.slane %v3127_v20, 1 }
 0xc41   : > { %v3348_v54 = vrot.slane %v3347_v47, 2  ;;  %v3240_v46 = vrot.slane %v3239_v42, 2  ;;  %v3226_v2 = vrot.slane %v7139_v26, 4  ;;  %v3136_v48 = vrot.slane %v7141_v9, 4 }
 0xc42   : > { %v3256_v62 = vmul.f32 1.442695, %v3251_v53  ;;  %v3146_v5 = vmul.f32 1.442695, %v3142_v22  ;;  %v3135_v61 = vmax.f32 %v3133_v41, %v3134_v60  ;;  %v3129_v8 = vmax.f32 %v3127_v20, %v3128_v6 }
 0xc43   : > { %v3349_v21 = vmax.f32 %v3347_v47, %v3348_v54  ;;  %v3241_v58 = vmax.f32 %v3239_v42, %v3240_v46  ;;  %v3227_v59 = vmax.f32 %v7139_v26, %v3226_v2  ;;  %v3137_v10 = vmax.f32 %v7141_v9, %v3136_v48  ;;  %v7147_v57 = vpop.xlane.xlu1 %3326  ;;  %v7149_v7 = vpop.xlane.xlu0 %3224 }
 0xc44   : > { %5103 = vpow2.f32 %v3256_v62  ;;  %v3144_v52 = vsub.f32 %v3114_v16, %v3135_v61  ;;  %v3143_v37 = vsub.f32 %v3111_v27, %v3129_v8  ;;  %v3340_v30 = vrot.slane %v7147_v57, 4 }
 0xc45   : > { %5105 = vpow2.f32 %v3146_v5  ;;  %v3350_v45 = vrot.slane %v3349_v21, 1  ;;  %v3242_v63 = vrot.slane %v3241_v58, 1  ;;  %v3228_v3 = vrot.slane %v3227_v59, 2 }
 0xc46   : > { %v3150_v43 = vmul.f32 1.442695, %v3144_v52  ;;  %v3148_v11 = vmul.f32 1.442695, %v3143_v37  ;;  %v3138_v17 = vrot.slane %v3137_v10, 2  ;;  %v3341_v24 = vmax.f32 %v7147_v57, %v3340_v30 }
 0xc47   : > { %v3351_v55 = vmax.f32 %v3349_v21, %v3350_v45  ;;  %v3243_v19 = vmax.f32 %v3241_v58, %v3242_v63  ;;  %v3229_v0 = vmax.f32 %v3227_v59, %v3228_v3  ;;  %v3244_v51 = vrot.slane %v7149_v7, 4  ;;  %v7154_v29 = vpop.xlane.xlu1 %3332  ;;  %v7157_v50 = vpop.xlane.xlu0 %3323 }
 0xc48   : > { %5107 = vpow2.f32 %v3150_v43  ;;  %v3139_v16 = vmax.f32 %v3137_v10, %v3138_v17  ;;  %v3342_v27 = vrot.slane %v3341_v24, 2  ;;  %v3352_v15 = vrot.slane %v7154_v29, 4 }
 0xc49   : > { %5109 = vpow2.f32 %v3148_v11  ;;  %v3360_v40 = vsub.f32 %v7131_v13, %v3351_v55  ;;  %v3252_v1 = vsub.f32 %v7133_v38, %v3243_v19  ;;  %v3230_v41 = vrot.slane %v3229_v0, 1 }
 0xc4a   : > { %v3140_v20 = vrot.slane %v3139_v16, 1  ;;  %v3343_v47 = vmax.f32 %v3341_v24, %v3342_v27  ;;  %v3245_v42 = vmax.f32 %v7149_v7, %v3244_v51  ;;  %v3353_v53 = vmax.f32 %v7154_v29, %v3352_v15 }
 0xc4b   : > { %v3366_v22 = vmul.f32 1.442695, %v3360_v40  ;;  %v3258_v60 = vmul.f32 1.442695, %v3252_v1  ;;  %v3231_v6 = vmax.f32 %v3229_v0, %v3230_v41  ;;  %v3334_v54 = vrot.slane %v7157_v50, 4  ;;  %v7166_v5 = vpop.xlane.xlu1 %3440  ;;  %v7177_v17 = vpop.xlane.xlu0 %3434 }
 0xc4c   : > { %v3141_v46 = vmax.f32 %v3139_v16, %v3140_v20  ;;  %v3344_v2 = vrot.slane %v3343_v47, 1  ;;  %v3246_v48 = vrot.slane %v3245_v42, 2  ;;  %v3354_v62 = vrot.slane %v3353_v53, 2 }
 0xc4d   : > { %5111 = vpow2.f32 %v3366_v22  ;;  %v3250_v13 = vsub.f32 %v7139_v26, %v3231_v6  ;;  %v3335_v38 = vmax.f32 %v7157_v50, %v3334_v54  ;;  %v3460_v3 = vrot.slane %v7166_v5, 4 }
 0xc4e   : > { %v7168_v61 = vpop.eup %5103  ;;  %5113 = vpow2.f32 %v3258_v60  ;;  %v3145_v8 = vsub.f32 %v7141_v9, %v3141_v46  ;;  %v3345_v21 = vmax.f32 %v3343_v47, %v3344_v2  ;;  %v3247_v58 = vmax.f32 %v3245_v42, %v3246_v48 }
 0xc4f   : > { %v7171_v59 = vpop.eup %5105  ;;  %v3268_v10 = vrot.slane %v7168_v61, 4  ;;  %v3254_v52 = vmul.f32 1.442695, %v3250_v13  ;;  %v3355_v37 = vmax.f32 %v3353_v53, %v3354_v62  ;;  %v3336_v30 = vrot.slane %v3335_v38, 2  ;;  %v7186_v27 = vpop.xlane.xlu1 %3431 }
 0xc50   : > { %v3152_v45 = vmul.f32 1.442695, %v3145_v8  ;;  %v3359_v26 = vsub.f32 %v7147_v57, %v3345_v21  ;;  %v3248_v63 = vrot.slane %v3247_v58, 1  ;;  %v3154_v43 = vrot.slane %v7171_v59, 4  ;;  %v7203_v62 = vpop.xlane.xlu0 %3437 }
 0xc51   : > { %5115 = vpow2.f32 %v3254_v52  ;;  %v3356_v11 = vrot.slane %v3355_v37, 1  ;;  %v3337_v9 = vmax.f32 %v3335_v38, %v3336_v30  ;;  %v7184_v51 = vadd.f32 %v7168_v61, %v3268_v10 }
 0xc52   : > { %v7179_v24 = vpop.eup %5107  ;;  %5117 = vpow2.f32 %v3152_v45  ;;  %v3364_v55 = vmul.f32 1.442695, %v3359_v26  ;;  %v3249_v19 = vmax.f32 %v3247_v58, %v3248_v63  ;;  %v7192_v41 = vadd.f32 %v7171_v59, %v3154_v43 }
 0xc53   : > { %v7181_v0 = vpop.eup %5109  ;;  %v3357_v57 = vmax.f32 %v3355_v37, %v3356_v11  ;;  %v3338_v16 = vrot.slane %v3337_v9, 1  ;;  %v3166_v15 = vrot.slane %v7179_v24, 4  ;;  %v3461_v42 = vmax.f32 %v7166_v5, %v3460_v3 }
 0xc54   : > { %v3160_v40 = vrot.slane %v7181_v0, 4  ;;  %5119 = vpow2.f32 %v3364_v55  ;;  %v3253_v1 = vsub.f32 %v7149_v7, %v3249_v19  ;;  %v3448_v60 = vrot.slane %v7177_v17, 4 }
 0xc55   : > { %v3361_v20 = vsub.f32 %v7154_v29, %v3357_v57  ;;  %v3339_v47 = vmax.f32 %v3337_v9, %v3338_v16  ;;  %v3442_v6 = vrot.slane %v7186_v27, 4  ;;  %v3270_v46 = vrot.slane %v7184_v51, 2 }
 0xc56   : > { %v3161_v53 = vadd.f32 %v7181_v0, %v3160_v40  ;;  %v3260_v22 = vmul.f32 1.442695, %v3253_v1  ;;  %v3462_v48 = vrot.slane %v3461_v42, 2  ;;  %v7208_v13 = vadd.f32 %v7179_v24, %v3166_v15 }
 0xc57   : > { %v7199_v54 = vpop.eup %5111  ;;  %v3368_v7 = vmul.f32 1.442695, %v3361_v20  ;;  %v3358_v2 = vsub.f32 %v7157_v50, %v3339_v47  ;;  %v3449_v8 = vmax.f32 %v7177_v17, %v3448_v60  ;;  %v3443_v37 = vmax.f32 %v7186_v27, %v3442_v6 }
 0xc58   : > { %v7205_v29 = vpop.eup %5113  ;;  %v3162_v38 = vrot.slane %v3161_v53, 2  ;;  %5121 = vpow2.f32 %v3260_v22  ;;  %v3382_v21 = vrot.slane %v7199_v54, 4  ;;  %v3463_v52 = vmax.f32 %v3461_v42, %v3462_v48 }
 0xc59   : > { %v3274_v58 = vrot.slane %v7205_v29, 4  ;;  %v3362_v10 = vmul.f32 1.442695, %v3358_v2  ;;  %5123 = vpow2.f32 %v3368_v7  ;;  %v3450_v50 = vrot.slane %v3449_v8, 2 }
 0xc5a   : > { %v3454_v30 = vrot.slane %v7203_v62, 4  ;;  %v3464_v63 = vrot.slane %v3463_v52, 1  ;;  %v3163_v3 = vadd.f32 %v3162_v38, %v3161_v53  ;;  %v3444_v55 = vrot.slane %v3443_v37, 2 }
 0xc5b   : > { %v7215_v45 = vpop.eup %5115  ;;  %v7218_v26 = vadd.f32 %v7205_v29, %v3274_v58  ;;  %5125 = vpow2.f32 %v3362_v10  ;;  %v3451_v9 = vmax.f32 %v3449_v8, %v3450_v50  ;;  %v3156_v57 = vrot.slane %v7192_v41, 2 }
 0xc5c   : > { %v7220_v43 = vpop.eup %5117  ;;  %v3262_v11 = vrot.slane %v7215_v45, 4  ;;  %v3455_v19 = vmax.f32 %v7203_v62, %v3454_v30  ;;  %v3465_v15 = vmax.f32 %v3463_v52, %v3464_v63  ;;  %v3164_v40 = vrot.slane %v3163_v3, 1 }
 0xc5d   : > { %v3172_v16 = vrot.slane %v7220_v43, 4  ;;  %v3168_v20 = vrot.slane %v7208_v13, 2  ;;  %v3452_v47 = vrot.slane %v3451_v9, 1  ;;  %v3445_v42 = vmax.f32 %v3443_v37, %v3444_v55 }
 0xc5e   : > { %v7226_v1 = vpop.eup %5119  ;;  %v3456_v53 = vrot.slane %v3455_v19, 2  ;;  %v3383_v22 = vadd.f32 %v7199_v54, %v3382_v21  ;;  %v3276_v60 = vrot.slane %v7218_v26, 2  ;;  %v3469_v7 = vsub.f32 %v7166_v5, %v3465_v15 }
 0xc5f   : > { %v3376_v6 = vrot.slane %v7226_v1, 4  ;;  %v3263_v2 = vadd.f32 %v7215_v45, %v3262_v11  ;;  %v3453_v48 = vmax.f32 %v3451_v9, %v3452_v47  ;;  %v3446_v38 = vrot.slane %v3445_v42, 1 }
 0xc60   : > { %v3457_v8 = vmax.f32 %v3455_v19, %v3456_v53  ;;  %v3173_v58 = vadd.f32 %v7220_v43, %v3172_v16  ;;  %v3476_v52 = vmul.f32 1.442695, %v3469_v7  ;;  %v3165_v50 = vadd.f32 %v3164_v40, %v3163_v3 }
 0xc61   : > { %v3377_v10 = vadd.f32 %v7226_v1, %v3376_v6  ;;  %v3467_v21 = vsub.f32 %v7177_v17, %v3453_v48  ;;  %v3447_v30 = vmax.f32 %v3445_v42, %v3446_v38  ;;  %v3271_v55 = vadd.f32 %v3270_v46, %v7184_v51 }
 0xc62   : > { %v7236_v37 = vpop.eup %5121  ;;  %v3458_v63 = vrot.slane %v3457_v8, 1  ;;  %5127 = vpow2.f32 %v3476_v52  ;;  %v3157_v9 = vadd.f32 %v3156_v57, %v7192_v41  ;;  %v3264_v16 = vrot.slane %v3263_v2, 2 }
 0xc63   : > { %v3280_v5 = vrot.slane %v7236_v37, 4  ;;  %v3378_v11 = vrot.slane %v3377_v10, 2  ;;  %v7242_v19 = vpop.eup %5123  ;;  %v3472_v15 = vmul.f32 1.442695, %v3467_v21  ;;  %v3466_v3 = vsub.f32 %v7186_v27, %v3447_v30 }
 0xc64   : > { %v3459_v40 = vmax.f32 %v3457_v8, %v3458_v63  ;;  %v3272_v42 = vrot.slane %v3271_v55, 1  ;;  %v3158_v51 = vrot.slane %v3157_v9, 1  ;;  %v3174_v46 = vrot.slane %v3173_v58, 2 }
 0xc65   : > { %v7245_v47 = vpop.eup %5125  ;;  %v3281_v17 = vadd.f32 %v7236_v37, %v3280_v5  ;;  %v3379_v53 = vadd.f32 %v3378_v11, %v3377_v10  ;;  %5129 = vpow2.f32 %v3472_v15  ;;  %v3470_v7 = vmul.f32 1.442695, %v3466_v3 }
 0xc66   : > { %v3370_v6 = vrot.slane %v7245_v47, 4  ;;  %v3388_v41 = vrot.slane %v7242_v19, 4  ;;  %v3468_v57 = vsub.f32 %v7203_v62, %v3459_v40  ;;  %5131 = vrcp.f32 %v3165_v50 }
 0xc67   : > { %v3380_v48 = vrot.slane %v3379_v53, 1  ;;  %5133 = vpow2.f32 %v3470_v7  ;;  %v3273_v38 = vadd.f32 %v3272_v42, %v3271_v55  ;;  %v3265_v8 = vadd.f32 %v3264_v16, %v3263_v2 }
 0xc68   : > { %v3371_v27 = vadd.f32 %v7245_v47, %v3370_v6  ;;  %v3282_v52 = vrot.slane %v3281_v17, 2  ;;  %v3474_v21 = vmul.f32 1.442695, %v3468_v57  ;;  %v3159_v10 = vadd.f32 %v3158_v51, %v3157_v9 }
 0xc69   : > { %v3169_v30 = vadd.f32 %v3168_v20, %v7208_v13  ;;  %v3381_v63 = vadd.f32 %v3380_v48, %v3379_v53  ;;  %v3266_v5 = vrot.slane %v3265_v8, 1  ;;  %v3277_v15 = vadd.f32 %v3276_v60, %v7218_v26 }
 0xc6a   : > { %v3372_v11 = vrot.slane %v3371_v27, 2  ;;  %5135 = vpow2.f32 %v3474_v21  ;;  %v3384_v62 = vrot.slane %v3383_v22, 2  ;;  %v3175_v50 = vadd.f32 %v3174_v46, %v3173_v58 }
 0xc6b   : > { %v3170_v3 = vrot.slane %v3169_v30, 1  ;;  %v3389_v40 = vadd.f32 %v7242_v19, %v3388_v41  ;;  %5137 = vrcp.f32 %v3273_v38  ;;  %v3267_v2 = vadd.f32 %v3266_v5, %v3265_v8 }
 0xc6c   : > { %v7255_v6 = vpop.eup %5127  ;;  %v3373_v55 = vadd.f32 %v3372_v11, %v3371_v27  ;;  %v3278_v16 = vrot.slane %v3277_v15, 1  ;;  %v3385_v9 = vadd.f32 %v3384_v62, %v3383_v22  ;;  %5139 = vrcp.f32 %v3159_v10 }
 0xc6d   : > { %v3496_v13 = vrot.slane %v7255_v6, 4  ;;  %v3176_v20 = vrot.slane %v3175_v50, 1  ;;  %v3283_v42 = vadd.f32 %v3282_v52, %v3281_v17  ;;  %5141 = vrcp.f32 %v3381_v63 }
 0xc6e   : > { %v3171_v26 = vadd.f32 %v3170_v3, %v3169_v30  ;;  %v3386_v60 = vrot.slane %v3385_v9, 1  ;;  %v3279_v58 = vadd.f32 %v3278_v16, %v3277_v15  ;;  %v3390_v46 = vrot.slane %v3389_v40, 2 }
 0xc6f   : > { %v7258_v53 = vpop.eup %5129  ;;  %v3284_v51 = vrot.slane %v3283_v42, 1  ;;  %v3497_v7 = vadd.f32 %v7255_v6, %v3496_v13  ;;  %5143 = vrcp.f32 %v3267_v2  ;;  %v3374_v22 = vrot.slane %v3373_v55, 1 }
 0xc70   : > { %v5132_v41 = vpop.eup %5131  ;;  %v3484_v57 = vrot.slane %v7258_v53, 4  ;;  %v3177_v27 = vadd.f32 %v3176_v20, %v3175_v50  ;;  %v3391_v17 = vadd.f32 %v3390_v46, %v3389_v40  ;;  %5145 = vrcp.f32 %v3171_v26 }
 0xc71   : > { %v7262_v48 = vpop.eup %5133  ;;  %v3285_v38 = vadd.f32 %v3284_v51, %v3283_v42  ;;  %v3498_v8 = vrot.slane %v3497_v7, 2  ;;  %v3387_v10 = vadd.f32 %v3386_v60, %v3385_v9  ;;  %5147 = vrcp.f32 %v3279_v58 }
 0xc72   : > { %v3478_v52 = vrot.slane %v7262_v48, 4  ;;  %v3485_v21 = vadd.f32 %v7258_v53, %v3484_v57  ;;  %v3392_v30 = vrot.slane %v3391_v17, 1  ;;  %v3375_v15 = vadd.f32 %v3374_v22, %v3373_v55 }
 0xc73   : > { %v3499_v63 = vadd.f32 %v3498_v8, %v3497_v7  ;;  %5149 = vrcp.f32 %v3285_v38 }
 0xc74   : > { %v7266_v5 = vpop.eup %5135  ;;  %v3486_v11 = vrot.slane %v3485_v21, 2  ;;  %v3479_v3 = vadd.f32 %v7262_v48, %v3478_v52  ;;  %5151 = vrcp.f32 %v3177_v27  ;;  %v3393_v40 = vadd.f32 %v3392_v30, %v3391_v17 }
 0xc75   : > { %v5138_v62 = vpop.eup %5137  ;;  %v3490_v50 = vrot.slane %v7266_v5, 4  ;;  %v3500_v2 = vrot.slane %v3499_v63, 1  ;;  %5153 = vrcp.f32 %v3387_v10 }
 0xc76   : > { %v3487_v16 = vadd.f32 %v3486_v11, %v3485_v21  ;;  %v3480_v13 = vrot.slane %v3479_v3, 2  ;;  %v5140_v9 = vpop.eup %5139  ;;  %5155 = vrcp.f32 %v3393_v40  ;;  %v3291_v21 = vmul.f32 %v5138_v62, %v7168_v61 }
 0xc77   : > { %v3491_v20 = vadd.f32 %v7266_v5, %v3490_v50  ;;  %v3501_v42 = vadd.f32 %v3500_v2, %v3499_v63  ;;  %v5142_v26 = vpop.eup %5141  ;;  %5157 = vrcp.f32 %v3375_v15  ;;  %v3183_v15 = vmul.f32 %v5132_v41, %v7181_v0 }
 0xc78   : > { %v3488_v60 = vrot.slane %v3487_v16, 1  ;;  %v3481_v55 = vadd.f32 %v3480_v13, %v3479_v3  ;;  %v3182_v3 = vmul.f32 %v5140_v9, %v7171_v59  ;;  %v3295_v13 = vmul.f32 0.0, %v3291_v21 }
 0xc79   : > { %v3492_v58 = vrot.slane %v3491_v20, 2  ;;  %5159 = vrcp.f32 %v3501_v42  ;;  %v5144_v51 = vpop.eup %5143  ;;  %v3635_v21 = vadd.f32 %v7067_v4, %v7101_v23 }
 0xc7a   : > { %v3489_v46 = vadd.f32 %v3488_v60, %v3487_v16  ;;  %v3482_v7 = vrot.slane %v3481_v55, 1  ;;  %v5146_v22 = vpop.eup %5145  ;;  %v3290_v61 = vmul.f32 %v5144_v51, %v7215_v45  ;;  %v3299_v59 = vadd.f32 %v3295_v13, %v3183_v15 }
 0xc7b   : > { %v3493_v57 = vadd.f32 %v3492_v58, %v3491_v20  ;;  %v5148_v38 = vpop.eup %5147  ;;  %v3399_v20 = vmul.f32 %v5142_v26, %v7226_v1  ;;  %v3186_v41 = vmul.f32 0.0, %v3182_v3 }
 0xc7c   : > { %5161 = vrcp.f32 %v3489_v46  ;;  %v3483_v27 = vadd.f32 %v3482_v7, %v3481_v55  ;;  %v3292_v62 = vmul.f32 %v5148_v38, %v7205_v29 }
 0xc7d   : > { %v3494_v17 = vrot.slane %v3493_v57, 1  ;;  %v5150_v8 = vpop.eup %5149  ;;  %v3407_v58 = vadd.f32 %v3399_v20, %v3299_v59  ;;  %v3298_v45 = vadd.f32 %v3290_v61, %v3186_v41 }
 0xc7e   : > { %5163 = vrcp.f32 %v3483_v27  ;;  %v5152_v52 = vpop.eup %5151  ;;  %v3293_v63 = vmul.f32 %v5150_v8, %v7236_v37 }
 0xc7f   : > { %v3495_v10 = vadd.f32 %v3494_v17, %v3493_v57  ;;  %v5154_v30 = vpop.eup %5153  ;;  %v3185_v40 = vmul.f32 %v5152_v52, %v7220_v43 }
 0xc80   : > { %v5156_v11 = vpop.eup %5155  ;;  %v3400_v37 = vmul.f32 %v5154_v30, %v7199_v54 }
 0xc81   : > { %5165 = vrcp.f32 %v3495_v10  ;;  %v5158_v50 = vpop.eup %5157  ;;  %v3401_v2 = vmul.f32 %v5156_v11, %v7242_v19  ;;  %v3301_v42 = vadd.f32 %v3293_v63, %v3185_v40  ;;  %v3184_v19 = vmul.f32 %v5146_v22, %v7179_v24 }
 0xc82   : > { %v3398_v9 = vmul.f32 %v5158_v50, %v7245_v47  ;;  %v3404_v51 = vmul.f32 0.0, %v3400_v37  ;;  %v3636_v11 = vmax.f32 %v3635_v21, 0.0 }
 0xc83   : > { %v5160_v16 = vpop.eup %5159  ;;  %v3409_v60 = vadd.f32 %v3401_v2, %v3301_v42  ;;  %v3300_v29 = vadd.f32 %v3292_v62, %v3184_v19 }
 0xc84   : > { %v3509_v0 = vmul.f32 %v5160_v16, %v7255_v6  ;;  %v3406_v6 = vadd.f32 %v3398_v9, %v3298_v45 }
 0xc86   : > { %v5162_v43 = vpop.eup %5161  ;;  %v3513_v55 = vmul.f32 0.0, %v3509_v0 }
 0xc87   : > { %v3507_v1 = vmul.f32 %v5162_v43, %v7258_v53  ;;  %v3408_v53 = vadd.f32 %v3404_v51, %v3300_v29 }
 0xc88   : > { %v5164_v26 = vpop.eup %5163  ;;  %v7285_v54 = vadd.f32 %v3513_v55, %v3409_v60 }
 0xc89   : > { %v7287_v46 = vadd.f32 %v3507_v1, %v3407_v58  ;;  %v3506_v7 = vmul.f32 %v5164_v26, %v7262_v48 }
 0xc8a   : > { %v3525_v47 = vmul.f32 %v6325_v33, %v7285_v54 }
 0xc8b   : > { %v5166_v24 = vpop.eup %5165  ;;  %v3523_v57 = vmul.f32 %v6321_v31, %v7287_v46  ;;  %v7294_v22 = vadd.f32 %v3506_v7, %v3406_v6 }
 0xc8c   : > { %v3508_v27 = vmul.f32 %v5166_v24, %v7266_v5  ;;  %v3537_v48 = vadd.f32 %v3525_v47, %v6619_v14 }
 0xc8d   : > { %v3535_v38 = vadd.f32 %v3523_v57, %v6611_v18  ;;  %v3522_v17 = vmul.f32 %v7294_v22, %v6323_v32 }
 0xc8e   : > { %v7300_v8 = vadd.f32 %v3508_v27, %v3408_v53  ;;  %v3541_v32 = vadd.f32 %v7067_v4, %v3537_v48 }
 0xc8f   : > { %v3539_v33 = vadd.f32 %v7067_v4, %v3535_v38  ;;  %v3534_v52 = vadd.f32 %v3522_v17, %v6623_v39 }
 0xc90   : > { %v3524_v31 = vmul.f32 %v7300_v8, %v6327_v34  ;;  %v3545_v23 = vmax.f32 %v3541_v32, 0.0 }
 0xc91   : > { %v3543_v5 = vmax.f32 %v3539_v33, 0.0  ;;  %v3538_v18 = vadd.f32 %v7067_v4, %v3534_v52 }
 0xc92   : > { %v3536_v10 = vadd.f32 %v3524_v31, %v6636_v49  ;;  %v3637_v49 = vmul.f32 %v7077_v28, %v3636_v11  ;;  %v3549_v2 = vmul.f32 %v7077_v28, %v3545_v23 }
 0xc93   : > { %v3547_v30 = vmul.f32 %v7077_v28, %v3543_v5  ;;  %v3542_v14 = vmax.f32 %v3538_v18, 0.0 }
 0xc94   : > { %v3540_v63 = vadd.f32 %v7067_v4, %v3536_v10  ;;  %v3638_v4 = vsel %vm1766_vm2, %v3637_v49, 0.0  ;;  %v3559_v16 = vsel %vm752_vm1, %v3549_v2, 0.0 }
 0xc95   : > { %v3553_v39 = vsel %vm752_vm1, %v3547_v30, 0.0  ;;  %v3546_v34 = vmul.f32 %v7077_v28, %v3542_v14 }
 0xc96   : > { %3554 = vadd.xlane.f32.xlu0 %v3553_v39  ;;  %v3544_v15 = vmax.f32 %v3540_v63, 0.0 }
 0xc97   : > { %v3550_v3 = vsel %vm752_vm1, %v3546_v34, 0.0 }
 0xc98   : > { %v3548_v50 = vmul.f32 %v7077_v28, %v3544_v15 }
 0xc9a   : > { %3551 = vadd.xlane.f32.xlu0 %v3550_v3  ;;  %v3556_v40 = vsel %vm752_vm1, %v3548_v50, 0.0 }
 0xc9b   : > { %3557 = vadd.xlane.f32.xlu1 %v3556_v40 }
 0xc9e   : > { %3639 = vadd.xlane.f32.xlu0 %v3638_v4 }
 0xc9f   : > { %3560 = vadd.xlane.f32.xlu1 %v3559_v16 }
 0xd23   : > { %v3555_v13 = vpop.xlane.xlu0 %3554 }
 0xd24   : > { %v3647_v20 = vrot.slane %v3555_v13, 4 }
 0xd26   : > { %v3648_v61 = vmax.f32 %v3555_v13, %v3647_v20 }
 0xd27   : > { %v3552_v62 = vpop.xlane.xlu0 %3551 }
 0xd28   : > { %v3649_v37 = vrot.slane %v3648_v61, 2  ;;  %v3558_v42 = vpop.xlane.xlu1 %3557  ;;  %v3641_v0 = vrot.slane %v3552_v62, 4 }
 0xd29   : > { %v3653_v59 = vrot.slane %v3558_v42, 4 }
 0xd2a   : > { %v3650_v41 = vmax.f32 %v3648_v61, %v3649_v37  ;;  %v3642_v9 = vmax.f32 %v3552_v62, %v3641_v0 }
 0xd2b   : > { %v3654_v43 = vmax.f32 %v3558_v42, %v3653_v59  ;;  %v3640_v19 = vpop.xlane.xlu0 %3639 }
 0xd2c   : > { %v3651_v28 = vrot.slane %v3650_v41, 1  ;;  %v3643_v60 = vrot.slane %v3642_v9, 2  ;;  %v3561_v55 = vpop.xlane.xlu1 %3560  ;;  %v3666_v29 = vrot.slane %v3640_v19, 1  ;;  %v3667_v48 = vrot.slane %v3640_v19, 2 }
 0xd2d   : > { %v3655_v58 = vrot.slane %v3654_v43, 2  ;;  %v3659_v1 = vrot.slane %v3561_v55, 4  ;;  %v3668_v32 = vrot.slane %v3640_v19, 3 }
 0xd2e   : > { %v3652_v45 = vmax.f32 %v3650_v41, %v3651_v28  ;;  %v3644_v26 = vmax.f32 %v3642_v9, %v3643_v60 }
 0xd2f   : > { %v3656_v51 = vmax.f32 %v3654_v43, %v3655_v58  ;;  %v3660_v6 = vmax.f32 %v3561_v55, %v3659_v1 }
 0xd30   : > { %v3645_v7 = vrot.slane %v3644_v26, 1  ;;  %v3674_v47 = vmax.f32 %v3652_v45, %v3666_v29 }
 0xd31   : > { %v3657_v24 = vrot.slane %v3656_v51, 1  ;;  %v3661_v57 = vrot.slane %v3660_v6, 2 }
 0xd32   : > { %v3646_v53 = vmax.f32 %v3644_v26, %v3645_v7  ;;  %v3684_v27 = vrot.slane %v3674_v47, %v6366_v56  ;;  %v3709_v14 = vrot.slane %v3674_v47, 7 }
 0xd33   : > { %v3658_v38 = vmax.f32 %v3656_v51, %v3657_v24  ;;  %v3662_v17 = vmax.f32 %v3660_v6, %v3661_v57 }
 0xd34   : > { %v3673_v33 = vmax.f32 %v3646_v53, %v3640_v19  ;;  %v3694_v52 = vsub.f32 %v3555_v13, %v3684_v27 }
 0xd35   : > { %v3663_v31 = vrot.slane %v3662_v17, 1  ;;  %v3675_v21 = vmax.f32 %v3658_v38, %v3667_v48 }
 0xd36   : > { %v3680_v5 = vrot.slane %v3673_v33, %v6366_v56  ;;  %v3699_v18 = vmul.f32 1.442695, %v3694_v52  ;;  %v3710_v15 = vsel %vm1839_vm3, %v3709_v14, %v3673_v33 }
 0xd37   : > { %v3664_v10 = vmax.f32 %v3662_v17, %v3663_v31  ;;  %v3688_v30 = vrot.slane %v3675_v21, %v6366_v56  ;;  %v3711_v11 = vrot.slane %v3675_v21, 6 }
 0xd38   : > { %v3693_v63 = vsub.f32 %v3552_v62, %v3680_v5  ;;  %5167 = vpow2.f32 %v3699_v18 }
 0xd39   : > { %v3676_v39 = vmax.f32 %v3664_v10, %v3668_v32  ;;  %v3695_v34 = vsub.f32 %v3558_v42, %v3688_v30  ;;  %v3712_v40 = vsel %vm1842_vm4, %v3711_v11, %v3710_v15  ;;  %v5198_v15 = vld [vmem:[%s6227_s1 + $0x8] sm:$0xff] }
 0xd3a   : > { %v3697_v23 = vmul.f32 1.442695, %v3693_v63 }
 0xd3b   : > { %v3692_v3 = vrot.slane %v3676_v39, %v6366_v56  ;;  %v3701_v50 = vmul.f32 1.442695, %v3695_v34  ;;  %v3713_v49 = vrot.slane %v3676_v39, 5 }
 0xd3c   : > { %5169 = vpow2.f32 %v3697_v23  ;;  %v3519_v23 = vmul.f32 %v5198_v15, %v7287_v46 }
 0xd3d   : > { %v3696_v2 = vsub.f32 %v3561_v55, %v3692_v3  ;;  %5171 = vpow2.f32 %v3701_v50  ;;  %v3714_v4 = vsel %vm1845_vm5, %v3713_v49, %v3712_v40  ;;  %v5199_v40 = vld [vmem:[%s6227_s1] sm:$0xff] }
 0xd3e   : > { %v3716_v16 = vsub.f32 %v3640_v19, %v3714_v4 }
 0xd3f   : > { %v3703_v13 = vmul.f32 1.442695, %v3696_v2  ;;  %v3518_v2 = vmul.f32 %v5199_v40, %v7294_v22 }
 0xd40   : > { %v3717_v20 = vmul.f32 1.442695, %v3716_v16  ;;  %v5200_v16 = vld [vmem:[%s6227_s1 + $0x10] sm:$0xff] }
 0xd41   : > { %5173 = vpow2.f32 %v3703_v13  ;;  %v3520_v13 = vmul.f32 %v5200_v16, %v7300_v8  ;;  %v3942_v16 = vld [vmem:[#allocation19 + $0x8] sm:$0xff] }
 0xd42   : > { %v5168_v61 = vpop.eup %5167  ;;  %5175 = vpow2.f32 %v3717_v20 }
 0xd43   : > { %v3726_v62 = vsel %vm1851_vm6, %v5168_v61, 0.0  ;;  %3770 = vperm.xlu1 %4938, %v5168_v61  }
 0xd44   : > { %v3727_v37 = vrot.slane %v3726_v62, 4 }
 0xd46   : > { %v5170_v56 = vpop.eup %5169  ;;  %v3728_v42 = vadd.f32 %v3727_v37, %v3726_v62 }
 0xd47   : > { %v5172_v0 = vpop.eup %5171  ;;  %v3719_v59 = vsel %vm1851_vm6, %v5170_v56, 0.0  ;;  %3765 = vperm.xlu1 %4938, %v5170_v56  }
 0xd48   : > { %v3720_v41 = vrot.slane %v3719_v59, 4  ;;  %v3729_v9 = vrot.slane %v3728_v42, 2  ;;  %v3733_v43 = vsel %vm1851_vm6, %v5172_v0, 0.0  ;;  %3775 = vperm.xlu0 %4937, %v5172_v0  }
 0xd49   : > { %v3734_v19 = vrot.slane %v3733_v43, 4 }
 0xd4a   : > { %v3721_v28 = vadd.f32 %v3720_v41, %v3719_v59  ;;  %v3730_v60 = vadd.f32 %v3729_v9, %v3728_v42  ;;  %v5201_v59 = vld [vmem:[%s6227_s1 + $0x18] sm:$0xff]  ;;  %s4398_s1 = sshll.u32 %s5827_s27, 6  ;;  %s5599_s27 = scalar_lea.vmem %s7368_s8, 64 }
 0xd4b   : > { %v5174_v55 = vpop.eup %5173  ;;  %v3735_v58 = vadd.f32 %v3734_v19, %v3733_v43  ;;  %v3521_v41 = vmul.f32 %v5201_v59, %v7285_v54  ;;  %s7366_s12 = scalar_lea.hbm %s7534_s28, %s4398_s1  ;;  %p5600_p12 = scmp.ne.s32.totalorder %s7368_s8, %s5599_s27 }
 0xd4c   : > { %v5176_v1 = vpop.eup %5175  ;;  %v3722_v45 = vrot.slane %v3721_v28, 2  ;;  %v3740_v26 = vsel %vm1851_vm6, %v5174_v55, 0.0  ;;  %3780 = vperm.xlu1 %4938, %v5174_v55   ;;  %v3731_v29 = vrot.slane %v3730_v60, 1  ;;  %p5607_p13 = scmp.lt.s32.totalorder %s5605_s30, %s5599_s27 }
 0xd4d   : > { %v3736_v51 = vrot.slane %v3735_v58, 2  ;;  %v3741_v6 = vrot.slane %v3740_v26, 4  ;;  %3816 = vperm.xlu0 %4937, %v5176_v1   ;;  %v3748_v24 = vrot.slane %v5176_v1, 1  ;;  %v3749_v31 = vrot.slane %v5176_v1, 2  ;;  %p5601_p9 = pnand %p5600_p12, %p7535_p8 }
 0xd4e   : > { %v3723_v7 = vadd.f32 %v3722_v45, %v3721_v28  ;;  %v3732_v47 = vadd.f32 %v3731_v29, %v3730_v60  ;;  %v3750_v30 = vrot.slane %v5176_v1, 3  ;;  %p5608_p0 = por %p5607_p13, %p5606_p1 }
 0xd4f   : > { %v3742_v57 = vadd.f32 %v3741_v6, %v3740_v26  ;;  %v3737_v53 = vadd.f32 %v3736_v51, %v3735_v58  ;;  %p5602_p4 = pneg %p5601_p9 }
 0xd50   : > { %v3756_v27 = vadd.f32 %v3748_v24, %v3732_v47  ;;  %v3724_v38 = vrot.slane %v3723_v7, 1 }
 0xd51   : > { %v3743_v17 = vrot.slane %v3742_v57, 2  ;;  %v3738_v48 = vrot.slane %v3737_v53, 1  ;;  %p5609_p2 = pnand %p5608_p0, %p5602_p4 }
 0xd52   : > { %5177 = vrcp.f32 %v3756_v27  ;;  %v3725_v33 = vadd.f32 %v3724_v38, %v3723_v7 }
 0xd53   : > { %v3739_v52 = vadd.f32 %v3738_v48, %v3737_v53  ;;  %v3744_v21 = vadd.f32 %v3743_v17, %v3742_v57 }
 0xd54   : > { %v3755_v5 = vadd.f32 %v5176_v1, %v3725_v33 }
 0xd55   : > { %v3757_v18 = vadd.f32 %v3749_v31, %v3739_v52  ;;  %v3745_v10 = vrot.slane %v3744_v21, 1 }
 0xd56   : > { %5179 = vrcp.f32 %v3755_v5 }
 0xd57   : > { %5181 = vrcp.f32 %v3757_v18  ;;  %v3746_v32 = vadd.f32 %v3745_v10, %v3744_v21 }
 0xd59   : > { %v3758_v14 = vadd.f32 %v3750_v30, %v3746_v32 }
 0xd5b   : > { %5183 = vrcp.f32 %v3758_v14 }
 0xd5c   : > { %v5178_v63 = vpop.eup %5177 }
 0xd5d   : > { %3839 = vperm.xlu1 %4938, %v5178_v63  }
 0xd60   : > { %v5180_v11 = vpop.eup %5179 }
 0xd61   : > { %v5182_v39 = vpop.eup %5181  ;;  %3834 = vperm.xlu1 %4938, %v5180_v11  }
 0xd62   : > { %3844 = vperm.xlu0 %4937, %v5182_v39  }
 0xd65   : > { %v5184_v34 = vpop.eup %5183 }
 0xd66   : > { %3849 = vperm.xlu0 %4937, %v5184_v34  }
 0xdc2   : > { %v3771_v3 = vpop.permute.xlu1 %3770 }
 0xdc3   : > { %v3784_v50 = vmul.f32 %v3771_v3, %v3519_v23 }
 0xdc5   : > { %v3794_v49 = vsel %vm752_vm1, %v3784_v50, 0.0 }
 0xdc6   : > { %v3795_v4 = vrot.slane %v3794_v49, 4  ;;  %v3766_v20 = vpop.permute.xlu1 %3765 }
 0xdc7   : > { %v3776_v61 = vpop.permute.xlu0 %3775  ;;  %v3783_v62 = vmul.f32 %v3766_v20, %v3518_v2  ;;  %v3943_v20 = vld [vmem:[#allocation19 + $0x10] sm:$0xff] }
 0xdc8   : > { %v3796_v37 = vadd.f32 %v3795_v4, %v3794_v49  ;;  %v3785_v56 = vmul.f32 %v3776_v61, %v3520_v13  ;;  %v3941_v4 = vld [vmem:[#allocation19] sm:$0xff]  ;;  %v3944_v61 = vld [vmem:[#allocation19 + $0x18] sm:$0xff] }
 0xdc9   : > { %v3787_v42 = vsel %vm752_vm1, %v3783_v62, 0.0  ;;  %v4741_v13 = vpack.c.bf16 %v3942_v16, %v3941_v4  ;;  %v4744_v62 = vpack.c.bf16 %v3944_v61, %v3943_v20 }
 0xdca   : > { %v3801_v46 = vsel %vm752_vm1, %v3785_v56, 0.0  ;;  %v3788_v0 = vrot.slane %v3787_v42, 4  ;;  %v3797_v9 = vrot.slane %v3796_v37, 2  ;;  %v4027_v56 = vld [vmem:[#allocation22 + $0x8] sm:$0xff] }
 0xdcb   : > { %v3802_v43 = vrot.slane %v3801_v46, 4  ;;  %v3781_v22 = vpop.permute.xlu1 %3780  ;;  %4742 = vmatpush3.bf16.msra.mxu1 %v4741_v13 }
 0xdcc   : > { %v3789_v19 = vadd.f32 %v3788_v0, %v3787_v42  ;;  %v3786_v28 = vmul.f32 %v3781_v22, %v3521_v41  ;;  %v3798_v55 = vadd.f32 %v3797_v9, %v3796_v37  ;;  %v3817_v29 = vpop.permute.xlu0 %3816  ;;  %4743 = vmatprep.subr.bf16.mxu1 %v7519_v36  ;;  %v4026_v37 = vld [vmem:[#allocation22] sm:$0xff]  ;;  %v4028_v42 = vld [vmem:[#allocation22 + $0x10] sm:$0xff]  ;;  %v4029_v0 = vld [vmem:[#allocation22 + $0x18] sm:$0xff] }
 0xdcd   : > { %v3803_v60 = vadd.f32 %v3802_v43, %v3801_v46  ;;  %v3819_v54 = vmul.f32 %v3817_v29, %v7050_v12  ;;  %v4747_v46 = vpack.c.bf16 %v4027_v56, %v4026_v37  ;;  %v4750_v59 = vpack.c.bf16 %v4029_v0, %v4028_v42  ;;  %v4031_v41 = vld [vmem:[#allocation22 + $0x28] sm:$0xff]  ;;  %v5202_v22 = vld [vmem:[#allocation17] ss:$0 sm:$0xff] }
 0xdce   : > { %v3808_v8 = vsel %vm752_vm1, %v3786_v28, 0.0  ;;  %v3790_v58 = vrot.slane %v3789_v19, 2  ;;  %v3799_v6 = vrot.slane %v3798_v55, 1 }
 0xdcf   : > { %v3809_v1 = vrot.slane %v3808_v8, 4  ;;  %v3804_v45 = vrot.slane %v3803_v60, 2  ;;  %v3821_v38 = vrot.slane %v3819_v54, 1  ;;  %v3822_v5 = vrot.slane %v3819_v54, 2  ;;  %4745 = vmatpush3.bf16.msra.mxu1 %v4744_v62 }
 0xdd0   : > { %v3791_v51 = vadd.f32 %v3790_v58, %v3789_v19  ;;  %v3800_v24 = vadd.f32 %v3799_v6, %v3798_v55  ;;  %v3823_v39 = vrot.slane %v3819_v54, 3  ;;  %v4032_v58 = vld [vmem:[#allocation22 + $0x30] sm:$0xff] }
 0xdd1   : > { %v3810_v26 = vadd.f32 %v3809_v1, %v3808_v8  ;;  %v3805_v7 = vadd.f32 %v3804_v45, %v3803_v60  ;;  %v4033_v1 = vld [vmem:[#allocation22 + $0x38] sm:$0xff] }
 0xdd2   : > { %v3792_v57 = vrot.slane %v3791_v51, 1  ;;  %v3829_v17 = vadd.f32 %v3821_v38, %v3800_v24  ;;  %v4756_v45 = vpack.c.bf16 %v4033_v1, %v4032_v58 }
 0xdd3   : > { %v3811_v47 = vrot.slane %v3810_v26, 2  ;;  %v3806_v27 = vrot.slane %v3805_v7, 1 }
 0xdd4   : > { %v3793_v48 = vadd.f32 %v3792_v57, %v3791_v51 }
 0xdd5   : > { %v3812_v53 = vadd.f32 %v3811_v47, %v3810_v26  ;;  %v3807_v52 = vadd.f32 %v3806_v27, %v3805_v7  ;;  %v4393_v26 = vld [vmem:[#allocation20] ss:$0 sm:$0xff]  ;;  %v4395_v7 = vld [vmem:[#allocation23] ss:$0 sm:$0xff] }
 0xdd6   : > { %v3828_v18 = vadd.f32 %v3819_v54, %v3793_v48 }
 0xdd7   : > { %v3813_v31 = vrot.slane %v3812_v53, 1  ;;  %v3830_v10 = vadd.f32 %v3822_v5, %v3807_v52 }
 0xdd9   : > { %v3814_v30 = vadd.f32 %v3813_v31, %v3812_v53 }
 0xddb   : > { %v3831_v23 = vadd.f32 %v3823_v39, %v3814_v30 }
 0xddc   : > { %v3840_v33 = vpop.permute.xlu1 %3839 }
 0xddd   : > { %v3853_v21 = vmul.f32 %v3840_v33, %v3829_v17 }
 0xddf   : > { %v3860_v14 = vrot.slane %v3853_v21, 7 }
 0xde0   : > { %v3835_v32 = vpop.permute.xlu1 %3834 }
 0xde1   : > { %v3845_v63 = vpop.permute.xlu0 %3844  ;;  %v3852_v11 = vmul.f32 %v3835_v32, %v3828_v18 }
 0xde2   : > { %v3854_v12 = vmul.f32 %v3845_v63, %v3830_v10 }
 0xde3   : > { %v3861_v34 = vsel %vm1839_vm3, %v3860_v14, %v3852_v11 }
 0xde4   : > { %v3862_v15 = vrot.slane %v3854_v12, 6 }
 0xde5   : > { %v3850_v3 = vpop.permute.xlu0 %3849 }
 0xde6   : > { %v3863_v50 = vsel %vm1842_vm4, %v3862_v15, %v3861_v34  ;;  %v3855_v49 = vmul.f32 %v3850_v3, %v3831_v23 }
 0xde8   : > { %v3864_v40 = vrot.slane %v3855_v49, 5 }
 0xdea   : > { %v3865_v2 = vsel %vm1845_vm5, %v3864_v40, %v3863_v50 }
 0xdeb   : > { %4628 = vmatmul.mubr.msk.f32.vlgmr.msra.gmra.mrb[10].mxu0 %vm752_vm1, %v3865_v2 }
 0xdec   : > { %4657 = vmatprep.mubr.msk.f32.mxu0 %vm5716_vm0, %v7521_v35  ;;  %4748 = vmatpush3.bf16.msra.mxu0 %v4747_v46  ;;  %v4030_v35 = vld [vmem:[#allocation22 + $0x20] sm:$0xff] }
 0xded   : > { %4749 = vmatprep.subr.bf16.mxu0 %v7519_v36  ;;  %v4753_v9 = vpack.c.bf16 %v4031_v41, %v4030_v35 }
 0xdf0   : > { %4751 = vmatpush3.bf16.msra.mxu0 %v4750_v59 }
 0xdf1   : > { %4752 = vmatprep.subr.bf16.mxu0 %v7519_v36 }
 0xdf4   : > { %4754 = vmatpush3.bf16.msra.mxu0 %v4753_v9 }
 0xdf5   : > { %4755 = vmatprep.subr.bf16.mxu0 %v7519_v36 }
 0xdf8   : > { %4757 = vmatpush3.bf16.msra.mxu0 %v4756_v45 }
 0xebe   : > { %v3934_v43 = vpop.f32.mrb[10].mxu0 }
 0xebf   : > { %v3935_v19 = vadd.f32 %v5202_v22, %v3934_v43  ;;  %v4629_v28 = vpop.f32.mrb[11].mxu0 }
 0xec1   : > { %v3938_v60 = vmax.f32 %v3935_v19, 0.0 }
 0xec3   : > { %v3939_v8 = vmul.f32 %v3938_v60, %v7526_v25 }
 0xec5   : > { %v3940_v55 = vadd.f32 %v3939_v8, %v7037_v44 }
 0xec7   : > { %4639 = vmatmul.mubr.msk.f32.vlgmr.msra.gmra.mrb[16].mxu1 %vm752_vm1, %v3940_v55 }
 0xf9a   : > { %v4021_v29 = vpop.f32.mrb[16].mxu1 }
 0xf9b   : > { %v4022_v36 = vadd.f32 %v4393_v26, %v4021_v29  ;;  %v4640_v51 = vpop.f32.mrb[17].mxu1 }
 0xf9d   : > { %v4025_v6 = vmax.f32 %v4022_v36, 0.0 }
 0xf9f   : > { %4658 = vmatmul.mubr.msk.f32.vlgmr.msra.gmra.mrb[12].mxu0 %vm4041_vm7, %v4025_v6 }
0x1072   : > { %v4111_v25 = vpop.f32.mrb[12].mxu0 }
0x1073   : > { %v4112_v44 = vadd.f32 %v4395_v7, %v4111_v25  ;;  %v4659_v47 = vpop.f32.mrb[13].mxu0 }
0x1075   : > { %4116 = vst.msk [vmem:[%s736_s18] sm:$0xf] %vm4115_vm8, %v4112_v44 }
0x1076   : > { %5612 = shalt.err (!%p5609_p2)
}
0x1077   : > { %s5613_s20 = scalar_lea.hbm %s7366_s12, 64  ;;  %s5617_s19 = scalar_lea.hbm %s7534_s28, 128 }
0x1078   : > { %p5614_p10 = scmp.ne.s32.totalorder %s7366_s12, %s5613_s20  ;;  %p5618_p7 = scmp.lt.u32.totalorder %s7366_s12, %s7534_s28 }
0x1079   : > { %p5619_p3 = scmp.lt.u32.totalorder %s5617_s19, %s5613_s20  ;;  %p5621_p12 = scmp.lt.u32.totalorder %s5613_s20, %s7366_s12 }
0x107a   : > { %p5615_p11 = pnand %p5614_p10, %p7535_p8 }
0x107b   : > { %p5620_p6 = por %p5619_p3, %p5618_p7 }
0x107c   : > { %p5616_p5 = pneg %p5615_p11 }
0x107d   : > { %p5622_p9 = por %p5621_p12, %p5620_p6 }
0x107f   : > { %p5623_p4 = pnand %p5622_p9, %p5616_p5 }
0x1081   : > { %5626 = shalt.err (!%p5623_p4)
}
0x1082   : > { %4810 = dma.vmem_to_hbm [thread:$0]  (%p7535_p8), %s7368_s8, 64, %s7366_s12, %s4118_s7  }
0x1083 PF: > { %s4143_s18 = sand.u32 1, %s5685_s21   ;;  %p7536_p1 = scmp.ne.s32.totalorder %s7490_s2, 0 }
0x1084   : > { %p7537_p13 = scmp.ge.s32.totalorder %s5697_s24, 2  ;;  %s4144_s6 = scalar_lea.sflag [#allocation4], %s4143_s18 }
0x1086   : > { %p4857_p0 = pnand %p7537_p13, %p7536_p1 }
0x1088   : > { %5680 = dma.done.wait (!%p4857_p0), %s4144_s6, 64  }
0x1089   : > { %5682 = vsyncadd (!%p4857_p0), %s4144_s6, 4294967232  ;;  %p38_p2 = scmp.ge.s32.totalorder %s6107_s0, 4   ;;  %s7538_s21 = smov %s5689_s22 }
0x108a   : > { %s7539_s22 = smov %s5693_s23  ;;  %s7540_s23 = smov %s6118_s25 }
0x108b   : > { %s7541_s24 = smov %s6107_s0  ;;  %40 = sbr.rel (!%p38_p2) target bundleno = 28 (0x1c), region = 190 }
0x1092   :  { %4149 = vsyncpa [#allocation3], 1 }
0x1093   :  { %4151 = vsyncpa [#allocation3 + $0x1], 1 }
0x1094   :  { %4152 = vsyncpa [#allocation6], 1 }
0x1095   :  { %4154 = vsyncpa [#allocation6 + $0x1], 1 }
0x1096   :  { %4155 = vsyncpa [#allocation9], 1 }
0x1097   :  { %4156 = vsyncpa [#allocation12], 1 }
0x1098   :  { %4157 = vsyncpa [#allocation15], 1 }
0x1099   :  { %4158 = vsyncpa [#allocation18], 1 }
0x109a   :  { %4159 = vsyncpa [#allocation21], 1 }
0x109b   :  { %4160 = vsyncpa [#allocation24], 1 }
0x109c   :  { %4161 = vsyncpa [#allocation4], 1 }
0x109d   :  { %4163 = vsyncpa [#allocation4 + $0x1], 1 }

</bundles_post_ra>
